<compile_context>
chip_gen: v5e
topology: v5e:2x2
jax: 0.10.0
libtpu: 0.0.40
codegen_flags: <defaults>
</compile_context>

<pallas_src>
import functools

import numpy as np
import jax
import jax.numpy as jnp
from jax import lax
from jax.experimental import pallas as pl
from jax.experimental.pallas import tpu as pltpu

# ----------------------------- config -------------------------------------
B, TIN, CIN = 2, 1, 3
HI_RAW, WI_RAW = 24, 24               # raw camera frame
INPUT_SHAPE = (32, 32)                # vision_cfg.backbone_cfgs.input_shape
OUTPUT_SHAPE = (16, 16)               # vision_cfg.backbone_cfgs.output_shape
PATCH = 8                             # ViT patch size == stride
EMBED = 32                            # ViT feature dim F
MLP_HIDDEN = 4 * EMBED
DEPTH_HIDDEN = 64                     # depth_head hidden channels
NUM_BINS = 16                         # D depth bins
MIN_DEPTH, MAX_DEPTH = 0.5, 10.0      # discretize cfg
LN_EPS = 1e-6                         # TODO(synk): DINOv2 uses 1e-6; confirm vs nn.LayerNorm 1e-5

IMAGENET_MEAN = np.array([0.485, 0.456, 0.406], np.float32)
IMAGENET_STD = np.array([0.229, 0.224, 0.225], np.float32)

HP, WP = INPUT_SHAPE[0] // PATCH, INPUT_SHAPE[1] // PATCH
N_TOK = HP * WP
HS, WS = OUTPUT_SHAPE
HW_OUT = HS * WS
HW_IN = INPUT_SHAPE[0] * INPUT_SHAPE[1]
HW_RAW = HI_RAW * WI_RAW
CPP = CIN * PATCH * PATCH


# --------------------- host-side interpolation constants -------------------
def _bilinear_matrix(in_size, out_size):
    """PyTorch bilinear (align_corners=False) interpolation matrix (out, in)."""
    i = np.arange(out_size, dtype=np.float64)
    src = (i + 0.5) * in_size / out_size - 0.5
    src = np.clip(src, 0.0, in_size - 1)
    i0 = np.floor(src).astype(np.int64)
    i1 = np.minimum(i0 + 1, in_size - 1)
    w = (src - i0).astype(np.float32)
    R = np.zeros((out_size, in_size), np.float32)
    R[np.arange(out_size), i0] += 1.0 - w
    R[np.arange(out_size), i1] += w
    return R


# Full 2-D resize as a single matmul: out_flat = R_full @ in_flat, R_full = kron(Rh, Rw).
# Channel-first images resize via  x_cf (C, HiWi) @ R_full.T.
_R_IN_T_NP = np.kron(_bilinear_matrix(HI_RAW, INPUT_SHAPE[0]),
                     _bilinear_matrix(WI_RAW, INPUT_SHAPE[1])).T.copy()   # (HW_RAW, HW_IN)


def _make_tap_matrices_t():
    """Per-tap (3x3 shift with zero pad) o (feature resize) matrices, transposed.

    taps_t[t] has shape (N_TOK, HW_OUT):  shifted_resized_cf_t = tok_cf @ taps_t[t].
    Tap ordering matches im2col order: t = (dy+1)*3 + (dx+1), reading (y+dy, x+dx).
    taps_t[4] (dy=dx=0) is exactly the plain output resize.
    """
    r_out = np.kron(_bilinear_matrix(HP, HS), _bilinear_matrix(WP, WS))   # (HW_OUT, N_TOK)
    taps = np.zeros((9, HW_OUT, N_TOK), np.float32)
    t = 0
    for dy in (-1, 0, 1):
        for dx in (-1, 0, 1):
            for y in range(HS):
                yy = y + dy
                if yy < 0 or yy >= HS:
                    continue
                for x in range(WS):
                    xx = x + dx
                    if xx < 0 or xx >= WS:
                        continue
                    taps[t, y * WS + x, :] = r_out[yy * WS + xx, :]
            t += 1
    return np.ascontiguousarray(taps.transpose(0, 2, 1))                  # (9, N_TOK, HW_OUT)


_TAPS_T_NP = _make_tap_matrices_t()


def _bcast_spec(shape):
    """BlockSpec for a weight/constant broadcast to every grid step (whole array)."""
    nd = len(shape)
    return pl.BlockSpec(shape, lambda b, nd=nd: (0,) * nd)


# ------------------- Kernel A: resize + ImageNet normalize -----------------
def _resize_normalize_kernel(x_ref, r_ref, mean_ref, inv_ref, o_ref):
    img = x_ref[0]                                                        # (C, HiWi)
    res = jnp.dot(img, r_ref[...], preferred_element_type=jnp.float32)   # (C, HoWo)
    o_ref[0] = (res - mean_ref[...]) * inv_ref[...]                       # fused normalize


def resize_normalize(x_cf, r_in_t, mean_col, inv_col):
    BT, C, _ = x_cf.shape
    return pl.pallas_call(
        _resize_normalize_kernel,
        out_shape=jax.ShapeDtypeStruct((BT, C, HW_IN), jnp.float32),
        grid=(BT,),
        in_specs=[pl.BlockSpec((1, C, HW_RAW), lambda b: (b, 0, 0)),
                  _bcast_spec((HW_RAW, HW_IN)),
                  _bcast_spec((C, 1)),
                  _bcast_spec((C, 1))],
        out_specs=pl.BlockSpec((1, C, HW_IN), lambda b: (b, 0, 0)),
        compiler_params=pltpu.CompilerParams(dimension_semantics=("parallel",)),
    )(x_cf, r_in_t, mean_col, inv_col)


# ---------------------- Kernel B: fused ViT block ---------------------------
def _ln(x, g, b):
    mu = jnp.mean(x, axis=-1, keepdims=True)
    var = jnp.mean(jnp.square(x - mu), axis=-1, keepdims=True)
    return (x - mu) * lax.rsqrt(var + LN_EPS) * g + b


def _vit_block_kernel(p_ref, pos_ref,
                      pw_ref, pb_ref,
                      ln1g_ref, ln1b_ref,
                      wq_ref, bq_ref, wk_ref, bk_ref, wv_ref, bv_ref,
                      po_ref, pob_ref,
                      ln2g_ref, ln2b_ref,
                      w1_ref, b1_ref, w2_ref, b2_ref,
                      lnfg_ref, lnfb_ref,
                      o_ref, *, scale):
    patches = p_ref[0]                                                    # (N, C*P*P)
    tok = jnp.dot(patches, pw_ref[...], preferred_element_type=jnp.float32)
    tok = tok + pb_ref[...] + pos_ref[...]                                # (N, F)

    # attention
    h = _ln(tok, ln1g_ref[...], ln1b_ref[...])
    q = jnp.dot(h, wq_ref[...], preferred_element_type=jnp.float32) + bq_ref[...]
    k = jnp.dot(h, wk_ref[...], preferred_element_type=jnp.float32) + bk_ref[...]
    v = jnp.dot(h, wv_ref[...], preferred_element_type=jnp.float32) + bv_ref[...]
    s = lax.dot_general(q, k, (((1,), (1,)), ((), ())),
                        preferred_element_type=jnp.float32) * scale       # (N, N), no k.T
    m = jnp.max(s, axis=-1, keepdims=True)
    e = jnp.exp(s - m)
    p = e * pl.reciprocal(jnp.sum(e, axis=-1, keepdims=True), approx=True)
    attn = jnp.dot(p, v, preferred_element_type=jnp.float32)
    attn = jnp.dot(attn, po_ref[...], preferred_element_type=jnp.float32) + pob_ref[...]
    tok = tok + attn

    # MLP
    h = _ln(tok, ln2g_ref[...], ln2b_ref[...])
    h = jnp.dot(h, w1_ref[...], preferred_element_type=jnp.float32) + b1_ref[...]
    h = jax.nn.gelu(h, approximate=True)
    h = jnp.dot(h, w2_ref[...], preferred_element_type=jnp.float32) + b2_ref[...]
    tok = tok + h

    o_ref[0] = _ln(tok, lnfg_ref[...], lnfb_ref[...])                     # (N, F)


def vit_block(patches, params):
    BT = patches.shape[0]
    scale = 1.0 / float(np.sqrt(EMBED))
    row = lambda a: a.reshape(1, -1)
    args = [
        patches, params["pos_emb"],
        params["patch_w"], row(params["patch_b"]),
        row(params["ln1_g"]), row(params["ln1_b"]),
        params["wq"], row(params["bq"]),
        params["wk"], row(params["bk"]),
        params["wv"], row(params["bv"]),
        params["proj_w"], row(params["proj_b"]),
        row(params["ln2_g"]), row(params["ln2_b"]),
        params["mlp_w1"], row(params["mlp_b1"]),
        params["mlp_w2"], row(params["mlp_b2"]),
        row(params["lnf_g"]), row(params["lnf_b"]),
    ]
    in_specs = [pl.BlockSpec((1, N_TOK, CPP), lambda b: (b, 0, 0))]
    in_specs += [_bcast_spec(a.shape) for a in args[1:]]
    return pl.pallas_call(
        functools.partial(_vit_block_kernel, scale=scale),
        out_shape=jax.ShapeDtypeStruct((BT, N_TOK, EMBED), jnp.float32),
        grid=(BT,),
        in_specs=in_specs,
        out_specs=pl.BlockSpec((1, N_TOK, EMBED), lambda b: (b, 0, 0)),
        compiler_params=pltpu.CompilerParams(dimension_semantics=("parallel",)),
    )(*args)


# ---- Kernel C: feature resize + depth head (3x3 conv, 1x1 conv) + metric ----
def _depth_head_kernel(tok_ref, taps_ref, w1_ref, b1_ref, w2_ref, b2_ref, cen_ref,
                       feat_ref, logit_ref, metric_ref):
    tok = tok_ref[0]                                                      # (F, N_TOK) channel-first
    # bilinear resize of the ViT feature map (lane-dense, 256 lanes)
    feat_ref[0] = jnp.dot(tok, taps_ref[4], preferred_element_type=jnp.float32)      # (F, HW)
    # 3x3 'same' conv:  sum_t W1_t^T @ tok @ M_t^T   (9 shifted-resize taps)
    acc = jnp.zeros((DEPTH_HIDDEN, HW_OUT), jnp.float32)
    for t in range(9):
        pre = jnp.dot(w1_ref[t], tok, preferred_element_type=jnp.float32)             # (DH, N_TOK)
        acc = acc + jnp.dot(pre, taps_ref[t], preferred_element_type=jnp.float32)     # (DH, HW)
    h = jnp.maximum(acc + b1_ref[...], 0.0)
    logits = jnp.dot(w2_ref[...], h, preferred_element_type=jnp.float32) + b2_ref[...]  # (D, HW)
    logit_ref[0] = logits
    # per-pixel softmax over depth bins (sublane axis) + expectation over centers
    m = jnp.max(logits, axis=0, keepdims=True)
    e = jnp.exp(logits - m)
    probs = e * pl.reciprocal(jnp.sum(e, axis=0, keepdims=True), approx=True)
    metric_ref[0] = jnp.dot(cen_ref[...], probs, preferred_element_type=jnp.float32)   # (1, HW)


def depth_head_metric(tok_cf, taps_t, w1_t, b1_col, w2_t, b2_col, centers_row):
    BT = tok_cf.shape[0]
    return pl.pallas_call(
        _depth_head_kernel,
        out_shape=(jax.ShapeDtypeStruct((BT, EMBED, HW_OUT), jnp.float32),
                   jax.ShapeDtypeStruct((BT, NUM_BINS, HW_OUT), jnp.float32),
                   jax.ShapeDtypeStruct((BT, 1, HW_OUT), jnp.float32)),
        grid=(BT,),
        in_specs=[pl.BlockSpec((1, EMBED, N_TOK), lambda b: (b, 0, 0)),
                  _bcast_spec(taps_t.shape), _bcast_spec(w1_t.shape),
                  _bcast_spec(b1_col.shape), _bcast_spec(w2_t.shape),
                  _bcast_spec(b2_col.shape), _bcast_spec(centers_row.shape)],
        out_specs=(pl.BlockSpec((1, EMBED, HW_OUT), lambda b: (b, 0, 0)),
                   pl.BlockSpec((1, NUM_BINS, HW_OUT), lambda b: (b, 0, 0)),
                   pl.BlockSpec((1, 1, HW_OUT), lambda b: (b, 0, 0))),
        compiler_params=pltpu.CompilerParams(dimension_semantics=("parallel",)),
    )(tok_cf, taps_t, w1_t, b1_col, w2_t, b2_col, centers_row)


# ------------------------------- params -------------------------------------
def init_params(key):
    ks = jax.random.split(key, 10)

    def dense(k, fi, fo):
        return jax.random.normal(k, (fi, fo), jnp.float32) / np.sqrt(fi)

    return {
        # frozen ViT backbone (synthetic single block stand-in for DINOv2)
        "patch_w": dense(ks[0], CPP, EMBED), "patch_b": jnp.zeros((EMBED,), jnp.float32),
        "pos_emb": 0.02 * jax.random.normal(ks[1], (N_TOK, EMBED), jnp.float32),
        "ln1_g": jnp.ones((EMBED,), jnp.float32), "ln1_b": jnp.zeros((EMBED,), jnp.float32),
        "wq": dense(ks[2], EMBED, EMBED), "bq": jnp.zeros((EMBED,), jnp.float32),
        "wk": dense(ks[3], EMBED, EMBED), "bk": jnp.zeros((EMBED,), jnp.float32),
        "wv": dense(ks[4], EMBED, EMBED), "bv": jnp.zeros((EMBED,), jnp.float32),
        "proj_w": dense(ks[5], EMBED, EMBED), "proj_b": jnp.zeros((EMBED,), jnp.float32),
        "ln2_g": jnp.ones((EMBED,), jnp.float32), "ln2_b": jnp.zeros((EMBED,), jnp.float32),
        "mlp_w1": dense(ks[6], EMBED, MLP_HIDDEN), "mlp_b1": jnp.zeros((MLP_HIDDEN,), jnp.float32),
        "mlp_w2": dense(ks[7], MLP_HIDDEN, EMBED), "mlp_b2": jnp.zeros((EMBED,), jnp.float32),
        "lnf_g": jnp.ones((EMBED,), jnp.float32), "lnf_b": jnp.zeros((EMBED,), jnp.float32),
        # depth_head MultiLayerConv: 3x3 conv -> ReLU -> 1x1 conv (im2col-ordered weight)
        "conv1_w": dense(ks[8], 9 * EMBED, DEPTH_HIDDEN), "conv1_b": jnp.zeros((DEPTH_HIDDEN,), jnp.float32),
        "conv2_w": dense(ks[9], DEPTH_HIDDEN, NUM_BINS), "conv2_b": jnp.zeros((NUM_BINS,), jnp.float32),
    }


# ------------------------------ forward -------------------------------------
def foundation_backbone_forward(params, x):
    assert x.ndim == 5, f"Expected 5D input, got {x.ndim}"
    Bb, Tin, C, Hi, Wi = x.shape
    BT = Bb * Tin
    x = x.reshape(BT, C, Hi * Wi).astype(jnp.float32)

    # transform: bilinear Resize(input_image_shape) + ImageNet Normalize (one kernel)
    r_in_t = jnp.asarray(_R_IN_T_NP)
    mean_col = jnp.asarray(IMAGENET_MEAN).reshape(C, 1)
    inv_col = jnp.asarray(1.0 / IMAGENET_STD).reshape(C, 1)
    xr = resize_normalize(x, r_in_t, mean_col, inv_col)                   # (BT, C, HoWo)

    # patchify: pure layout op, left to XLA (tiny)
    xr = xr.reshape(BT, C, HP, PATCH, WP, PATCH)
    patches = xr.transpose(0, 2, 4, 1, 3, 5).reshape(BT, N_TOK, CPP)

    # ---- ViT feature extraction (frozen backbone), one fused kernel ----
    # TODO(synk): real DINOv2 ViTExtractor weights/depth are config-defined and not
    # reproducible here; a deterministic single-block ViT stands in.
    tok = vit_block(patches, params)                                      # (BT, N, F)
    tok_cf = tok.transpose(0, 2, 1)                                       # (BT, F, N) channel-first

    # ---- feats resize + depth_head + metric depth, one fused kernel ----
    edges = np.linspace(MIN_DEPTH, MAX_DEPTH, NUM_BINS + 1, dtype=np.float32)
    centers = 0.5 * (edges[:-1] + edges[1:])                              # (D,)
    taps_t = jnp.asarray(_TAPS_T_NP)                                      # (9, N, HW)
    w1_t = params["conv1_w"].reshape(9, EMBED, DEPTH_HIDDEN).transpose(0, 2, 1)   # (9, DH, F)
    b1_col = params["conv1_b"].reshape(DEPTH_HIDDEN, 1)
    w2_t = params["conv2_w"].T                                            # (D, DH)
    b2_col = params["conv2_b"].reshape(NUM_BINS, 1)
    centers_row = jnp.asarray(centers).reshape(1, NUM_BINS)

    feats, logits, metric = depth_head_metric(tok_cf, taps_t, w1_t, b1_col,
                                              w2_t, b2_col, centers_row)

    return {
        "depth_preds_feats": feats.reshape(BT, EMBED, HS, WS),            # (BT, F, Hs, Ws)
        "depth_preds_logits": logits.reshape(BT, NUM_BINS, HS, WS),       # (BT, D, Hs, Ws)
        "depth_preds_metric": metric.reshape(BT, 1, HS, WS),              # (BT, 1, Hs, Ws)
        "depth_preds_bins": jnp.asarray(centers),                         # (D,) bin centers
    }


if __name__ == "__main__":
    key = jax.random.PRNGKey(0)
    k_x, k_p = jax.random.split(key)
    x = jax.random.uniform(k_x, (B, TIN, CIN, HI_RAW, WI_RAW), jnp.float32)
    params = init_params(k_p)

    fwd = jax.jit(functools.partial(foundation_backbone_forward, params))
    out = jax.block_until_ready(fwd(x))

    assert out["depth_preds_feats"].shape == (B * TIN, EMBED, *OUTPUT_SHAPE)
    assert out["depth_preds_logits"].shape == (B * TIN, NUM_BINS, *OUTPUT_SHAPE)
    assert out["depth_preds_metric"].shape == (B * TIN, 1, *OUTPUT_SHAPE)
    assert out["depth_preds_bins"].shape == (NUM_BINS,)
    assert bool(jnp.all(jnp.isfinite(out["depth_preds_metric"])))
    assert bool(jnp.all(out["depth_preds_metric"] >= MIN_DEPTH - 1e-3))
    assert bool(jnp.all(out["depth_preds_metric"] <= MAX_DEPTH + 1e-3))
    print("KERNEL_OK")
</pallas_src>

<mosaic_0001>
module attributes {stable_mosaic.version = 11 : i64} {
  func.func @_resize_normalize_kernel(%arg0: i32, %arg1: memref<1x3x576xf32, #tpu.memory_space<vmem>>, %arg2: memref<576x1024xf32, #tpu.memory_space<vmem>>, %arg3: memref<3x1xf32, #tpu.memory_space<vmem>>, %arg4: memref<3x1xf32, #tpu.memory_space<vmem>>, %arg5: memref<1x3x1024xf32, #tpu.memory_space<vmem>>) attributes {dimension_semantics = [#tpu.dimension_semantics<parallel>], iteration_bounds = array<i64: 2>, scalar_prefetch = 0 : i64, scratch_operands = 0 : i64, tpu.core_type = #tpu.core_type<tc>, window_params = [{transform_indices = @transform_0, window_bounds = array<i64: 1, 3, 576>}, {pipeline_mode = #tpu.pipeline_mode<synchronous>, transform_indices = @transform_1, window_bounds = array<i64: 576, 1024>}, {pipeline_mode = #tpu.pipeline_mode<synchronous>, transform_indices = @transform_2, window_bounds = array<i64: 3, 1>}, {pipeline_mode = #tpu.pipeline_mode<synchronous>, transform_indices = @transform_3, window_bounds = array<i64: 3, 1>}, {transform_indices = @transform_4, window_bounds = array<i64: 1, 3, 1024>}]} {
    %c0 = arith.constant 0 : index
    %c0_0 = arith.constant 0 : index
    %c0_1 = arith.constant 0 : index
    %0 = vector.load %arg1[%c0, %c0_0, %c0_1] : memref<1x3x576xf32, #tpu.memory_space<vmem>>, vector<1x3x576xf32>
    %1 = vector.shape_cast %0 : vector<1x3x576xf32> to vector<3x576xf32>
    %c0_2 = arith.constant 0 : index
    %c0_3 = arith.constant 0 : index
    %2 = vector.load %arg2[%c0_2, %c0_3] : memref<576x1024xf32, #tpu.memory_space<vmem>>, vector<576x1024xf32>
    %cst = arith.constant dense<0.000000e+00> : vector<3x1024xf32>
    %3 = tpu.matmul %1, %2, %cst {dimension_numbers = #tpu.dot_dimension_numbers<[1], [0], [0], [1], [0, 0, 1, 1], [], []>} : vector<3x576xf32>, vector<576x1024xf32>, vector<3x1024xf32> -> vector<3x1024xf32>
    %c0_4 = arith.constant 0 : index
    %c0_5 = arith.constant 0 : index
    %4 = vector.load %arg3[%c0_4, %c0_5] : memref<3x1xf32, #tpu.memory_space<vmem>>, vector<3x1xf32>
    %5 = vector.broadcast %4 : vector<3x1xf32> to vector<3x1024xf32>
    %6 = arith.subf %3, %5 : vector<3x1024xf32>
    %c0_6 = arith.constant 0 : index
    %c0_7 = arith.constant 0 : index
    %7 = vector.load %arg4[%c0_6, %c0_7] : memref<3x1xf32, #tpu.memory_space<vmem>>, vector<3x1xf32>
    %8 = vector.broadcast %7 : vector<3x1xf32> to vector<3x1024xf32>
    %9 = arith.mulf %6, %8 : vector<3x1024xf32>
    %c0_8 = arith.constant 0 : index
    %c0_9 = arith.constant 0 : index
    %c0_10 = arith.constant 0 : index
    %10 = vector.load %arg5[%c0_8, %c0_9, %c0_10] : memref<1x3x1024xf32, #tpu.memory_space<vmem>>, vector<1x3x1024xf32>
    %11 = vector.shape_cast %10 : vector<1x3x1024xf32> to vector<3x1024xf32>
    %12 = vector.shape_cast %9 : vector<3x1024xf32> to vector<1x3x1024xf32>
    tpu.vector_store %arg5[%c0_8, %c0_9, %c0_10], %12 {strides = array<i32>} : memref<1x3x1024xf32, #tpu.memory_space<vmem>>, vector<1x3x1024xf32>,
    return
  }
  func.func @transform_0(%arg0: i32) -> (i32, i32, i32) {
    %c0_i32 = arith.constant 0 : i32
    %c0_i32_0 = arith.constant 0 : i32
    %c0_i32_1 = arith.constant 0 : i32
    return %arg0, %c0_i32, %c0_i32_0 : i32, i32, i32
  }
  func.func @transform_1(%arg0: i32) -> (i32, i32) {
    %c0_i32 = arith.constant 0 : i32
    %c0_i32_0 = arith.constant 0 : i32
    %c0_i32_1 = arith.constant 0 : i32
    return %c0_i32, %c0_i32_0 : i32, i32
  }
  func.func @transform_2(%arg0: i32) -> (i32, i32) {
    %c0_i32 = arith.constant 0 : i32
    %c0_i32_0 = arith.constant 0 : i32
    %c0_i32_1 = arith.constant 0 : i32
    return %c0_i32, %c0_i32_0 : i32, i32
  }
  func.func @transform_3(%arg0: i32) -> (i32, i32) {
    %c0_i32 = arith.constant 0 : i32
    %c0_i32_0 = arith.constant 0 : i32
    %c0_i32_1 = arith.constant 0 : i32
    return %c0_i32, %c0_i32_0 : i32, i32
  }
  func.func @transform_4(%arg0: i32) -> (i32, i32, i32) {
    %c0_i32 = arith.constant 0 : i32
    %c0_i32_0 = arith.constant 0 : i32
    %c0_i32_1 = arith.constant 0 : i32
    return %arg0, %c0_i32, %c0_i32_0 : i32, i32, i32
  }
}

module attributes {stable_mosaic.version = 11 : i64} {
  func.func @_vit_block_kernel(%arg0: i32, %arg1: memref<1x16x192xf32, #tpu.memory_space<vmem>>, %arg2: memref<16x32xf32, #tpu.memory_space<vmem>>, %arg3: memref<192x32xf32, #tpu.memory_space<vmem>>, %arg4: memref<1x32xf32, #tpu.memory_space<vmem>>, %arg5: memref<1x32xf32, #tpu.memory_space<vmem>>, %arg6: memref<1x32xf32, #tpu.memory_space<vmem>>, %arg7: memref<32x32xf32, #tpu.memory_space<vmem>>, %arg8: memref<1x32xf32, #tpu.memory_space<vmem>>, %arg9: memref<32x32xf32, #tpu.memory_space<vmem>>, %arg10: memref<1x32xf32, #tpu.memory_space<vmem>>, %arg11: memref<32x32xf32, #tpu.memory_space<vmem>>, %arg12: memref<1x32xf32, #tpu.memory_space<vmem>>, %arg13: memref<32x32xf32, #tpu.memory_space<vmem>>, %arg14: memref<1x32xf32, #tpu.memory_space<vmem>>, %arg15: memref<1x32xf32, #tpu.memory_space<vmem>>, %arg16: memref<1x32xf32, #tpu.memory_space<vmem>>, %arg17: memref<32x128xf32, #tpu.memory_space<vmem>>, %arg18: memref<1x128xf32, #tpu.memory_space<vmem>>, %arg19: memref<128x32xf32, #tpu.memory_space<vmem>>, %arg20: memref<1x32xf32, #tpu.memory_space<vmem>>, %arg21: memref<1x32xf32, #tpu.memory_space<vmem>>, %arg22: memref<1x32xf32, #tpu.memory_space<vmem>>, %arg23: memref<1x16x32xf32, #tpu.memory_space<vmem>>) attributes {dimension_semantics = [#tpu.dimension_semantics<parallel>], iteration_bounds = array<i64: 2>, scalar_prefetch = 0 : i64, scratch_operands = 0 : i64, tpu.core_type = #tpu.core_type<tc>, window_params = [{transform_indices = @transform_0, window_bounds = array<i64: 1, 16, 192>}, {pipeline_mode = #tpu.pipeline_mode<synchronous>, transform_indices = @transform_1, window_bounds = array<i64: 16, 32>}, {pipeline_mode = #tpu.pipeline_mode<synchronous>, transform_indices = @transform_2, window_bounds = array<i64: 192, 32>}, {pipeline_mode = #tpu.pipeline_mode<synchronous>, transform_indices = @transform_3, window_bounds = array<i64: 1, 32>}, {pipeline_mode = #tpu.pipeline_mode<synchronous>, transform_indices = @transform_4, window_bounds = array<i64: 1, 32>}, {pipeline_mode = #tpu.pipeline_mode<synchronous>, transform_indices = @transform_5, window_bounds = array<i64: 1, 32>}, {pipeline_mode = #tpu.pipeline_mode<synchronous>, transform_indices = @transform_6, window_bounds = array<i64: 32, 32>}, {pipeline_mode = #tpu.pipeline_mode<synchronous>, transform_indices = @transform_7, window_bounds = array<i64: 1, 32>}, {pipeline_mode = #tpu.pipeline_mode<synchronous>, transform_indices = @transform_8, window_bounds = array<i64: 32, 32>}, {pipeline_mode = #tpu.pipeline_mode<synchronous>, transform_indices = @transform_9, window_bounds = array<i64: 1, 32>}, {pipeline_mode = #tpu.pipeline_mode<synchronous>, transform_indices = @transform_10, window_bounds = array<i64: 32, 32>}, {pipeline_mode = #tpu.pipeline_mode<synchronous>, transform_indices = @transform_11, window_bounds = array<i64: 1, 32>}, {pipeline_mode = #tpu.pipeline_mode<synchronous>, transform_indices = @transform_12, window_bounds = array<i64: 32, 32>}, {pipeline_mode = #tpu.pipeline_mode<synchronous>, transform_indices = @transform_13, window_bounds = array<i64: 1, 32>}, {pipeline_mode = #tpu.pipeline_mode<synchronous>, transform_indices = @transform_14, window_bounds = array<i64: 1, 32>}, {pipeline_mode = #tpu.pipeline_mode<synchronous>, transform_indices = @transform_15, window_bounds = array<i64: 1, 32>}, {pipeline_mode = #tpu.pipeline_mode<synchronous>, transform_indices = @transform_16, window_bounds = array<i64: 32, 128>}, {pipeline_mode = #tpu.pipeline_mode<synchronous>, transform_indices = @transform_17, window_bounds = array<i64: 1, 128>}, {pipeline_mode = #tpu.pipeline_mode<synchronous>, transform_indices = @transform_18, window_bounds = array<i64: 128, 32>}, {pipeline_mode = #tpu.pipeline_mode<synchronous>, transform_indices = @transform_19, window_bounds = array<i64: 1, 32>}, {pipeline_mode = #tpu.pipeline_mode<synchronous>, transform_indices = @transform_20, window_bounds = array<i64: 1, 32>}, {pipeline_mode = #tpu.pipeline_mode<synchronous>, transform_indices = @transform_21, window_bounds = array<i64: 1, 32>}, {transform_indices = @transform_22, window_bounds = array<i64: 1, 16, 32>}]} {
    %c0 = arith.constant 0 : index
    %c0_0 = arith.constant 0 : index
    %c0_1 = arith.constant 0 : index
    %0 = vector.load %arg1[%c0, %c0_0, %c0_1] : memref<1x16x192xf32, #tpu.memory_space<vmem>>, vector<1x16x192xf32>
    %1 = vector.shape_cast %0 : vector<1x16x192xf32> to vector<16x192xf32>
    %c0_2 = arith.constant 0 : index
    %c0_3 = arith.constant 0 : index
    %2 = vector.load %arg3[%c0_2, %c0_3] : memref<192x32xf32, #tpu.memory_space<vmem>>, vector<192x32xf32>
    %cst = arith.constant dense<0.000000e+00> : vector<16x32xf32>
    %3 = tpu.matmul %1, %2, %cst {dimension_numbers = #tpu.dot_dimension_numbers<[1], [0], [0], [1], [0, 0, 1, 1], [], []>} : vector<16x192xf32>, vector<192x32xf32>, vector<16x32xf32> -> vector<16x32xf32>
    %c0_4 = arith.constant 0 : index
    %c0_5 = arith.constant 0 : index
    %4 = vector.load %arg4[%c0_4, %c0_5] : memref<1x32xf32, #tpu.memory_space<vmem>>, vector<1x32xf32>
    %5 = vector.broadcast %4 : vector<1x32xf32> to vector<16x32xf32>
    %6 = arith.addf %3, %5 : vector<16x32xf32>
    %c0_6 = arith.constant 0 : index
    %c0_7 = arith.constant 0 : index
    %7 = vector.load %arg2[%c0_6, %c0_7] : memref<16x32xf32, #tpu.memory_space<vmem>>, vector<16x32xf32>
    %8 = arith.addf %6, %7 : vector<16x32xf32>
    %c0_8 = arith.constant 0 : index
    %c0_9 = arith.constant 0 : index
    %9 = vector.load %arg5[%c0_8, %c0_9] : memref<1x32xf32, #tpu.memory_space<vmem>>, vector<1x32xf32>
    %c0_10 = arith.constant 0 : index
    %c0_11 = arith.constant 0 : index
    %10 = vector.load %arg6[%c0_10, %c0_11] : memref<1x32xf32, #tpu.memory_space<vmem>>, vector<1x32xf32>
    %cst_12 = arith.constant dense<0.000000e+00> : vector<16xf32>
    %11 = vector.multi_reduction <add>, %8, %cst_12 [1] : vector<16x32xf32> to vector<16xf32>
    %12 = vector.shape_cast %11 : vector<16xf32> to vector<16x1xf32>
    %cst_13 = arith.constant 3.200000e+01 : f32
    %13 = vector.broadcast %cst_13 : f32 to vector<16x1xf32>
    %14 = arith.divf %12, %13 : vector<16x1xf32>
    %15 = vector.broadcast %14 : vector<16x1xf32> to vector<16x32xf32>
    %16 = arith.subf %8, %15 : vector<16x32xf32>
    %17 = arith.mulf %16, %16 : vector<16x32xf32>
    %cst_14 = arith.constant dense<0.000000e+00> : vector<16xf32>
    %18 = vector.multi_reduction <add>, %17, %cst_14 [1] : vector<16x32xf32> to vector<16xf32>
    %19 = vector.shape_cast %18 : vector<16xf32> to vector<16x1xf32>
    %cst_15 = arith.constant 3.200000e+01 : f32
    %20 = vector.broadcast %cst_15 : f32 to vector<16x1xf32>
    %21 = arith.divf %19, %20 : vector<16x1xf32>
    %22 = vector.broadcast %14 : vector<16x1xf32> to vector<16x32xf32>
    %23 = arith.subf %8, %22 : vector<16x32xf32>
    %cst_16 = arith.constant 9.99999997E-7 : f32
    %24 = vector.broadcast %cst_16 : f32 to vector<16x1xf32>
    %25 = arith.addf %21, %24 : vector<16x1xf32>
    %26 = math.rsqrt %25 : vector<16x1xf32>
    %27 = vector.broadcast %26 : vector<16x1xf32> to vector<16x32xf32>
    %28 = arith.mulf %23, %27 : vector<16x32xf32>
    %29 = vector.broadcast %9 : vector<1x32xf32> to vector<16x32xf32>
    %30 = arith.mulf %28, %29 : vector<16x32xf32>
    %31 = vector.broadcast %10 : vector<1x32xf32> to vector<16x32xf32>
    %32 = arith.addf %30, %31 : vector<16x32xf32>
    %c0_17 = arith.constant 0 : index
    %c0_18 = arith.constant 0 : index
    %33 = vector.load %arg7[%c0_17, %c0_18] : memref<32x32xf32, #tpu.memory_space<vmem>>, vector<32x32xf32>
    %cst_19 = arith.constant dense<0.000000e+00> : vector<16x32xf32>
    %34 = tpu.matmul %32, %33, %cst_19 {dimension_numbers = #tpu.dot_dimension_numbers<[1], [0], [0], [1], [0, 0, 1, 1], [], []>} : vector<16x32xf32>, vector<32x32xf32>, vector<16x32xf32> -> vector<16x32xf32>
    %c0_20 = arith.constant 0 : index
    %c0_21 = arith.constant 0 : index
    %35 = vector.load %arg8[%c0_20, %c0_21] : memref<1x32xf32, #tpu.memory_space<vmem>>, vector<1x32xf32>
    %36 = vector.broadcast %35 : vector<1x32xf32> to vector<16x32xf32>
    %37 = arith.addf %34, %36 : vector<16x32xf32>
    %c0_22 = arith.constant 0 : index
    %c0_23 = arith.constant 0 : index
    %38 = vector.load %arg9[%c0_22, %c0_23] : memref<32x32xf32, #tpu.memory_space<vmem>>, vector<32x32xf32>
    %cst_24 = arith.constant dense<0.000000e+00> : vector<16x32xf32>
    %39 = tpu.matmul %32, %38, %cst_24 {dimension_numbers = #tpu.dot_dimension_numbers<[1], [0], [0], [1], [0, 0, 1, 1], [], []>} : vector<16x32xf32>, vector<32x32xf32>, vector<16x32xf32> -> vector<16x32xf32>
    %c0_25 = arith.constant 0 : index
    %c0_26 = arith.constant 0 : index
    %40 = vector.load %arg10[%c0_25, %c0_26] : memref<1x32xf32, #tpu.memory_space<vmem>>, vector<1x32xf32>
    %41 = vector.broadcast %40 : vector<1x32xf32> to vector<16x32xf32>
    %42 = arith.addf %39, %41 : vector<16x32xf32>
    %c0_27 = arith.constant 0 : index
    %c0_28 = arith.constant 0 : index
    %43 = vector.load %arg11[%c0_27, %c0_28] : memref<32x32xf32, #tpu.memory_space<vmem>>, vector<32x32xf32>
    %cst_29 = arith.constant dense<0.000000e+00> : vector<16x32xf32>
    %44 = tpu.matmul %32, %43, %cst_29 {dimension_numbers = #tpu.dot_dimension_numbers<[1], [0], [0], [1], [0, 0, 1, 1], [], []>} : vector<16x32xf32>, vector<32x32xf32>, vector<16x32xf32> -> vector<16x32xf32>
    %c0_30 = arith.constant 0 : index
    %c0_31 = arith.constant 0 : index
    %45 = vector.load %arg12[%c0_30, %c0_31] : memref<1x32xf32, #tpu.memory_space<vmem>>, vector<1x32xf32>
    %46 = vector.broadcast %45 : vector<1x32xf32> to vector<16x32xf32>
    %47 = arith.addf %44, %46 : vector<16x32xf32>
    %cst_32 = arith.constant dense<0.000000e+00> : vector<16x16xf32>
    %48 = tpu.matmul %37, %42, %cst_32 {dimension_numbers = #tpu.dot_dimension_numbers<[1], [1], [0], [0], [0, 0, 1, 0], [], []>} : vector<16x32xf32>, vector<16x32xf32>, vector<16x16xf32> -> vector<16x16xf32>
    %cst_33 = arith.constant 0.176776692 : f32
    %49 = vector.broadcast %cst_33 : f32 to vector<16x16xf32>
    %50 = arith.mulf %48, %49 : vector<16x16xf32>
    %cst_34 = arith.constant dense<0xFF800000> : vector<16xf32>
    %51 = vector.multi_reduction <maximumf>, %50, %cst_34 [1] : vector<16x16xf32> to vector<16xf32>
    %52 = vector.shape_cast %51 : vector<16xf32> to vector<16x1xf32>
    %53 = vector.broadcast %52 : vector<16x1xf32> to vector<16x16xf32>
    %54 = arith.subf %50, %53 : vector<16x16xf32>
    %55 = math.exp %54 : vector<16x16xf32>
    %cst_35 = arith.constant dense<0.000000e+00> : vector<16xf32>
    %56 = vector.multi_reduction <add>, %55, %cst_35 [1] : vector<16x16xf32> to vector<16xf32>
    %57 = vector.shape_cast %56 : vector<16xf32> to vector<16x1xf32>
    %58 = tpu.reciprocal %57 {approx = true} : vector<16x1xf32> -> vector<16x1xf32>
    %59 = vector.broadcast %58 : vector<16x1xf32> to vector<16x16xf32>
    %60 = arith.mulf %55, %59 : vector<16x16xf32>
    %cst_36 = arith.constant dense<0.000000e+00> : vector<16x32xf32>
    %61 = tpu.matmul %60, %47, %cst_36 {dimension_numbers = #tpu.dot_dimension_numbers<[1], [0], [0], [1], [0, 0, 1, 1], [], []>} : vector<16x16xf32>, vector<16x32xf32>, vector<16x32xf32> -> vector<16x32xf32>
    %c0_37 = arith.constant 0 : index
    %c0_38 = arith.constant 0 : index
    %62 = vector.load %arg13[%c0_37, %c0_38] : memref<32x32xf32, #tpu.memory_space<vmem>>, vector<32x32xf32>
    %cst_39 = arith.constant dense<0.000000e+00> : vector<16x32xf32>
    %63 = tpu.matmul %61, %62, %cst_39 {dimension_numbers = #tpu.dot_dimension_numbers<[1], [0], [0], [1], [0, 0, 1, 1], [], []>} : vector<16x32xf32>, vector<32x32xf32>, vector<16x32xf32> -> vector<16x32xf32>
    %c0_40 = arith.constant 0 : index
    %c0_41 = arith.constant 0 : index
    %64 = vector.load %arg14[%c0_40, %c0_41] : memref<1x32xf32, #tpu.memory_space<vmem>>, vector<1x32xf32>
    %65 = vector.broadcast %64 : vector<1x32xf32> to vector<16x32xf32>
    %66 = arith.addf %63, %65 : vector<16x32xf32>
    %67 = arith.addf %8, %66 : vector<16x32xf32>
    %c0_42 = arith.constant 0 : index
    %c0_43 = arith.constant 0 : index
    %68 = vector.load %arg15[%c0_42, %c0_43] : memref<1x32xf32, #tpu.memory_space<vmem>>, vector<1x32xf32>
    %c0_44 = arith.constant 0 : index
    %c0_45 = arith.constant 0 : index
    %69 = vector.load %arg16[%c0_44, %c0_45] : memref<1x32xf32, #tpu.memory_space<vmem>>, vector<1x32xf32>
    %cst_46 = arith.constant dense<0.000000e+00> : vector<16xf32>
    %70 = vector.multi_reduction <add>, %67, %cst_46 [1] : vector<16x32xf32> to vector<16xf32>
    %71 = vector.shape_cast %70 : vector<16xf32> to vector<16x1xf32>
    %cst_47 = arith.constant 3.200000e+01 : f32
    %72 = vector.broadcast %cst_47 : f32 to vector<16x1xf32>
    %73 = arith.divf %71, %72 : vector<16x1xf32>
    %74 = vector.broadcast %73 : vector<16x1xf32> to vector<16x32xf32>
    %75 = arith.subf %67, %74 : vector<16x32xf32>
    %76 = arith.mulf %75, %75 : vector<16x32xf32>
    %cst_48 = arith.constant dense<0.000000e+00> : vector<16xf32>
    %77 = vector.multi_reduction <add>, %76, %cst_48 [1] : vector<16x32xf32> to vector<16xf32>
    %78 = vector.shape_cast %77 : vector<16xf32> to vector<16x1xf32>
    %cst_49 = arith.constant 3.200000e+01 : f32
    %79 = vector.broadcast %cst_49 : f32 to vector<16x1xf32>
    %80 = arith.divf %78, %79 : vector<16x1xf32>
    %81 = vector.broadcast %73 : vector<16x1xf32> to vector<16x32xf32>
    %82 = arith.subf %67, %81 : vector<16x32xf32>
    %cst_50 = arith.constant 9.99999997E-7 : f32
    %83 = vector.broadcast %cst_50 : f32 to vector<16x1xf32>
    %84 = arith.addf %80, %83 : vector<16x1xf32>
    %85 = math.rsqrt %84 : vector<16x1xf32>
    %86 = vector.broadcast %85 : vector<16x1xf32> to vector<16x32xf32>
    %87 = arith.mulf %82, %86 : vector<16x32xf32>
    %88 = vector.broadcast %68 : vector<1x32xf32> to vector<16x32xf32>
    %89 = arith.mulf %87, %88 : vector<16x32xf32>
    %90 = vector.broadcast %69 : vector<1x32xf32> to vector<16x32xf32>
    %91 = arith.addf %89, %90 : vector<16x32xf32>
    %c0_51 = arith.constant 0 : index
    %c0_52 = arith.constant 0 : index
    %92 = vector.load %arg17[%c0_51, %c0_52] : memref<32x128xf32, #tpu.memory_space<vmem>>, vector<32x128xf32>
    %cst_53 = arith.constant dense<0.000000e+00> : vector<16x128xf32>
    %93 = tpu.matmul %91, %92, %cst_53 {dimension_numbers = #tpu.dot_dimension_numbers<[1], [0], [0], [1], [0, 0, 1, 1], [], []>} : vector<16x32xf32>, vector<32x128xf32>, vector<16x128xf32> -> vector<16x128xf32>
    %c0_54 = arith.constant 0 : index
    %c0_55 = arith.constant 0 : index
    %94 = vector.load %arg18[%c0_54, %c0_55] : memref<1x128xf32, #tpu.memory_space<vmem>>, vector<1x128xf32>
    %95 = vector.broadcast %94 : vector<1x128xf32> to vector<16x128xf32>
    %96 = arith.addf %93, %95 : vector<16x128xf32>
    %97 = arith.mulf %96, %96 : vector<16x128xf32>
    %98 = arith.mulf %96, %97 : vector<16x128xf32>
    %cst_56 = arith.constant 4.471500e-02 : f32
    %99 = vector.broadcast %cst_56 : f32 to vector<16x128xf32>
    %100 = arith.mulf %99, %98 : vector<16x128xf32>
    %101 = arith.addf %96, %100 : vector<16x128xf32>
    %cst_57 = arith.constant 0.797884583 : f32
    %102 = vector.broadcast %cst_57 : f32 to vector<16x128xf32>
    %103 = arith.mulf %102, %101 : vector<16x128xf32>
    %104 = math.tanh %103 : vector<16x128xf32>
    %cst_58 = arith.constant 1.000000e+00 : f32
    %105 = vector.broadcast %cst_58 : f32 to vector<16x128xf32>
    %106 = arith.addf %105, %104 : vector<16x128xf32>
    %cst_59 = arith.constant 5.000000e-01 : f32
    %107 = vector.broadcast %cst_59 : f32 to vector<16x128xf32>
    %108 = arith.mulf %107, %106 : vector<16x128xf32>
    %109 = arith.mulf %96, %108 : vector<16x128xf32>
    %c0_60 = arith.constant 0 : index
    %c0_61 = arith.constant 0 : index
    %110 = vector.load %arg19[%c0_60, %c0_61] : memref<128x32xf32, #tpu.memory_space<vmem>>, vector<128x32xf32>
    %cst_62 = arith.constant dense<0.000000e+00> : vector<16x32xf32>
    %111 = tpu.matmul %109, %110, %cst_62 {dimension_numbers = #tpu.dot_dimension_numbers<[1], [0], [0], [1], [0, 0, 1, 1], [], []>} : vector<16x128xf32>, vector<128x32xf32>, vector<16x32xf32> -> vector<16x32xf32>
    %c0_63 = arith.constant 0 : index
    %c0_64 = arith.constant 0 : index
    %112 = vector.load %arg20[%c0_63, %c0_64] : memref<1x32xf32, #tpu.memory_space<vmem>>, vector<1x32xf32>
    %113 = vector.broadcast %112 : vector<1x32xf32> to vector<16x32xf32>
    %114 = arith.addf %111, %113 : vector<16x32xf32>
    %115 = arith.addf %67, %114 : vector<16x32xf32>
    %c0_65 = arith.constant 0 : index
    %c0_66 = arith.constant 0 : index
    %116 = vector.load %arg21[%c0_65, %c0_66] : memref<1x32xf32, #tpu.memory_space<vmem>>, vector<1x32xf32>
    %c0_67 = arith.constant 0 : index
    %c0_68 = arith.constant 0 : index
    %117 = vector.load %arg22[%c0_67, %c0_68] : memref<1x32xf32, #tpu.memory_space<vmem>>, vector<1x32xf32>
    %cst_69 = arith.constant dense<0.000000e+00> : vector<16xf32>
    %118 = vector.multi_reduction <add>, %115, %cst_69 [1] : vector<16x32xf32> to vector<16xf32>
    %119 = vector.shape_cast %118 : vector<16xf32> to vector<16x1xf32>
    %cst_70 = arith.constant 3.200000e+01 : f32
    %120 = vector.broadcast %cst_70 : f32 to vector<16x1xf32>
    %121 = arith.divf %119, %120 : vector<16x1xf32>
    %122 = vector.broadcast %121 : vector<16x1xf32> to vector<16x32xf32>
    %123 = arith.subf %115, %122 : vector<16x32xf32>
    %124 = arith.mulf %123, %123 : vector<16x32xf32>
    %cst_71 = arith.constant dense<0.000000e+00> : vector<16xf32>
    %125 = vector.multi_reduction <add>, %124, %cst_71 [1] : vector<16x32xf32> to vector<16xf32>
    %126 = vector.shape_cast %125 : vector<16xf32> to vector<16x1xf32>
    %cst_72 = arith.constant 3.200000e+01 : f32
    %127 = vector.broadcast %cst_72 : f32 to vector<16x1xf32>
    %128 = arith.divf %126, %127 : vector<16x1xf32>
    %129 = vector.broadcast %121 : vector<16x1xf32> to vector<16x32xf32>
    %130 = arith.subf %115, %129 : vector<16x32xf32>
    %cst_73 = arith.constant 9.99999997E-7 : f32
    %131 = vector.broadcast %cst_73 : f32 to vector<16x1xf32>
    %132 = arith.addf %128, %131 : vector<16x1xf32>
    %133 = math.rsqrt %132 : vector<16x1xf32>
    %134 = vector.broadcast %133 : vector<16x1xf32> to vector<16x32xf32>
    %135 = arith.mulf %130, %134 : vector<16x32xf32>
    %136 = vector.broadcast %116 : vector<1x32xf32> to vector<16x32xf32>
    %137 = arith.mulf %135, %136 : vector<16x32xf32>
    %138 = vector.broadcast %117 : vector<1x32xf32> to vector<16x32xf32>
    %139 = arith.addf %137, %138 : vector<16x32xf32>
    %c0_74 = arith.constant 0 : index
    %c0_75 = arith.constant 0 : index
    %c0_76 = arith.constant 0 : index
    %140 = vector.load %arg23[%c0_74, %c0_75, %c0_76] : memref<1x16x32xf32, #tpu.memory_space<vmem>>, vector<1x16x32xf32>
    %141 = vector.shape_cast %140 : vector<1x16x32xf32> to vector<16x32xf32>
    %142 = vector.shape_cast %139 : vector<16x32xf32> to vector<1x16x32xf32>
    tpu.vector_store %arg23[%c0_74, %c0_75, %c0_76], %142 {strides = array<i32>} : memref<1x16x32xf32, #tpu.memory_space<vmem>>, vector<1x16x32xf32>,
    return
  }
  func.func @transform_0(%arg0: i32) -> (i32, i32, i32) {
    %c0_i32 = arith.constant 0 : i32
    %c0_i32_0 = arith.constant 0 : i32
    %c0_i32_1 = arith.constant 0 : i32
    return %arg0, %c0_i32, %c0_i32_0 : i32, i32, i32
  }
  func.func @transform_1(%arg0: i32) -> (i32, i32) {
    %c0_i32 = arith.constant 0 : i32
    %c0_i32_0 = arith.constant 0 : i32
    %c0_i32_1 = arith.constant 0 : i32
    return %c0_i32, %c0_i32_0 : i32, i32
  }
  func.func @transform_2(%arg0: i32) -> (i32, i32) {
    %c0_i32 = arith.constant 0 : i32
    %c0_i32_0 = arith.constant 0 : i32
    %c0_i32_1 = arith.constant 0 : i32
    return %c0_i32, %c0_i32_0 : i32, i32
  }
  func.func @transform_3(%arg0: i32) -> (i32, i32) {
    %c0_i32 = arith.constant 0 : i32
    %c0_i32_0 = arith.constant 0 : i32
    %c0_i32_1 = arith.constant 0 : i32
    return %c0_i32, %c0_i32_0 : i32, i32
  }
  func.func @transform_4(%arg0: i32) -> (i32, i32) {
    %c0_i32 = arith.constant 0 : i32
    %c0_i32_0 = arith.constant 0 : i32
    %c0_i32_1 = arith.constant 0 : i32
    return %c0_i32, %c0_i32_0 : i32, i32
  }
  func.func @transform_5(%arg0: i32) -> (i32, i32) {
    %c0_i32 = arith.constant 0 : i32
    %c0_i32_0 = arith.constant 0 : i32
    %c0_i32_1 = arith.constant 0 : i32
    return %c0_i32, %c0_i32_0 : i32, i32
  }
  func.func @transform_6(%arg0: i32) -> (i32, i32) {
    %c0_i32 = arith.constant 0 : i32
    %c0_i32_0 = arith.constant 0 : i32
    %c0_i32_1 = arith.constant 0 : i32
    return %c0_i32, %c0_i32_0 : i32, i32
  }
  func.func @transform_7(%arg0: i32) -> (i32, i32) {
    %c0_i32 = arith.constant 0 : i32
    %c0_i32_0 = arith.constant 0 : i32
    %c0_i32_1 = arith.constant 0 : i32
    return %c0_i32, %c0_i32_0 : i32, i32
  }
  func.func @transform_8(%arg0: i32) -> (i32, i32) {
    %c0_i32 = arith.constant 0 : i32
    %c0_i32_0 = arith.constant 0 : i32
    %c0_i32_1 = arith.constant 0 : i32
    return %c0_i32, %c0_i32_0 : i32, i32
  }
  func.func @transform_9(%arg0: i32) -> (i32, i32) {
    %c0_i32 = arith.constant 0 : i32
    %c0_i32_0 = arith.constant 0 : i32
    %c0_i32_1 = arith.constant 0 : i32
    return %c0_i32, %c0_i32_0 : i32, i32
  }
  func.func @transform_10(%arg0: i32) -> (i32, i32) {
    %c0_i32 = arith.constant 0 : i32
    %c0_i32_0 = arith.constant 0 : i32
    %c0_i32_1 = arith.constant 0 : i32
    return %c0_i32, %c0_i32_0 : i32, i32
  }
  func.func @transform_11(%arg0: i32) -> (i32, i32) {
    %c0_i32 = arith.constant 0 : i32
    %c0_i32_0 = arith.constant 0 : i32
    %c0_i32_1 = arith.constant 0 : i32
    return %c0_i32, %c0_i32_0 : i32, i32
  }
  func.func @transform_12(%arg0: i32) -> (i32, i32) {
    %c0_i32 = arith.constant 0 : i32
    %c0_i32_0 = arith.constant 0 : i32
    %c0_i32_1 = arith.constant 0 : i32
    return %c0_i32, %c0_i32_0 : i32, i32
  }
  func.func @transform_13(%arg0: i32) -> (i32, i32) {
    %c0_i32 = arith.constant 0 : i32
    %c0_i32_0 = arith.constant 0 : i32
    %c0_i32_1 = arith.constant 0 : i32
    return %c0_i32, %c0_i32_0 : i32, i32
  }
  func.func @transform_14(%arg0: i32) -> (i32, i32) {
    %c0_i32 = arith.constant 0 : i32
    %c0_i32_0 = arith.constant 0 : i32
    %c0_i32_1 = arith.constant 0 : i32
    return %c0_i32, %c0_i32_0 : i32, i32
  }
  func.func @transform_15(%arg0: i32) -> (i32, i32) {
    %c0_i32 = arith.constant 0 : i32
    %c0_i32_0 = arith.constant 0 : i32
    %c0_i32_1 = arith.constant 0 : i32
    return %c0_i32, %c0_i32_0 : i32, i32
  }
  func.func @transform_16(%arg0: i32) -> (i32, i32) {
    %c0_i32 = arith.constant 0 : i32
    %c0_i32_0 = arith.constant 0 : i32
    %c0_i32_1 = arith.constant 0 : i32
    return %c0_i32, %c0_i32_0 : i32, i32
  }
  func.func @transform_17(%arg0: i32) -> (i32, i32) {
    %c0_i32 = arith.constant 0 : i32
    %c0_i32_0 = arith.constant 0 : i32
    %c0_i32_1 = arith.constant 0 : i32
    return %c0_i32, %c0_i32_0 : i32, i32
  }
  func.func @transform_18(%arg0: i32) -> (i32, i32) {
    %c0_i32 = arith.constant 0 : i32
    %c0_i32_0 = arith.constant 0 : i32
    %c0_i32_1 = arith.constant 0 : i32
    return %c0_i32, %c0_i32_0 : i32, i32
  }
  func.func @transform_19(%arg0: i32) -> (i32, i32) {
    %c0_i32 = arith.constant 0 : i32
    %c0_i32_0 = arith.constant 0 : i32
    %c0_i32_1 = arith.constant 0 : i32
    return %c0_i32, %c0_i32_0 : i32, i32
  }
  func.func @transform_20(%arg0: i32) -> (i32, i32) {
    %c0_i32 = arith.constant 0 : i32
    %c0_i32_0 = arith.constant 0 : i32
    %c0_i32_1 = arith.constant 0 : i32
    return %c0_i32, %c0_i32_0 : i32, i32
  }
  func.func @transform_21(%arg0: i32) -> (i32, i32) {
    %c0_i32 = arith.constant 0 : i32
    %c0_i32_0 = arith.constant 0 : i32
    %c0_i32_1 = arith.constant 0 : i32
    return %c0_i32, %c0_i32_0 : i32, i32
  }
  func.func @transform_22(%arg0: i32) -> (i32, i32, i32) {
    %c0_i32 = arith.constant 0 : i32
    %c0_i32_0 = arith.constant 0 : i32
    %c0_i32_1 = arith.constant 0 : i32
    return %arg0, %c0_i32, %c0_i32_0 : i32, i32, i32
  }
}

module attributes {stable_mosaic.version = 11 : i64} {
  func.func @_depth_head_kernel(%arg0: i32, %arg1: memref<1x32x16xf32, #tpu.memory_space<vmem>>, %arg2: memref<9x16x256xf32, #tpu.memory_space<vmem>>, %arg3: memref<9x64x32xf32, #tpu.memory_space<vmem>>, %arg4: memref<64x1xf32, #tpu.memory_space<vmem>>, %arg5: memref<16x64xf32, #tpu.memory_space<vmem>>, %arg6: memref<16x1xf32, #tpu.memory_space<vmem>>, %arg7: memref<1x16xf32, #tpu.memory_space<vmem>>, %arg8: memref<1x32x256xf32, #tpu.memory_space<vmem>>, %arg9: memref<1x16x256xf32, #tpu.memory_space<vmem>>, %arg10: memref<1x1x256xf32, #tpu.memory_space<vmem>>) attributes {dimension_semantics = [#tpu.dimension_semantics<parallel>], iteration_bounds = array<i64: 2>, scalar_prefetch = 0 : i64, scratch_operands = 0 : i64, tpu.core_type = #tpu.core_type<tc>, window_params = [{transform_indices = @transform_0, window_bounds = array<i64: 1, 32, 16>}, {pipeline_mode = #tpu.pipeline_mode<synchronous>, transform_indices = @transform_1, window_bounds = array<i64: 9, 16, 256>}, {pipeline_mode = #tpu.pipeline_mode<synchronous>, transform_indices = @transform_2, window_bounds = array<i64: 9, 64, 32>}, {pipeline_mode = #tpu.pipeline_mode<synchronous>, transform_indices = @transform_3, window_bounds = array<i64: 64, 1>}, {pipeline_mode = #tpu.pipeline_mode<synchronous>, transform_indices = @transform_4, window_bounds = array<i64: 16, 64>}, {pipeline_mode = #tpu.pipeline_mode<synchronous>, transform_indices = @transform_5, window_bounds = array<i64: 16, 1>}, {pipeline_mode = #tpu.pipeline_mode<synchronous>, transform_indices = @transform_6, window_bounds = array<i64: 1, 16>}, {transform_indices = @transform_7, window_bounds = array<i64: 1, 32, 256>}, {transform_indices = @transform_8, window_bounds = array<i64: 1, 16, 256>}, {transform_indices = @transform_9, window_bounds = array<i64: 1, 1, 256>}]} {
    %c0 = arith.constant 0 : index
    %c0_0 = arith.constant 0 : index
    %c0_1 = arith.constant 0 : index
    %0 = vector.load %arg1[%c0, %c0_0, %c0_1] : memref<1x32x16xf32, #tpu.memory_space<vmem>>, vector<1x32x16xf32>
    %1 = vector.shape_cast %0 : vector<1x32x16xf32> to vector<32x16xf32>
    %c4 = arith.constant 4 : index
    %c0_2 = arith.constant 0 : index
    %c0_3 = arith.constant 0 : index
    %2 = vector.load %arg2[%c4, %c0_2, %c0_3] : memref<9x16x256xf32, #tpu.memory_space<vmem>>, vector<1x16x256xf32>
    %3 = vector.shape_cast %2 : vector<1x16x256xf32> to vector<16x256xf32>
    %cst = arith.constant dense<0.000000e+00> : vector<32x256xf32>
    %4 = tpu.matmul %1, %3, %cst {dimension_numbers = #tpu.dot_dimension_numbers<[1], [0], [0], [1], [0, 0, 1, 1], [], []>} : vector<32x16xf32>, vector<16x256xf32>, vector<32x256xf32> -> vector<32x256xf32>
    %c0_4 = arith.constant 0 : index
    %c0_5 = arith.constant 0 : index
    %c0_6 = arith.constant 0 : index
    %5 = vector.load %arg8[%c0_4, %c0_5, %c0_6] : memref<1x32x256xf32, #tpu.memory_space<vmem>>, vector<1x32x256xf32>
    %6 = vector.shape_cast %5 : vector<1x32x256xf32> to vector<32x256xf32>
    %7 = vector.shape_cast %4 : vector<32x256xf32> to vector<1x32x256xf32>
    tpu.vector_store %arg8[%c0_4, %c0_5, %c0_6], %7 {strides = array<i32>} : memref<1x32x256xf32, #tpu.memory_space<vmem>>, vector<1x32x256xf32>,
    %cst_7 = arith.constant 0.000000e+00 : f32
    %8 = vector.broadcast %cst_7 : f32 to vector<64x256xf32>
    %c0_8 = arith.constant 0 : index
    %c0_9 = arith.constant 0 : index
    %c0_10 = arith.constant 0 : index
    %9 = vector.load %arg3[%c0_8, %c0_9, %c0_10] : memref<9x64x32xf32, #tpu.memory_space<vmem>>, vector<1x64x32xf32>
    %10 = vector.shape_cast %9 : vector<1x64x32xf32> to vector<64x32xf32>
    %cst_11 = arith.constant dense<0.000000e+00> : vector<64x16xf32>
    %11 = tpu.matmul %10, %1, %cst_11 {dimension_numbers = #tpu.dot_dimension_numbers<[1], [0], [0], [1], [0, 0, 1, 1], [], []>} : vector<64x32xf32>, vector<32x16xf32>, vector<64x16xf32> -> vector<64x16xf32>
    %c0_12 = arith.constant 0 : index
    %c0_13 = arith.constant 0 : index
    %c0_14 = arith.constant 0 : index
    %12 = vector.load %arg2[%c0_12, %c0_13, %c0_14] : memref<9x16x256xf32, #tpu.memory_space<vmem>>, vector<1x16x256xf32>
    %13 = vector.shape_cast %12 : vector<1x16x256xf32> to vector<16x256xf32>
    %cst_15 = arith.constant dense<0.000000e+00> : vector<64x256xf32>
    %14 = tpu.matmul %11, %13, %cst_15 {dimension_numbers = #tpu.dot_dimension_numbers<[1], [0], [0], [1], [0, 0, 1, 1], [], []>} : vector<64x16xf32>, vector<16x256xf32>, vector<64x256xf32> -> vector<64x256xf32>
    %15 = arith.addf %8, %14 : vector<64x256xf32>
    %c1 = arith.constant 1 : index
    %c0_16 = arith.constant 0 : index
    %c0_17 = arith.constant 0 : index
    %16 = vector.load %arg3[%c1, %c0_16, %c0_17] : memref<9x64x32xf32, #tpu.memory_space<vmem>>, vector<1x64x32xf32>
    %17 = vector.shape_cast %16 : vector<1x64x32xf32> to vector<64x32xf32>
    %cst_18 = arith.constant dense<0.000000e+00> : vector<64x16xf32>
    %18 = tpu.matmul %17, %1, %cst_18 {dimension_numbers = #tpu.dot_dimension_numbers<[1], [0], [0], [1], [0, 0, 1, 1], [], []>} : vector<64x32xf32>, vector<32x16xf32>, vector<64x16xf32> -> vector<64x16xf32>
    %c1_19 = arith.constant 1 : index
    %c0_20 = arith.constant 0 : index
    %c0_21 = arith.constant 0 : index
    %19 = vector.load %arg2[%c1_19, %c0_20, %c0_21] : memref<9x16x256xf32, #tpu.memory_space<vmem>>, vector<1x16x256xf32>
    %20 = vector.shape_cast %19 : vector<1x16x256xf32> to vector<16x256xf32>
    %cst_22 = arith.constant dense<0.000000e+00> : vector<64x256xf32>
    %21 = tpu.matmul %18, %20, %cst_22 {dimension_numbers = #tpu.dot_dimension_numbers<[1], [0], [0], [1], [0, 0, 1, 1], [], []>} : vector<64x16xf32>, vector<16x256xf32>, vector<64x256xf32> -> vector<64x256xf32>
    %22 = arith.addf %15, %21 : vector<64x256xf32>
    %c2 = arith.constant 2 : index
    %c0_23 = arith.constant 0 : index
    %c0_24 = arith.constant 0 : index
    %23 = vector.load %arg3[%c2, %c0_23, %c0_24] : memref<9x64x32xf32, #tpu.memory_space<vmem>>, vector<1x64x32xf32>
    %24 = vector.shape_cast %23 : vector<1x64x32xf32> to vector<64x32xf32>
    %cst_25 = arith.constant dense<0.000000e+00> : vector<64x16xf32>
    %25 = tpu.matmul %24, %1, %cst_25 {dimension_numbers = #tpu.dot_dimension_numbers<[1], [0], [0], [1], [0, 0, 1, 1], [], []>} : vector<64x32xf32>, vector<32x16xf32>, vector<64x16xf32> -> vector<64x16xf32>
    %c2_26 = arith.constant 2 : index
    %c0_27 = arith.constant 0 : index
    %c0_28 = arith.constant 0 : index
    %26 = vector.load %arg2[%c2_26, %c0_27, %c0_28] : memref<9x16x256xf32, #tpu.memory_space<vmem>>, vector<1x16x256xf32>
    %27 = vector.shape_cast %26 : vector<1x16x256xf32> to vector<16x256xf32>
    %cst_29 = arith.constant dense<0.000000e+00> : vector<64x256xf32>
    %28 = tpu.matmul %25, %27, %cst_29 {dimension_numbers = #tpu.dot_dimension_numbers<[1], [0], [0], [1], [0, 0, 1, 1], [], []>} : vector<64x16xf32>, vector<16x256xf32>, vector<64x256xf32> -> vector<64x256xf32>
    %29 = arith.addf %22, %28 : vector<64x256xf32>
    %c3 = arith.constant 3 : index
    %c0_30 = arith.constant 0 : index
    %c0_31 = arith.constant 0 : index
    %30 = vector.load %arg3[%c3, %c0_30, %c0_31] : memref<9x64x32xf32, #tpu.memory_space<vmem>>, vector<1x64x32xf32>
    %31 = vector.shape_cast %30 : vector<1x64x32xf32> to vector<64x32xf32>
    %cst_32 = arith.constant dense<0.000000e+00> : vector<64x16xf32>
    %32 = tpu.matmul %31, %1, %cst_32 {dimension_numbers = #tpu.dot_dimension_numbers<[1], [0], [0], [1], [0, 0, 1, 1], [], []>} : vector<64x32xf32>, vector<32x16xf32>, vector<64x16xf32> -> vector<64x16xf32>
    %c3_33 = arith.constant 3 : index
    %c0_34 = arith.constant 0 : index
    %c0_35 = arith.constant 0 : index
    %33 = vector.load %arg2[%c3_33, %c0_34, %c0_35] : memref<9x16x256xf32, #tpu.memory_space<vmem>>, vector<1x16x256xf32>
    %34 = vector.shape_cast %33 : vector<1x16x256xf32> to vector<16x256xf32>
    %cst_36 = arith.constant dense<0.000000e+00> : vector<64x256xf32>
    %35 = tpu.matmul %32, %34, %cst_36 {dimension_numbers = #tpu.dot_dimension_numbers<[1], [0], [0], [1], [0, 0, 1, 1], [], []>} : vector<64x16xf32>, vector<16x256xf32>, vector<64x256xf32> -> vector<64x256xf32>
    %36 = arith.addf %29, %35 : vector<64x256xf32>
    %c4_37 = arith.constant 4 : index
    %c0_38 = arith.constant 0 : index
    %c0_39 = arith.constant 0 : index
    %37 = vector.load %arg3[%c4_37, %c0_38, %c0_39] : memref<9x64x32xf32, #tpu.memory_space<vmem>>, vector<1x64x32xf32>
    %38 = vector.shape_cast %37 : vector<1x64x32xf32> to vector<64x32xf32>
    %cst_40 = arith.constant dense<0.000000e+00> : vector<64x16xf32>
    %39 = tpu.matmul %38, %1, %cst_40 {dimension_numbers = #tpu.dot_dimension_numbers<[1], [0], [0], [1], [0, 0, 1, 1], [], []>} : vector<64x32xf32>, vector<32x16xf32>, vector<64x16xf32> -> vector<64x16xf32>
    %c4_41 = arith.constant 4 : index
    %c0_42 = arith.constant 0 : index
    %c0_43 = arith.constant 0 : index
    %40 = vector.load %arg2[%c4_41, %c0_42, %c0_43] : memref<9x16x256xf32, #tpu.memory_space<vmem>>, vector<1x16x256xf32>
    %41 = vector.shape_cast %40 : vector<1x16x256xf32> to vector<16x256xf32>
    %cst_44 = arith.constant dense<0.000000e+00> : vector<64x256xf32>
    %42 = tpu.matmul %39, %41, %cst_44 {dimension_numbers = #tpu.dot_dimension_numbers<[1], [0], [0], [1], [0, 0, 1, 1], [], []>} : vector<64x16xf32>, vector<16x256xf32>, vector<64x256xf32> -> vector<64x256xf32>
    %43 = arith.addf %36, %42 : vector<64x256xf32>
    %c5 = arith.constant 5 : index
    %c0_45 = arith.constant 0 : index
    %c0_46 = arith.constant 0 : index
    %44 = vector.load %arg3[%c5, %c0_45, %c0_46] : memref<9x64x32xf32, #tpu.memory_space<vmem>>, vector<1x64x32xf32>
    %45 = vector.shape_cast %44 : vector<1x64x32xf32> to vector<64x32xf32>
    %cst_47 = arith.constant dense<0.000000e+00> : vector<64x16xf32>
    %46 = tpu.matmul %45, %1, %cst_47 {dimension_numbers = #tpu.dot_dimension_numbers<[1], [0], [0], [1], [0, 0, 1, 1], [], []>} : vector<64x32xf32>, vector<32x16xf32>, vector<64x16xf32> -> vector<64x16xf32>
    %c5_48 = arith.constant 5 : index
    %c0_49 = arith.constant 0 : index
    %c0_50 = arith.constant 0 : index
    %47 = vector.load %arg2[%c5_48, %c0_49, %c0_50] : memref<9x16x256xf32, #tpu.memory_space<vmem>>, vector<1x16x256xf32>
    %48 = vector.shape_cast %47 : vector<1x16x256xf32> to vector<16x256xf32>
    %cst_51 = arith.constant dense<0.000000e+00> : vector<64x256xf32>
    %49 = tpu.matmul %46, %48, %cst_51 {dimension_numbers = #tpu.dot_dimension_numbers<[1], [0], [0], [1], [0, 0, 1, 1], [], []>} : vector<64x16xf32>, vector<16x256xf32>, vector<64x256xf32> -> vector<64x256xf32>
    %50 = arith.addf %43, %49 : vector<64x256xf32>
    %c6 = arith.constant 6 : index
    %c0_52 = arith.constant 0 : index
    %c0_53 = arith.constant 0 : index
    %51 = vector.load %arg3[%c6, %c0_52, %c0_53] : memref<9x64x32xf32, #tpu.memory_space<vmem>>, vector<1x64x32xf32>
    %52 = vector.shape_cast %51 : vector<1x64x32xf32> to vector<64x32xf32>
    %cst_54 = arith.constant dense<0.000000e+00> : vector<64x16xf32>
    %53 = tpu.matmul %52, %1, %cst_54 {dimension_numbers = #tpu.dot_dimension_numbers<[1], [0], [0], [1], [0, 0, 1, 1], [], []>} : vector<64x32xf32>, vector<32x16xf32>, vector<64x16xf32> -> vector<64x16xf32>
    %c6_55 = arith.constant 6 : index
    %c0_56 = arith.constant 0 : index
    %c0_57 = arith.constant 0 : index
    %54 = vector.load %arg2[%c6_55, %c0_56, %c0_57] : memref<9x16x256xf32, #tpu.memory_space<vmem>>, vector<1x16x256xf32>
    %55 = vector.shape_cast %54 : vector<1x16x256xf32> to vector<16x256xf32>
    %cst_58 = arith.constant dense<0.000000e+00> : vector<64x256xf32>
    %56 = tpu.matmul %53, %55, %cst_58 {dimension_numbers = #tpu.dot_dimension_numbers<[1], [0], [0], [1], [0, 0, 1, 1], [], []>} : vector<64x16xf32>, vector<16x256xf32>, vector<64x256xf32> -> vector<64x256xf32>
    %57 = arith.addf %50, %56 : vector<64x256xf32>
    %c7 = arith.constant 7 : index
    %c0_59 = arith.constant 0 : index
    %c0_60 = arith.constant 0 : index
    %58 = vector.load %arg3[%c7, %c0_59, %c0_60] : memref<9x64x32xf32, #tpu.memory_space<vmem>>, vector<1x64x32xf32>
    %59 = vector.shape_cast %58 : vector<1x64x32xf32> to vector<64x32xf32>
    %cst_61 = arith.constant dense<0.000000e+00> : vector<64x16xf32>
    %60 = tpu.matmul %59, %1, %cst_61 {dimension_numbers = #tpu.dot_dimension_numbers<[1], [0], [0], [1], [0, 0, 1, 1], [], []>} : vector<64x32xf32>, vector<32x16xf32>, vector<64x16xf32> -> vector<64x16xf32>
    %c7_62 = arith.constant 7 : index
    %c0_63 = arith.constant 0 : index
    %c0_64 = arith.constant 0 : index
    %61 = vector.load %arg2[%c7_62, %c0_63, %c0_64] : memref<9x16x256xf32, #tpu.memory_space<vmem>>, vector<1x16x256xf32>
    %62 = vector.shape_cast %61 : vector<1x16x256xf32> to vector<16x256xf32>
    %cst_65 = arith.constant dense<0.000000e+00> : vector<64x256xf32>
    %63 = tpu.matmul %60, %62, %cst_65 {dimension_numbers = #tpu.dot_dimension_numbers<[1], [0], [0], [1], [0, 0, 1, 1], [], []>} : vector<64x16xf32>, vector<16x256xf32>, vector<64x256xf32> -> vector<64x256xf32>
    %64 = arith.addf %57, %63 : vector<64x256xf32>
    %c8 = arith.constant 8 : index
    %c0_66 = arith.constant 0 : index
    %c0_67 = arith.constant 0 : index
    %65 = vector.load %arg3[%c8, %c0_66, %c0_67] : memref<9x64x32xf32, #tpu.memory_space<vmem>>, vector<1x64x32xf32>
    %66 = vector.shape_cast %65 : vector<1x64x32xf32> to vector<64x32xf32>
    %cst_68 = arith.constant dense<0.000000e+00> : vector<64x16xf32>
    %67 = tpu.matmul %66, %1, %cst_68 {dimension_numbers = #tpu.dot_dimension_numbers<[1], [0], [0], [1], [0, 0, 1, 1], [], []>} : vector<64x32xf32>, vector<32x16xf32>, vector<64x16xf32> -> vector<64x16xf32>
    %c8_69 = arith.constant 8 : index
    %c0_70 = arith.constant 0 : index
    %c0_71 = arith.constant 0 : index
    %68 = vector.load %arg2[%c8_69, %c0_70, %c0_71] : memref<9x16x256xf32, #tpu.memory_space<vmem>>, vector<1x16x256xf32>
    %69 = vector.shape_cast %68 : vector<1x16x256xf32> to vector<16x256xf32>
    %cst_72 = arith.constant dense<0.000000e+00> : vector<64x256xf32>
    %70 = tpu.matmul %67, %69, %cst_72 {dimension_numbers = #tpu.dot_dimension_numbers<[1], [0], [0], [1], [0, 0, 1, 1], [], []>} : vector<64x16xf32>, vector<16x256xf32>, vector<64x256xf32> -> vector<64x256xf32>
    %71 = arith.addf %64, %70 : vector<64x256xf32>
    %c0_73 = arith.constant 0 : index
    %c0_74 = arith.constant 0 : index
    %72 = vector.load %arg4[%c0_73, %c0_74] : memref<64x1xf32, #tpu.memory_space<vmem>>, vector<64x1xf32>
    %73 = vector.broadcast %72 : vector<64x1xf32> to vector<64x256xf32>
    %74 = arith.addf %71, %73 : vector<64x256xf32>
    %cst_75 = arith.constant 0.000000e+00 : f32
    %75 = vector.broadcast %cst_75 : f32 to vector<64x256xf32>
    %76 = arith.maximumf %74, %75 : vector<64x256xf32>
    %c0_76 = arith.constant 0 : index
    %c0_77 = arith.constant 0 : index
    %77 = vector.load %arg5[%c0_76, %c0_77] : memref<16x64xf32, #tpu.memory_space<vmem>>, vector<16x64xf32>
    %cst_78 = arith.constant dense<0.000000e+00> : vector<16x256xf32>
    %78 = tpu.matmul %77, %76, %cst_78 {dimension_numbers = #tpu.dot_dimension_numbers<[1], [0], [0], [1], [0, 0, 1, 1], [], []>} : vector<16x64xf32>, vector<64x256xf32>, vector<16x256xf32> -> vector<16x256xf32>
    %c0_79 = arith.constant 0 : index
    %c0_80 = arith.constant 0 : index
    %79 = vector.load %arg6[%c0_79, %c0_80] : memref<16x1xf32, #tpu.memory_space<vmem>>, vector<16x1xf32>
    %80 = vector.broadcast %79 : vector<16x1xf32> to vector<16x256xf32>
    %81 = arith.addf %78, %80 : vector<16x256xf32>
    %c0_81 = arith.constant 0 : index
    %c0_82 = arith.constant 0 : index
    %c0_83 = arith.constant 0 : index
    %82 = vector.load %arg9[%c0_81, %c0_82, %c0_83] : memref<1x16x256xf32, #tpu.memory_space<vmem>>, vector<1x16x256xf32>
    %83 = vector.shape_cast %82 : vector<1x16x256xf32> to vector<16x256xf32>
    %84 = vector.shape_cast %81 : vector<16x256xf32> to vector<1x16x256xf32>
    tpu.vector_store %arg9[%c0_81, %c0_82, %c0_83], %84 {strides = array<i32>} : memref<1x16x256xf32, #tpu.memory_space<vmem>>, vector<1x16x256xf32>,
    %cst_84 = arith.constant dense<0xFF800000> : vector<256xf32>
    %85 = vector.multi_reduction <maximumf>, %81, %cst_84 [0] : vector<16x256xf32> to vector<256xf32>
    %86 = vector.shape_cast %85 : vector<256xf32> to vector<1x256xf32>
    %87 = vector.broadcast %86 : vector<1x256xf32> to vector<16x256xf32>
    %88 = arith.subf %81, %87 : vector<16x256xf32>
    %89 = math.exp %88 : vector<16x256xf32>
    %cst_85 = arith.constant dense<0.000000e+00> : vector<256xf32>
    %90 = vector.multi_reduction <add>, %89, %cst_85 [0] : vector<16x256xf32> to vector<256xf32>
    %91 = vector.shape_cast %90 : vector<256xf32> to vector<1x256xf32>
    %92 = tpu.reciprocal %91 {approx = true} : vector<1x256xf32> -> vector<1x256xf32>
    %93 = vector.broadcast %92 : vector<1x256xf32> to vector<16x256xf32>
    %94 = arith.mulf %89, %93 : vector<16x256xf32>
    %c0_86 = arith.constant 0 : index
    %c0_87 = arith.constant 0 : index
    %95 = vector.load %arg7[%c0_86, %c0_87] : memref<1x16xf32, #tpu.memory_space<vmem>>, vector<1x16xf32>
    %cst_88 = arith.constant dense<0.000000e+00> : vector<1x256xf32>
    %96 = tpu.matmul %95, %94, %cst_88 {dimension_numbers = #tpu.dot_dimension_numbers<[1], [0], [0], [1], [0, 0, 1, 1], [], []>} : vector<1x16xf32>, vector<16x256xf32>, vector<1x256xf32> -> vector<1x256xf32>
    %c0_89 = arith.constant 0 : index
    %c0_90 = arith.constant 0 : index
    %c0_91 = arith.constant 0 : index
    %97 = vector.load %arg10[%c0_89, %c0_90, %c0_91] : memref<1x1x256xf32, #tpu.memory_space<vmem>>, vector<1x1x256xf32>
    %98 = vector.shape_cast %97 : vector<1x1x256xf32> to vector<1x256xf32>
    %99 = vector.shape_cast %96 : vector<1x256xf32> to vector<1x1x256xf32>
    tpu.vector_store %arg10[%c0_89, %c0_90, %c0_91], %99 {strides = array<i32>} : memref<1x1x256xf32, #tpu.memory_space<vmem>>, vector<1x1x256xf32>,
    return
  }
  func.func @transform_0(%arg0: i32) -> (i32, i32, i32) {
    %c0_i32 = arith.constant 0 : i32
    %c0_i32_0 = arith.constant 0 : i32
    %c0_i32_1 = arith.constant 0 : i32
    return %arg0, %c0_i32, %c0_i32_0 : i32, i32, i32
  }
  func.func @transform_1(%arg0: i32) -> (i32, i32, i32) {
    %c0_i32 = arith.constant 0 : i32
    %c0_i32_0 = arith.constant 0 : i32
    %c0_i32_1 = arith.constant 0 : i32
    %c0_i32_2 = arith.constant 0 : i32
    return %c0_i32, %c0_i32_0, %c0_i32_1 : i32, i32, i32
  }
  func.func @transform_2(%arg0: i32) -> (i32, i32, i32) {
    %c0_i32 = arith.constant 0 : i32
    %c0_i32_0 = arith.constant 0 : i32
    %c0_i32_1 = arith.constant 0 : i32
    %c0_i32_2 = arith.constant 0 : i32
    return %c0_i32, %c0_i32_0, %c0_i32_1 : i32, i32, i32
  }
  func.func @transform_3(%arg0: i32) -> (i32, i32) {
    %c0_i32 = arith.constant 0 : i32
    %c0_i32_0 = arith.constant 0 : i32
    %c0_i32_1 = arith.constant 0 : i32
    return %c0_i32, %c0_i32_0 : i32, i32
  }
  func.func @transform_4(%arg0: i32) -> (i32, i32) {
    %c0_i32 = arith.constant 0 : i32
    %c0_i32_0 = arith.constant 0 : i32
    %c0_i32_1 = arith.constant 0 : i32
    return %c0_i32, %c0_i32_0 : i32, i32
  }
  func.func @transform_5(%arg0: i32) -> (i32, i32) {
    %c0_i32 = arith.constant 0 : i32
    %c0_i32_0 = arith.constant 0 : i32
    %c0_i32_1 = arith.constant 0 : i32
    return %c0_i32, %c0_i32_0 : i32, i32
  }
  func.func @transform_6(%arg0: i32) -> (i32, i32) {
    %c0_i32 = arith.constant 0 : i32
    %c0_i32_0 = arith.constant 0 : i32
    %c0_i32_1 = arith.constant 0 : i32
    return %c0_i32, %c0_i32_0 : i32, i32
  }
  func.func @transform_7(%arg0: i32) -> (i32, i32, i32) {
    %c0_i32 = arith.constant 0 : i32
    %c0_i32_0 = arith.constant 0 : i32
    %c0_i32_1 = arith.constant 0 : i32
    return %arg0, %c0_i32, %c0_i32_0 : i32, i32, i32
  }
  func.func @transform_8(%arg0: i32) -> (i32, i32, i32) {
    %c0_i32 = arith.constant 0 : i32
    %c0_i32_0 = arith.constant 0 : i32
    %c0_i32_1 = arith.constant 0 : i32
    return %arg0, %c0_i32, %c0_i32_0 : i32, i32, i32
  }
  func.func @transform_9(%arg0: i32) -> (i32, i32, i32) {
    %c0_i32 = arith.constant 0 : i32
    %c0_i32_0 = arith.constant 0 : i32
    %c0_i32_1 = arith.constant 0 : i32
    return %arg0, %c0_i32, %c0_i32_0 : i32, i32, i32
  }
}

</mosaic_0001>

<bundles_post_ra>
// kernel: foundation_backbone_forward.3
= control target key start
LH: loop header
LB: loop body
LE: loop exit
PB: predicated region body
PF: predicated region fallthrough
CT: control target
= control target key end

     0   :  { %9 = vsyncpa [#allocation3], 0  ;;  %s2151_s0 = inlined_call_operand.vmem [shape: f32[2,3,576], index: 0, kind: input, shape index: {}]   ;;  %s2152_s1 = inlined_call_operand.hbm [shape: f32[576,1024], index: 1, kind: input, shape index: {}]   ;;  %s2153_s2 = inlined_call_operand.hbm [shape: f32[3,1], index: 2, kind: input, shape index: {}]   ;;  %s2154_s3 = inlined_call_operand.hbm [shape: f32[3,1], index: 3, kind: input, shape index: {}]   ;;  %s2155_s4 = inlined_call_operand.vmem [shape: f32[2,3,1024], index: 4, kind: output, shape index: {}]  }
   0x1   :  { %10 = vsyncpa [#allocation5], 0  ;;  %s1993_s15 = smov 0  }
   0x2 LB: > { %s162_s18 = sshll.u32 %s2153_s2, 4  ;;  %s2002_s19 = sadd.s32 4294967295, %s1960_s15   ;;  %s1960_s15 = sphi %s1993_s15, %s16_s15   ;;  %s163_s18 = int_to_ptr.hbm [resolvable:$true] %s162_s18 }
   0x3   : > { %p1784_p0 = scmp.ge.s32.totalorder %s1960_s15, 1  ;;  %p136_p1 = scmp.lt.s32.totalorder %s1960_s15, 3 }
   0x4   : > { %p1830_p2 = scmp.eq.s32.totalorder %s2002_s19, 0  ;;  %s1962_s21 = smov [#allocation4]  }
   0x5   : > { %p2007_p3 = pnand %p1784_p0, %p136_p1  ;;  %s164_s22 = sshll.u32 %s1962_s21, 4  ;;  %s165_s22 = int_to_ptr.vmem [resolvable:$true] %s164_s22 }
   0x6   : > { %s147_s25 = sshll.u32 %s2152_s1, 4  ;;  %s1963_s26 = smov [#allocation2]   ;;  %s148_s25 = int_to_ptr.hbm [resolvable:$true] %s147_s25 }
   0x7   : > { %p1820_p4 = pneg %p2007_p3  ;;  %s149_s27 = sshll.u32 %s1963_s26, 4  ;;  %s150_s27 = int_to_ptr.vmem [resolvable:$true] %s149_s27 }
   0x8   : > { %s174_s30 = sshll.u32 %s2154_s3, 4  ;;  %s1964_s5 = smov 1024   ;;  %s175_s30 = int_to_ptr.hbm [resolvable:$true] %s174_s30 }
   0x9   : > { %p1821_p5 = pnand %p1830_p2, %p1820_p4  ;;  %s1965_s6 = smov 64  }
   0xa   : > { %s1966_s7 = smov [#allocation6]   ;;  %197 = sbr.rel (%p2007_p3) target bundleno = 502 (0x1f6), region = 36 }
   0xb   : > { %1826 = dma.hbm_to_vmem [thread:$0]  (!%p1821_p5), %s163_s18, 64, %s165_s22, [#allocation5]  }
   0xc   : > { %1823 = dma.hbm_to_vmem [thread:$0]  (!%p1821_p5), %s148_s25, 73728, %s150_s27, [#allocation3], %s1964_s5, %s1964_s5, %s1965_s6  }
   0xd   : > { %s176_s8 = sshll.u32 %s1966_s7, 4  ;;  %s177_s8 = int_to_ptr.vmem [resolvable:$true] %s176_s8 }
   0xe   : > { %1829 = dma.hbm_to_vmem [thread:$0]  (!%p1821_p5), %s175_s30, 64, %s177_s8, [#allocation5]  }
   0xf   : > { %1951 = dma.done.wait (%p1830_p2), [#allocation3], 73728  }
  0x10   : > { %1953 = vsyncadd (%p1830_p2), [#allocation3], 4294893568 }
  0x11   : > { %1955 = dma.done.wait (%p1830_p2), [#allocation5], 128  }
  0x12   : > { %1957 = vsyncadd (%p1830_p2), [#allocation5], 4294967168  ;;  %v367_v0 = vld [vmem:[#allocation2 + $0x3c0] sm:$0xff]  ;;  %p234_p6 = scmp.lt.s32.totalorder %s2002_s19, 1  ;;  %v496_v63 = vld [vmem:[#allocation2 + $0x7c8] sm:$0xff]  ;;  %vm840_vm0 = vcmask 523264  }
  0x13   : > { %v623_v1 = vld [vmem:[#allocation2 + $0xbc0] sm:$0xff]  ;;  %843 = vmatpush.msra.mxu0 %v367_v0  ;;  %vm1683_vm1 = vcmask 1043456  }
  0x14   : > { %v359_v2 = vld [vmem:[#allocation2 + $0x380] sm:$0xff]  ;;  %883 = vmatpush.msra.mxu2 %v623_v1  ;;  %s2158_s19 = smov (!%p234_p6, %s2002_s19), 1 }
  0x15   : > { %v495_v3 = vld [vmem:[#allocation2 + $0x7c0] sm:$0xff]  ;;  %844 = vmatpush.msra.mxu0 %v359_v2  ;;  %s1807_s9 = smul.u32 20, %s2158_s19  ;;  %s1806_s13 = sshll.u32 %s2158_s19, 5 }
  0x16   : > { %v615_v4 = vld [vmem:[#allocation2 + $0xb80] sm:$0xff]  ;;  %863 = vmatpush.msra.mxu1 %v495_v3  ;;  %s2107_s17 = scalar_lea.vmem %s2155_s4, %s1806_s13 }
  0x17   : > { %v751_v5 = vld [vmem:[#allocation2 + $0xfc0] sm:$0xff]  ;;  %884 = vmatpush.msra.mxu2 %v615_v4  ;;  %s2041_s12 = scalar_lea.vmem %s2151_s0, %s1807_s9  ;;  %v368_v4 = vld [vmem:[#allocation2 + $0x3c8] sm:$0xff] }
  0x18   : > { %903 = vmatpush.msra.mxu3 %v751_v5  ;;  %v351_v6 = vld [vmem:[#allocation2 + $0x340] sm:$0xff]  ;;  %v244_v5 = vld [vmem:[%s2041_s12] sm:$0x77] }
  0x19   : > { %v487_v7 = vld [vmem:[#allocation2 + $0x780] sm:$0xff]  ;;  %845 = vmatpush.msra.mxu0 %v351_v6  ;;  %v488_v6 = vld [vmem:[#allocation2 + $0x788] sm:$0xff]  ;;  %826 = vst [vmem:[#allocation1] ss:$2 sm:$0xff] %v244_v5 }
  0x1a   : > { %v607_v8 = vld [vmem:[#allocation2 + $0xb40] sm:$0xff]  ;;  %864 = vmatpush.msra.mxu1 %v487_v7  ;;  %v624_v7 = vld [vmem:[#allocation2 + $0xbc8] sm:$0xff] }
  0x1b   : > { %v743_v9 = vld [vmem:[#allocation2 + $0xf80] sm:$0xff]  ;;  %885 = vmatpush.msra.mxu2 %v607_v8  ;;  %v376_v5 = vld [vmem:[#allocation2 + $0x408] sm:$0xff] }
  0x1c   : > { %v479_v10 = vld [vmem:[#allocation2 + $0x740] sm:$0xff]  ;;  %904 = vmatpush.msra.mxu3 %v743_v9  ;;  %v360_v9 = vld [vmem:[#allocation2 + $0x388] sm:$0xff] }
  0x1d   : > { %v343_v11 = vld [vmem:[#allocation2 + $0x300] sm:$0xff]  ;;  %865 = vmatpush.msra.mxu1 %v479_v10  ;;  %v480_v10 = vld [vmem:[#allocation2 + $0x748] sm:$0xff] }
  0x1e   : > { %v599_v12 = vld [vmem:[#allocation2 + $0xb00] sm:$0xff]  ;;  %846 = vmatpush.msra.mxu0 %v343_v11  ;;  %v616_v11 = vld [vmem:[#allocation2 + $0xb88] sm:$0xff] }
  0x1f   : > { %v735_v13 = vld [vmem:[#allocation2 + $0xf40] sm:$0xff]  ;;  %886 = vmatpush.msra.mxu2 %v599_v12 }
  0x20   : > { %v471_v14 = vld [vmem:[#allocation2 + $0x700] sm:$0xff]  ;;  %905 = vmatpush.msra.mxu3 %v735_v13  ;;  %v352_v13 = vld [vmem:[#allocation2 + $0x348] sm:$0xff] }
  0x21   : > { %v727_v15 = vld [vmem:[#allocation2 + $0xf00] sm:$0xff]  ;;  %866 = vmatpush.msra.mxu1 %v471_v14  ;;  %v472_v14 = vld [vmem:[#allocation2 + $0x708] sm:$0xff] }
  0x22   : > { %v335_v16 = vld [vmem:[#allocation2 + $0x2c0] sm:$0xff]  ;;  %906 = vmatpush.msra.mxu3 %v727_v15  ;;  %v608_v15 = vld [vmem:[#allocation2 + $0xb48] sm:$0xff] }
  0x23   : > { %v591_v17 = vld [vmem:[#allocation2 + $0xac0] sm:$0xff]  ;;  %847 = vmatpush.msra.mxu0 %v335_v16 }
  0x24   : > { %v463_v18 = vld [vmem:[#allocation2 + $0x6c0] sm:$0xff]  ;;  %887 = vmatpush.msra.mxu2 %v591_v17  ;;  %v344_v17 = vld [vmem:[#allocation2 + $0x308] sm:$0xff] }
  0x25   : > { %v719_v19 = vld [vmem:[#allocation2 + $0xec0] sm:$0xff]  ;;  %867 = vmatpush.msra.mxu1 %v463_v18  ;;  %v246_v18 = vld [vmem:[%s2041_s12 + $0x10] sm:$0x7] }
  0x26   : > { %v327_v20 = vld [vmem:[#allocation2 + $0x280] sm:$0xff]  ;;  %907 = vmatpush.msra.mxu3 %v719_v19  ;;  %v464_v19 = vld [vmem:[#allocation2 + $0x6c8] sm:$0xff]  ;;  %830 = vst [vmem:[#allocation1 + $0x20] ss:$2 sm:$0xff] %v246_v18  ;;  %v353_v18 = vld [vmem:[#allocation2 + $0x350] sm:$0xff] }
  0x27   : > { %v583_v21 = vld [vmem:[#allocation2 + $0xa80] sm:$0xff]  ;;  %848 = vmatpush.msra.mxu0 %v327_v20  ;;  %v600_v20 = vld [vmem:[#allocation2 + $0xb08] sm:$0xff] }
  0x28   : > { %v455_v22 = vld [vmem:[#allocation2 + $0x680] sm:$0xff]  ;;  %888 = vmatpush.msra.mxu2 %v583_v21 }
  0x29   : > { %v711_v23 = vld [vmem:[#allocation2 + $0xe80] sm:$0xff]  ;;  %868 = vmatpush.msra.mxu1 %v455_v22  ;;  %v336_v22 = vld [vmem:[#allocation2 + $0x2c8] sm:$0xff] }
  0x2a   : > { %v319_v24 = vld [vmem:[#allocation2 + $0x240] sm:$0xff]  ;;  %908 = vmatpush.msra.mxu3 %v711_v23  ;;  %v456_v23 = vld [vmem:[#allocation2 + $0x688] sm:$0xff] }
  0x2b   : > { %v575_v25 = vld [vmem:[#allocation2 + $0xa40] sm:$0xff]  ;;  %849 = vmatpush.msra.mxu0 %v319_v24  ;;  %v592_v24 = vld [vmem:[#allocation2 + $0xac8] sm:$0xff] }
  0x2c   : > { %v447_v26 = vld [vmem:[#allocation2 + $0x640] sm:$0xff]  ;;  %889 = vmatpush.msra.mxu2 %v575_v25 }
  0x2d   : > { %v703_v27 = vld [vmem:[#allocation2 + $0xe40] sm:$0xff]  ;;  %869 = vmatpush.msra.mxu1 %v447_v26  ;;  %v328_v26 = vld [vmem:[#allocation2 + $0x288] sm:$0xff] }
  0x2e   : > { %v311_v28 = vld [vmem:[#allocation2 + $0x200] sm:$0xff]  ;;  %909 = vmatpush.msra.mxu3 %v703_v27  ;;  %v448_v27 = vld [vmem:[#allocation2 + $0x648] sm:$0xff] }
  0x2f   : > { %v567_v29 = vld [vmem:[#allocation2 + $0xa00] sm:$0xff]  ;;  %850 = vmatpush.msra.mxu0 %v311_v28  ;;  %v584_v28 = vld [vmem:[#allocation2 + $0xa88] sm:$0xff] }
  0x30   : > { %v439_v30 = vld [vmem:[#allocation2 + $0x600] sm:$0xff]  ;;  %890 = vmatpush.msra.mxu2 %v567_v29 }
  0x31   : > { %v695_v31 = vld [vmem:[#allocation2 + $0xe00] sm:$0xff]  ;;  %870 = vmatpush.msra.mxu1 %v439_v30 }
  0x32   : > { %v303_v32 = vld [vmem:[#allocation2 + $0x1c0] sm:$0xff]  ;;  %910 = vmatpush.msra.mxu3 %v695_v31  ;;  %v320_v31 = vld [vmem:[#allocation2 + $0x248] sm:$0xff] }
  0x33   : > { %v559_v33 = vld [vmem:[#allocation2 + $0x9c0] sm:$0xff]  ;;  %851 = vmatpush.msra.mxu0 %v303_v32  ;;  %v440_v32 = vld [vmem:[#allocation2 + $0x608] sm:$0xff] }
  0x34   : > { %v431_v34 = vld [vmem:[#allocation2 + $0x5c0] sm:$0xff]  ;;  %891 = vmatpush.msra.mxu2 %v559_v33  ;;  %v576_v33 = vld [vmem:[#allocation2 + $0xa48] sm:$0xff] }
  0x35   : > { %v687_v35 = vld [vmem:[#allocation2 + $0xdc0] sm:$0xff]  ;;  %871 = vmatpush.msra.mxu1 %v431_v34  ;;  %v2048_v34 = vld.sshfl [vmem:[#allocation1] sm:$0xff pattern:$0x75316420] }
  0x36   : > { %v295_v36 = vld [vmem:[#allocation2 + $0x180] sm:$0xff]  ;;  %911 = vmatpush.msra.mxu3 %v687_v35 }
  0x37   : > { %v551_v37 = vld [vmem:[#allocation2 + $0x980] sm:$0xff]  ;;  %852 = vmatpush.msra.mxu0 %v295_v36  ;;  %v752_v36 = vld [vmem:[#allocation2 + $0xfc8] sm:$0xff] }
  0x38   : > { %v423_v38 = vld [vmem:[#allocation2 + $0x580] sm:$0xff]  ;;  %892 = vmatpush.msra.mxu2 %v551_v37  ;;  %v312_v37 = vld [vmem:[#allocation2 + $0x208] sm:$0xff] }
  0x39   : > { %v679_v39 = vld [vmem:[#allocation2 + $0xd80] sm:$0xff]  ;;  %872 = vmatpush.msra.mxu1 %v423_v38  ;;  %v432_v38 = vld [vmem:[#allocation2 + $0x5c8] sm:$0xff] }
  0x3a   : > { %v287_v40 = vld [vmem:[#allocation2 + $0x140] sm:$0xff]  ;;  %912 = vmatpush.msra.mxu3 %v679_v39  ;;  %v568_v39 = vld [vmem:[#allocation2 + $0xa08] sm:$0xff] }
  0x3b   : > { %v543_v41 = vld [vmem:[#allocation2 + $0x940] sm:$0xff]  ;;  %853 = vmatpush.msra.mxu0 %v287_v40 }
  0x3c   : > { %v415_v42 = vld [vmem:[#allocation2 + $0x540] sm:$0xff]  ;;  %893 = vmatpush.msra.mxu2 %v543_v41  ;;  %v744_v41 = vld [vmem:[#allocation2 + $0xf88] sm:$0xff] }
  0x3d   : > { %v671_v43 = vld [vmem:[#allocation2 + $0xd40] sm:$0xff]  ;;  %873 = vmatpush.msra.mxu1 %v415_v42  ;;  %v304_v42 = vld [vmem:[#allocation2 + $0x1c8] sm:$0xff] }
  0x3e   : > { %v279_v44 = vld [vmem:[#allocation2 + $0x100] sm:$0xff]  ;;  %913 = vmatpush.msra.mxu3 %v671_v43  ;;  %v424_v43 = vld [vmem:[#allocation2 + $0x588] sm:$0xff] }
  0x3f   : > { %v535_v45 = vld [vmem:[#allocation2 + $0x900] sm:$0xff]  ;;  %854 = vmatpush.msra.mxu0 %v279_v44  ;;  %v560_v44 = vld [vmem:[#allocation2 + $0x9c8] sm:$0xff] }
  0x40   : > { %v407_v46 = vld [vmem:[#allocation2 + $0x500] sm:$0xff]  ;;  %894 = vmatpush.msra.mxu2 %v535_v45  ;;  %v736_v45 = vld [vmem:[#allocation2 + $0xf48] sm:$0xff] }
  0x41   : > { %v663_v47 = vld [vmem:[#allocation2 + $0xd00] sm:$0xff]  ;;  %874 = vmatpush.msra.mxu1 %v407_v46  ;;  %v296_v46 = vld [vmem:[#allocation2 + $0x188] sm:$0xff] }
  0x42   : > { %v271_v48 = vld [vmem:[#allocation2 + $0xc0] sm:$0xff]  ;;  %914 = vmatpush.msra.mxu3 %v663_v47  ;;  %v416_v47 = vld [vmem:[#allocation2 + $0x548] sm:$0xff] }
  0x43   : > { %v527_v49 = vld [vmem:[#allocation2 + $0x8c0] sm:$0xff]  ;;  %855 = vmatpush.msra.mxu0 %v271_v48  ;;  %v552_v48 = vld [vmem:[#allocation2 + $0x988] sm:$0xff] }
  0x44   : > { %v399_v50 = vld [vmem:[#allocation2 + $0x4c0] sm:$0xff]  ;;  %895 = vmatpush.msra.mxu2 %v527_v49  ;;  %v728_v49 = vld [vmem:[#allocation2 + $0xf08] sm:$0xff] }
  0x45   : > { %v655_v51 = vld [vmem:[#allocation2 + $0xcc0] sm:$0xff]  ;;  %875 = vmatpush.msra.mxu1 %v399_v50  ;;  %v288_v50 = vld [vmem:[#allocation2 + $0x148] sm:$0xff] }
  0x46   : > { %v263_v52 = vld [vmem:[#allocation2 + $0x80] sm:$0xff]  ;;  %915 = vmatpush.msra.mxu3 %v655_v51  ;;  %v408_v51 = vld [vmem:[#allocation2 + $0x508] sm:$0xff] }
  0x47   : > { %v519_v53 = vld [vmem:[#allocation2 + $0x880] sm:$0xff]  ;;  %856 = vmatpush.msra.mxu0 %v263_v52  ;;  %v544_v52 = vld [vmem:[#allocation2 + $0x948] sm:$0xff] }
  0x48   : > { %v391_v54 = vld [vmem:[#allocation2 + $0x480] sm:$0xff]  ;;  %896 = vmatpush.msra.mxu2 %v519_v53  ;;  %v2058_v53 = vld.sshfl [vmem:[#allocation1 + $0x20] sm:$0xff pattern:$0x75316420] }
  0x49   : > { %v647_v55 = vld [vmem:[#allocation2 + $0xc80] sm:$0xff]  ;;  %876 = vmatpush.msra.mxu1 %v391_v54  ;;  %v280_v54 = vld [vmem:[#allocation2 + $0x108] sm:$0xff] }
  0x4a   : > { %v255_v56 = vld [vmem:[#allocation2 + $0x40] sm:$0xff]  ;;  %916 = vmatpush.msra.mxu3 %v647_v55  ;;  %v720_v55 = vld [vmem:[#allocation2 + $0xec8] sm:$0xff] }
  0x4b   : > { %v511_v57 = vld [vmem:[#allocation2 + $0x840] sm:$0xff]  ;;  %857 = vmatpush.msra.mxu0 %v255_v56  ;;  %v400_v56 = vld [vmem:[#allocation2 + $0x4c8] sm:$0xff] }
  0x4c   : > { %v383_v58 = vld [vmem:[#allocation2 + $0x440] sm:$0xff]  ;;  %897 = vmatpush.msra.mxu2 %v511_v57  ;;  %v536_v57 = vld [vmem:[#allocation2 + $0x908] sm:$0xff] }
  0x4d   : > { %v639_v59 = vld [vmem:[#allocation2 + $0xc40] sm:$0xff]  ;;  %877 = vmatpush.msra.mxu1 %v383_v58  ;;  %v272_v58 = vld [vmem:[#allocation2 + $0xc8] sm:$0xff] }
  0x4e   : > { %v247_v60 = vld [vmem:[#allocation2] sm:$0xff]  ;;  %917 = vmatpush.msra.mxu3 %v639_v59  ;;  %v712_v59 = vld [vmem:[#allocation2 + $0xe88] sm:$0xff] }
  0x4f   : > { %v503_v61 = vld [vmem:[#allocation2 + $0x800] sm:$0xff]  ;;  %858 = vmatpush.msra.mxu0 %v247_v60  ;;  %v392_v60 = vld [vmem:[#allocation2 + $0x488] sm:$0xff] }
  0x50   : > { %v815_v62 = vld [vmem:[#allocation2 + $0x11c0] sm:$0xff]  ;;  %898 = vmatpush.msra.mxu2 %v503_v61  ;;  %859 = vmatmul.f32.vlgmr.msra.gmra.mxu0 %v2048_v34  ;;  %v528_v61 = vld [vmem:[#allocation2 + $0x8c8] sm:$0xff] }
  0x51   : > { %v375_v0 = vld [vmem:[#allocation2 + $0x400] sm:$0xff]  ;;  %931 = vmatpush.msrb.mxu0 %v815_v62  ;;  %v264_v62 = vld [vmem:[#allocation2 + $0x88] sm:$0xff] }
  0x52   : > { %v631_v1 = vld [vmem:[#allocation2 + $0xc00] sm:$0xff]  ;;  %963 = vmatpush.msrb.mxu2 %v496_v63  ;;  %878 = vmatpush.msra.mxu1 %v375_v0  ;;  %v704_v63 = vld [vmem:[#allocation2 + $0xe48] sm:$0xff] }
  0x53   : > { %v245_v2 = vld [vmem:[%s2041_s12 + $0x8] sm:$0x77]  ;;  %918 = vmatpush.msra.mxu3 %v631_v1  ;;  %v384_v0 = vld [vmem:[#allocation2 + $0x448] sm:$0xff] }
  0x54   : > { %v807_v3 = vld [vmem:[#allocation2 + $0x1180] sm:$0xff]  ;;  %828 = vst [vmem:[#allocation1 + $0x10] ss:$2 sm:$0xff] %v245_v2  ;;  %943 = vmatpush.msrb.mxu1 %v368_v4  ;;  %964 = vmatpush.msrb.mxu2 %v488_v6  ;;  %v520_v1 = vld [vmem:[#allocation2 + $0x888] sm:$0xff]  ;;  %v1967_v6 = vmov 0  }
  0x55   : > { %v799_v8 = vld [vmem:[#allocation2 + $0x1140] sm:$0xff]  ;;  %932 = vmatpush.msrb.mxu0 %v807_v3  ;;  %983 = vmatpush.msrb.mxu3 %v624_v7  ;;  %v696_v2 = vld [vmem:[#allocation2 + $0xe08] sm:$0xff] }
  0x56   : > { %v791_v12 = vld [vmem:[#allocation2 + $0x1100] sm:$0xff]  ;;  %944 = vmatpush.msrb.mxu1 %v360_v9  ;;  %965 = vmatpush.msrb.mxu2 %v480_v10  ;;  %v256_v4 = vld [vmem:[#allocation2 + $0x48] sm:$0xff]  ;;  %v369_v9 = vld [vmem:[#allocation2 + $0x3d0] sm:$0xff] }
  0x57   : > { %933 = vmatpush.msrb.mxu0 %v799_v8  ;;  %984 = vmatpush.msrb.mxu3 %v616_v11  ;;  %v783_v16 = vld [vmem:[#allocation2 + $0x10c0] sm:$0xff]  ;;  %v512_v7 = vld [vmem:[#allocation2 + $0x848] sm:$0xff] }
  0x58   : > { %945 = vmatpush.msrb.mxu1 %v352_v13  ;;  %966 = vmatpush.msrb.mxu2 %v472_v14  ;;  %v775_v21 = vld [vmem:[#allocation2 + $0x1080] sm:$0xff]  ;;  %v688_v8 = vld [vmem:[#allocation2 + $0xdc8] sm:$0xff]  ;;  %v361_v14 = vld [vmem:[#allocation2 + $0x390] sm:$0xff] }
  0x59   : > { %934 = vmatpush.msrb.mxu0 %v791_v12  ;;  %985 = vmatpush.msrb.mxu3 %v608_v15  ;;  %v767_v25 = vld [vmem:[#allocation2 + $0x1040] sm:$0xff]  ;;  %v248_v10 = vld [vmem:[#allocation2 + $0x8] sm:$0xff]  ;;  %v497_v15 = vld [vmem:[#allocation2 + $0x7d0] sm:$0xff] }
  0x5a   : > { %946 = vmatpush.msrb.mxu1 %v344_v17  ;;  %967 = vmatpush.msrb.mxu2 %v464_v19  ;;  %v759_v30 = vld [vmem:[#allocation2 + $0x1000] sm:$0xff]  ;;  %v504_v11 = vld [vmem:[#allocation2 + $0x808] sm:$0xff]  ;;  %v489_v19 = vld [vmem:[#allocation2 + $0x790] sm:$0xff] }
  0x5b   : > { %935 = vmatpush.msrb.mxu0 %v783_v16  ;;  %986 = vmatpush.msrb.mxu3 %v600_v20  ;;  %v2046_v29 = vld.sshfl [vmem:[#allocation1 + $0x10] sm:$0xff pattern:$0x75316420]  ;;  %v2051_v35 = vld.sshfl [vmem:[#allocation1 + $0x18] sm:$0xff pattern:$0x75316420] }
  0x5c   : > { %947 = vmatpush.msrb.mxu1 %v336_v22  ;;  %968 = vmatpush.msrb.mxu2 %v456_v23  ;;  %v2054_v40 = vld.sshfl [vmem:[#allocation1 + $0x8] sm:$0xff pattern:$0x75316420]  ;;  %v680_v12 = vld [vmem:[#allocation2 + $0xd88] sm:$0xff]  ;;  %v345_v22 = vld [vmem:[#allocation2 + $0x310] sm:$0xff] }
  0x5d   : > { %936 = vmatpush.msrb.mxu0 %v775_v21  ;;  %987 = vmatpush.msrb.mxu3 %v592_v24  ;;  %v1643_v3 = vld [vmem:[#allocation4] sm:$0x7]  ;;  %v816_v13 = vld [vmem:[#allocation2 + $0x11c8] sm:$0xff]  ;;  %v481_v23 = vld [vmem:[#allocation2 + $0x750] sm:$0xff] }
  0x5e   : > { %948 = vmatpush.msrb.mxu1 %v328_v26  ;;  %969 = vmatpush.msrb.mxu2 %v448_v27  ;;  %v672_v16 = vld [vmem:[#allocation2 + $0xd48] sm:$0xff]  ;;  %v1657_v24 = vld [vmem:[#allocation6] sm:$0x7]  ;;  %v337_v27 = vld [vmem:[#allocation2 + $0x2d0] sm:$0xff] }
  0x5f   : > { %937 = vmatpush.msrb.mxu0 %v767_v25  ;;  %988 = vmatpush.msrb.mxu3 %v584_v28  ;;  %v808_v17 = vld [vmem:[#allocation2 + $0x1188] sm:$0xff]  ;;  %v473_v28 = vld [vmem:[#allocation2 + $0x710] sm:$0xff] }
  0x60   : > { %899 = vmatmul.f32.vlgmr.msra.gmra.mxu2 %v2046_v29  ;;  %949 = vmatpush.msrb.mxu1 %v320_v31  ;;  %v664_v20 = vld [vmem:[#allocation2 + $0xd08] sm:$0xff] }
  0x61   : > { %938 = vmatpush.msrb.mxu0 %v759_v30  ;;  %970 = vmatpush.msrb.mxu2 %v440_v32  ;;  %v800_v21 = vld [vmem:[#allocation2 + $0x1148] sm:$0xff]  ;;  %v329_v32 = vld [vmem:[#allocation2 + $0x290] sm:$0xff] }
  0x62   : > { %989 = vmatpush.msrb.mxu3 %v576_v33  ;;  %950 = vmatpush.msrb.mxu1 %v312_v37  ;;  %v656_v25 = vld [vmem:[#allocation2 + $0xcc8] sm:$0xff]  ;;  %v465_v33 = vld [vmem:[#allocation2 + $0x6d0] sm:$0xff] }
  0x63   : > { %919 = vmatmul.f32.vlgmr.msra.gmra.mxu3 %v2051_v35  ;;  %1003 = vmatpush.msra.mxu0 %v752_v36  ;;  %v792_v26 = vld [vmem:[#allocation2 + $0x1108] sm:$0xff] }
  0x64   : > { %971 = vmatpush.msrb.mxu2 %v432_v38  ;;  %990 = vmatpush.msrb.mxu3 %v568_v39  ;;  %v648_v30 = vld [vmem:[#allocation2 + $0xc88] sm:$0xff]  ;;  %v321_v38 = vld [vmem:[#allocation2 + $0x250] sm:$0xff] }
  0x65   : > { %879 = vmatmul.f32.vlgmr.msra.gmra.mxu1 %v2054_v40  ;;  %1004 = vmatpush.msra.mxu0 %v744_v41  ;;  %v784_v31 = vld [vmem:[#allocation2 + $0x10c8] sm:$0xff]  ;;  %v457_v39 = vld [vmem:[#allocation2 + $0x690] sm:$0xff] }
  0x66   : > { %951 = vmatpush.msrb.mxu1 %v304_v42  ;;  %972 = vmatpush.msrb.mxu2 %v424_v43  ;;  %v640_v36 = vld [vmem:[#allocation2 + $0xc48] sm:$0xff]  ;;  %v313_v43 = vld [vmem:[#allocation2 + $0x210] sm:$0xff] }
  0x67   : > { %991 = vmatpush.msrb.mxu3 %v560_v44  ;;  %1005 = vmatpush.msra.mxu0 %v736_v45  ;;  %v776_v37 = vld [vmem:[#allocation2 + $0x1088] sm:$0xff]  ;;  %v449_v44 = vld [vmem:[#allocation2 + $0x650] sm:$0xff] }
  0x68   : > { %952 = vmatpush.msrb.mxu1 %v296_v46  ;;  %973 = vmatpush.msrb.mxu2 %v416_v47  ;;  %v632_v41 = vld [vmem:[#allocation2 + $0xc08] sm:$0xff]  ;;  %v625_v45 = vld [vmem:[#allocation2 + $0xbd0] sm:$0xff] }
  0x69   : > { %992 = vmatpush.msrb.mxu3 %v552_v48  ;;  %1006 = vmatpush.msra.mxu0 %v728_v49  ;;  %v768_v42 = vld [vmem:[#allocation2 + $0x1048] sm:$0xff]  ;;  %v305_v47 = vld [vmem:[#allocation2 + $0x1d0] sm:$0xff] }
  0x6a   : > { %953 = vmatpush.msrb.mxu1 %v288_v50  ;;  %974 = vmatpush.msrb.mxu2 %v408_v51  ;;  %v760_v46 = vld [vmem:[#allocation2 + $0x1008] sm:$0xff]  ;;  %v441_v48 = vld [vmem:[#allocation2 + $0x610] sm:$0xff] }
  0x6b   : > { %993 = vmatpush.msrb.mxu3 %v544_v52  ;;  %1796 = vmatmul.msk.f32.vlgmr.msrb.gmra.mxu0 %vm840_vm0, %v2058_v53  ;;  %v617_v49 = vld [vmem:[#allocation2 + $0xb90] sm:$0xff] }
  0x6c   : > { %954 = vmatpush.msrb.mxu1 %v280_v54  ;;  %1007 = vmatpush.msra.mxu0 %v720_v55  ;;  %v753_v50 = vld [vmem:[#allocation2 + $0xfd0] sm:$0xff] }
  0x6d   : > { %975 = vmatpush.msrb.mxu2 %v400_v56  ;;  %994 = vmatpush.msrb.mxu3 %v536_v57  ;;  %v297_v51 = vld [vmem:[#allocation2 + $0x190] sm:$0xff] }
  0x6e   : > { %955 = vmatpush.msrb.mxu1 %v272_v58  ;;  %1008 = vmatpush.msra.mxu0 %v712_v59  ;;  %v433_v52 = vld [vmem:[#allocation2 + $0x5d0] sm:$0xff] }
  0x6f   : > { %976 = vmatpush.msrb.mxu2 %v392_v60  ;;  %995 = vmatpush.msrb.mxu3 %v528_v61  ;;  %v609_v54 = vld [vmem:[#allocation2 + $0xb50] sm:$0xff] }
  0x70   : > { %956 = vmatpush.msrb.mxu1 %v264_v62  ;;  %1009 = vmatpush.msra.mxu0 %v704_v63  ;;  %v745_v55 = vld [vmem:[#allocation2 + $0xf90] sm:$0xff] }
  0x71   : > { %977 = vmatpush.msrb.mxu2 %v384_v0  ;;  %996 = vmatpush.msrb.mxu3 %v520_v1  ;;  %v289_v56 = vld [vmem:[#allocation2 + $0x150] sm:$0xff] }
  0x72   : > { %1850 = vset.pattern.permute.xlu0 %v1967_v6  ;;  %1010 = vmatpush.msra.mxu0 %v696_v2  ;;  %v425_v57 = vld [vmem:[#allocation2 + $0x590] sm:$0xff] }
  0x73   : > { %1646 = vperm.xlu0 %1850, %v1643_v3   ;;  %957 = vmatpush.msrb.mxu1 %v256_v4  ;;  %v601_v58 = vld [vmem:[#allocation2 + $0xb10] sm:$0xff] }
  0x74   : > { %978 = vmatpush.msrb.mxu2 %v376_v5  ;;  %997 = vmatpush.msrb.mxu3 %v512_v7  ;;  %v737_v59 = vld [vmem:[#allocation2 + $0xf50] sm:$0xff] }
  0x75   : > { %1011 = vmatpush.msra.mxu0 %v688_v8  ;;  %958 = vmatpush.msrb.mxu1 %v248_v10  ;;  %v281_v60 = vld [vmem:[#allocation2 + $0x110] sm:$0xff] }
  0x76   : > { %1043 = vmatpush.msra.mxu2 %v369_v9  ;;  %998 = vmatpush.msrb.mxu3 %v504_v11  ;;  %v417_v61 = vld [vmem:[#allocation2 + $0x550] sm:$0xff] }
  0x77   : > { %1012 = vmatpush.msra.mxu0 %v680_v12  ;;  %1031 = vmatpush.msra.mxu1 %v816_v13  ;;  %v593_v62 = vld [vmem:[#allocation2 + $0xad0] sm:$0xff] }
  0x78   : > { %1044 = vmatpush.msra.mxu2 %v361_v14  ;;  %1063 = vmatpush.msra.mxu3 %v497_v15  ;;  %v729_v63 = vld [vmem:[#allocation2 + $0xf10] sm:$0xff] }
  0x79   : > { %1013 = vmatpush.msra.mxu0 %v672_v16  ;;  %1032 = vmatpush.msra.mxu1 %v808_v17  ;;  %v273_v0 = vld [vmem:[#allocation2 + $0xd0] sm:$0xff] }
  0x7a   : > { %1045 = vmatpush.msra.mxu2 %v353_v18  ;;  %1064 = vmatpush.msra.mxu3 %v489_v19  ;;  %v409_v1 = vld [vmem:[#allocation2 + $0x510] sm:$0xff] }
  0x7b   : > { %979 = vmatmul.f32.vlgmr.msrb.gmra.mxu2 %v2054_v40  ;;  %1014 = vmatpush.msra.mxu0 %v664_v20  ;;  %v585_v2 = vld [vmem:[#allocation2 + $0xa90] sm:$0xff] }
  0x7c   : > { %1033 = vmatpush.msra.mxu1 %v800_v21  ;;  %1046 = vmatpush.msra.mxu2 %v345_v22  ;;  %v721_v3 = vld [vmem:[#allocation2 + $0xed0] sm:$0xff]  ;;  %v370_v21 = vld [vmem:[#allocation2 + $0x3d8] sm:$0xff] }
  0x7d   : > { %1065 = vmatpush.msra.mxu3 %v481_v23  ;;  %1660 = vperm.xlu0 %1850, %v1657_v24   ;;  %v265_v4 = vld [vmem:[#allocation2 + $0x90] sm:$0xff] }
  0x7e   : > { %999 = vmatmul.f32.vlgmr.msrb.gmra.mxu3 %v2046_v29  ;;  %1015 = vmatpush.msra.mxu0 %v656_v25  ;;  %v401_v5 = vld [vmem:[#allocation2 + $0x4d0] sm:$0xff]  ;;  %v362_v25 = vld [vmem:[#allocation2 + $0x398] sm:$0xff] }
  0x7f   : > { %1034 = vmatpush.msra.mxu1 %v792_v26  ;;  %1047 = vmatpush.msra.mxu2 %v337_v27  ;;  %v577_v6 = vld [vmem:[#allocation2 + $0xa50] sm:$0xff] }
  0x80   : > { %1066 = vmatpush.msra.mxu3 %v473_v28  ;;  %959 = vmatmul.f32.vlgmr.msrb.gmra.mxu1 %v2048_v34  ;;  %v713_v7 = vld [vmem:[#allocation2 + $0xe90] sm:$0xff] }
  0x81   : > { %1016 = vmatpush.msra.mxu0 %v648_v30  ;;  %1035 = vmatpush.msra.mxu1 %v784_v31  ;;  %v257_v8 = vld [vmem:[#allocation2 + $0x50] sm:$0xff]  ;;  %v354_v30 = vld [vmem:[#allocation2 + $0x358] sm:$0xff] }
  0x82   : > { %1048 = vmatpush.msra.mxu2 %v329_v32  ;;  %1067 = vmatpush.msra.mxu3 %v465_v33  ;;  %v393_v9 = vld [vmem:[#allocation2 + $0x490] sm:$0xff] }
  0x83   : > { %1017 = vmatpush.msra.mxu0 %v640_v36  ;;  %1036 = vmatpush.msra.mxu1 %v776_v37  ;;  %v569_v10 = vld [vmem:[#allocation2 + $0xa10] sm:$0xff]  ;;  %v346_v36 = vld [vmem:[#allocation2 + $0x318] sm:$0xff] }
  0x84   : > { %1049 = vmatpush.msra.mxu2 %v321_v38  ;;  %1068 = vmatpush.msra.mxu3 %v457_v39  ;;  %v705_v11 = vld [vmem:[#allocation2 + $0xe50] sm:$0xff] }
  0x85   : > { %1018 = vmatpush.msra.mxu0 %v632_v41  ;;  %1037 = vmatpush.msra.mxu1 %v768_v42  ;;  %v249_v12 = vld [vmem:[#allocation2 + $0x10] sm:$0xff]  ;;  %v338_v41 = vld [vmem:[#allocation2 + $0x2d8] sm:$0xff] }
  0x86   : > { %1050 = vmatpush.msra.mxu2 %v313_v43  ;;  %1069 = vmatpush.msra.mxu3 %v449_v44  ;;  %v385_v13 = vld [vmem:[#allocation2 + $0x450] sm:$0xff] }
  0x87   : > { %1019 = vmatmul.f32.vlgmr.msra.gmra.mxu0 %v2051_v35  ;;  %1038 = vmatpush.msra.mxu1 %v760_v46  ;;  %v561_v14 = vld [vmem:[#allocation2 + $0x9d0] sm:$0xff] }
  0x88   : > { %1083 = vmatpush.msrb.mxu0 %v625_v45  ;;  %1051 = vmatpush.msra.mxu2 %v305_v47  ;;  %v697_v15 = vld [vmem:[#allocation2 + $0xe10] sm:$0xff]  ;;  %v330_v45 = vld [vmem:[#allocation2 + $0x298] sm:$0xff] }
  0x89   : > { %1070 = vmatpush.msra.mxu3 %v441_v48  ;;  %1797 = vmatmul.msk.f32.vlgmr.msra.gmra.mxu1 %vm840_vm0, %v2058_v53  ;;  %v817_v16 = vld [vmem:[#allocation2 + $0x11d0] sm:$0xff] }
  0x8a   : > { %1084 = vmatpush.msrb.mxu0 %v617_v49  ;;  %1103 = vmatpush.msrb.mxu1 %v753_v50  ;;  %v377_v17 = vld [vmem:[#allocation2 + $0x410] sm:$0xff]  ;;  %v322_v49 = vld [vmem:[#allocation2 + $0x258] sm:$0xff] }
  0x8b   : > { %1052 = vmatpush.msra.mxu2 %v297_v51  ;;  %1071 = vmatpush.msra.mxu3 %v433_v52  ;;  %v553_v18 = vld [vmem:[#allocation2 + $0x990] sm:$0xff]  ;;  %v498_v50 = vld [vmem:[#allocation2 + $0x7d8] sm:$0xff] }
  0x8c   : > { %1085 = vmatpush.msrb.mxu0 %v609_v54  ;;  %1104 = vmatpush.msrb.mxu1 %v745_v55  ;;  %v689_v19 = vld [vmem:[#allocation2 + $0xdd0] sm:$0xff]  ;;  %v754_v51 = vld [vmem:[#allocation2 + $0xfd8] sm:$0xff] }
  0x8d   : > { %1053 = vmatpush.msra.mxu2 %v289_v56  ;;  %1072 = vmatpush.msra.mxu3 %v425_v57  ;;  %v809_v20 = vld [vmem:[#allocation2 + $0x1190] sm:$0xff]  ;;  %v314_v54 = vld [vmem:[#allocation2 + $0x218] sm:$0xff] }
  0x8e   : > { %1086 = vmatpush.msrb.mxu0 %v601_v58  ;;  %1105 = vmatpush.msrb.mxu1 %v737_v59  ;;  %v545_v22 = vld [vmem:[#allocation2 + $0x950] sm:$0xff]  ;;  %v490_v55 = vld [vmem:[#allocation2 + $0x798] sm:$0xff] }
  0x8f   : > { %1054 = vmatpush.msra.mxu2 %v281_v60  ;;  %1073 = vmatpush.msra.mxu3 %v417_v61  ;;  %v681_v23 = vld [vmem:[#allocation2 + $0xd90] sm:$0xff]  ;;  %v626_v56 = vld [vmem:[#allocation2 + $0xbd8] sm:$0xff] }
  0x90   : > { %1087 = vmatpush.msrb.mxu0 %v593_v62  ;;  %1106 = vmatpush.msrb.mxu1 %v729_v63  ;;  %v801_v24 = vld [vmem:[#allocation2 + $0x1150] sm:$0xff]  ;;  %v746_v57 = vld [vmem:[#allocation2 + $0xf98] sm:$0xff] }
  0x91   : > { %1055 = vmatpush.msra.mxu2 %v273_v0  ;;  %1074 = vmatpush.msra.mxu3 %v409_v1  ;;  %v537_v26 = vld [vmem:[#allocation2 + $0x910] sm:$0xff]  ;;  %v306_v58 = vld [vmem:[#allocation2 + $0x1d8] sm:$0xff] }
  0x92   : > { %1088 = vmatpush.msrb.mxu0 %v585_v2  ;;  %1107 = vmatpush.msrb.mxu1 %v721_v3  ;;  %v673_v27 = vld [vmem:[#allocation2 + $0xd50] sm:$0xff]  ;;  %v482_v59 = vld [vmem:[#allocation2 + $0x758] sm:$0xff] }
  0x93   : > { %1056 = vmatpush.msra.mxu2 %v265_v4  ;;  %1075 = vmatpush.msra.mxu3 %v401_v5  ;;  %v793_v28 = vld [vmem:[#allocation2 + $0x1110] sm:$0xff]  ;;  %v618_v60 = vld [vmem:[#allocation2 + $0xb98] sm:$0xff] }
  0x94   : > { %1089 = vmatpush.msrb.mxu0 %v577_v6  ;;  %1108 = vmatpush.msrb.mxu1 %v713_v7  ;;  %v529_v31 = vld [vmem:[#allocation2 + $0x8d0] sm:$0xff]  ;;  %v738_v61 = vld [vmem:[#allocation2 + $0xf58] sm:$0xff] }
  0x95   : > { %1057 = vmatpush.msra.mxu2 %v257_v8  ;;  %1076 = vmatpush.msra.mxu3 %v393_v9  ;;  %v665_v32 = vld [vmem:[#allocation2 + $0xd10] sm:$0xff]  ;;  %v298_v62 = vld [vmem:[#allocation2 + $0x198] sm:$0xff] }
  0x96   : > { %1090 = vmatpush.msrb.mxu0 %v569_v10  ;;  %1109 = vmatpush.msrb.mxu1 %v705_v11  ;;  %v785_v33 = vld [vmem:[#allocation2 + $0x10d0] sm:$0xff]  ;;  %v474_v63 = vld [vmem:[#allocation2 + $0x718] sm:$0xff] }
  0x97   : > { %1058 = vmatpush.msra.mxu2 %v249_v12  ;;  %1077 = vmatpush.msra.mxu3 %v385_v13  ;;  %v521_v37 = vld [vmem:[#allocation2 + $0x890] sm:$0xff]  ;;  %v610_v0 = vld [vmem:[#allocation2 + $0xb58] sm:$0xff] }
  0x98   : > { %1091 = vmatpush.msrb.mxu0 %v561_v14  ;;  %1110 = vmatpush.msrb.mxu1 %v697_v15  ;;  %v657_v38 = vld [vmem:[#allocation2 + $0xcd0] sm:$0xff]  ;;  %v730_v1 = vld [vmem:[#allocation2 + $0xf18] sm:$0xff] }
  0x99   : > { %1131 = vmatpush.msrb.mxu2 %v817_v16  ;;  %1078 = vmatpush.msra.mxu3 %v377_v17  ;;  %v777_v39 = vld [vmem:[#allocation2 + $0x1090] sm:$0xff]  ;;  %v290_v2 = vld [vmem:[#allocation2 + $0x158] sm:$0xff] }
  0x9a   : > { %1092 = vmatpush.msrb.mxu0 %v553_v18  ;;  %1111 = vmatpush.msrb.mxu1 %v689_v19  ;;  %v513_v42 = vld [vmem:[#allocation2 + $0x850] sm:$0xff]  ;;  %v602_v3 = vld [vmem:[#allocation2 + $0xb18] sm:$0xff] }
  0x9b   : > { %1132 = vmatpush.msrb.mxu2 %v809_v20  ;;  %1143 = vmatpush.msrb.mxu3 %v370_v21  ;;  %v649_v43 = vld [vmem:[#allocation2 + $0xc90] sm:$0xff]  ;;  %v466_v4 = vld [vmem:[#allocation2 + $0x6d8] sm:$0xff] }
  0x9c   : > { %1093 = vmatpush.msrb.mxu0 %v545_v22  ;;  %1112 = vmatpush.msrb.mxu1 %v681_v23  ;;  %v769_v44 = vld [vmem:[#allocation2 + $0x1050] sm:$0xff]  ;;  %v722_v5 = vld [vmem:[#allocation2 + $0xed8] sm:$0xff] }
  0x9d   : > { %1133 = vmatpush.msrb.mxu2 %v801_v24  ;;  %1144 = vmatpush.msrb.mxu3 %v362_v25  ;;  %v505_v46 = vld [vmem:[#allocation2 + $0x810] sm:$0xff]  ;;  %v282_v6 = vld [vmem:[#allocation2 + $0x118] sm:$0xff] }
  0x9e   : > { %1094 = vmatpush.msrb.mxu0 %v537_v26  ;;  %1113 = vmatpush.msrb.mxu1 %v673_v27  ;;  %v641_v47 = vld [vmem:[#allocation2 + $0xc50] sm:$0xff]  ;;  %v458_v7 = vld [vmem:[#allocation2 + $0x698] sm:$0xff] }
  0x9f   : > { %1134 = vmatpush.msrb.mxu2 %v793_v28  ;;  %1145 = vmatpush.msrb.mxu3 %v354_v30  ;;  %v761_v48 = vld [vmem:[#allocation2 + $0x1010] sm:$0xff]  ;;  %v594_v8 = vld [vmem:[#allocation2 + $0xad8] sm:$0xff] }
  0xa0   : > { %1095 = vmatpush.msrb.mxu0 %v529_v31  ;;  %1114 = vmatpush.msrb.mxu1 %v665_v32  ;;  %v633_v52 = vld [vmem:[#allocation2 + $0xc10] sm:$0xff]  ;;  %v714_v9 = vld [vmem:[#allocation2 + $0xe98] sm:$0xff] }
  0xa1   : > { %1135 = vmatpush.msrb.mxu2 %v785_v33  ;;  %1146 = vmatpush.msrb.mxu3 %v346_v36  ;;  %v274_v10 = vld [vmem:[#allocation2 + $0xd8] sm:$0xff] }
  0xa2   : > { %1096 = vmatpush.msrb.mxu0 %v521_v37  ;;  %1115 = vmatpush.msrb.mxu1 %v657_v38  ;;  %v450_v11 = vld [vmem:[#allocation2 + $0x658] sm:$0xff] }
  0xa3   : > { %1136 = vmatpush.msrb.mxu2 %v777_v39  ;;  %1147 = vmatpush.msrb.mxu3 %v338_v41  ;;  %v586_v12 = vld [vmem:[#allocation2 + $0xa98] sm:$0xff] }
  0xa4   : > { %1097 = vmatpush.msrb.mxu0 %v513_v42  ;;  %1116 = vmatpush.msrb.mxu1 %v649_v43  ;;  %v706_v13 = vld [vmem:[#allocation2 + $0xe58] sm:$0xff] }
  0xa5   : > { %1137 = vmatpush.msrb.mxu2 %v769_v44  ;;  %1148 = vmatpush.msrb.mxu3 %v330_v45  ;;  %v266_v14 = vld [vmem:[#allocation2 + $0x98] sm:$0xff] }
  0xa6   : > { %1059 = vmatmul.f32.vlgmr.msra.gmra.mxu2 %v2048_v34  ;;  %1098 = vmatpush.msrb.mxu0 %v505_v46  ;;  %v442_v15 = vld [vmem:[#allocation2 + $0x618] sm:$0xff] }
  0xa7   : > { %1117 = vmatpush.msrb.mxu1 %v641_v47  ;;  %1138 = vmatpush.msrb.mxu2 %v761_v48  ;;  %v578_v16 = vld [vmem:[#allocation2 + $0xa58] sm:$0xff] }
  0xa8   : > { %1149 = vmatpush.msrb.mxu3 %v322_v49  ;;  %1163 = vmatpush.msra.mxu0 %v498_v50  ;;  %v698_v17 = vld [vmem:[#allocation2 + $0xe18] sm:$0xff] }
  0xa9   : > { %1079 = vmatmul.f32.vlgmr.msra.gmra.mxu3 %v2054_v40  ;;  %1203 = vmatpush.msra.mxu2 %v754_v51  ;;  %v258_v18 = vld [vmem:[#allocation2 + $0x58] sm:$0xff] }
  0xaa   : > { %1118 = vmatpush.msrb.mxu1 %v633_v52  ;;  %1150 = vmatpush.msrb.mxu3 %v314_v54  ;;  %v434_v19 = vld [vmem:[#allocation2 + $0x5d8] sm:$0xff] }
  0xab   : > { %1164 = vmatpush.msra.mxu0 %v490_v55  ;;  %1204 = vmatpush.msra.mxu2 %v746_v57  ;;  %v570_v20 = vld [vmem:[#allocation2 + $0xa18] sm:$0xff]  ;;  %v627_v57 = vld [vmem:[#allocation2 + $0xbe0] sm:$0xff] }
  0xac   : > { %1183 = vmatpush.msra.mxu1 %v626_v56  ;;  %1151 = vmatpush.msrb.mxu3 %v306_v58  ;;  %v690_v21 = vld [vmem:[#allocation2 + $0xdd8] sm:$0xff]  ;;  %v371_v56 = vld [vmem:[#allocation2 + $0x3e0] sm:$0xff] }
  0xad   : > { %1165 = vmatpush.msra.mxu0 %v482_v59  ;;  %1205 = vmatpush.msra.mxu2 %v738_v61  ;;  %v250_v22 = vld [vmem:[#allocation2 + $0x18] sm:$0xff]  ;;  %v363_v59 = vld [vmem:[#allocation2 + $0x3a0] sm:$0xff] }
  0xae   : > { %1184 = vmatpush.msra.mxu1 %v618_v60  ;;  %1152 = vmatpush.msrb.mxu3 %v298_v62  ;;  %v426_v23 = vld [vmem:[#allocation2 + $0x598] sm:$0xff]  ;;  %v499_v60 = vld [vmem:[#allocation2 + $0x7e0] sm:$0xff] }
  0xaf   : > { %1798 = vmatmul.msk.f32.vlgmr.msrb.gmra.mxu2 %vm840_vm0, %v2058_v53  ;;  %1166 = vmatpush.msra.mxu0 %v474_v63  ;;  %v562_v24 = vld [vmem:[#allocation2 + $0x9d8] sm:$0xff]  ;;  %v619_v61 = vld [vmem:[#allocation2 + $0xba0] sm:$0xff] }
  0xb0   : > { %1185 = vmatpush.msra.mxu1 %v610_v0  ;;  %1206 = vmatpush.msra.mxu2 %v730_v1  ;;  %v682_v25 = vld [vmem:[#allocation2 + $0xd98] sm:$0xff]  ;;  %v755_v62 = vld [vmem:[#allocation2 + $0xfe0] sm:$0xff] }
  0xb1   : > { %1153 = vmatpush.msrb.mxu3 %v290_v2  ;;  %1099 = vmatmul.f32.vlgmr.msrb.gmra.mxu0 %v2046_v29  ;;  %v818_v26 = vld [vmem:[#allocation2 + $0x11d8] sm:$0xff]  ;;  %v355_v63 = vld [vmem:[#allocation2 + $0x360] sm:$0xff] }
  0xb2   : > { %1186 = vmatpush.msra.mxu1 %v602_v3  ;;  %1167 = vmatpush.msra.mxu0 %v466_v4  ;;  %v418_v27 = vld [vmem:[#allocation2 + $0x558] sm:$0xff]  ;;  %v491_v0 = vld [vmem:[#allocation2 + $0x7a0] sm:$0xff] }
  0xb3   : > { %1207 = vmatpush.msra.mxu2 %v722_v5  ;;  %1154 = vmatpush.msrb.mxu3 %v282_v6  ;;  %v554_v28 = vld [vmem:[#allocation2 + $0x998] sm:$0xff]  ;;  %v611_v1 = vld [vmem:[#allocation2 + $0xb60] sm:$0xff] }
  0xb4   : > { %1119 = vmatmul.f32.vlgmr.msrb.gmra.mxu1 %v2051_v35  ;;  %1168 = vmatpush.msra.mxu0 %v458_v7  ;;  %v674_v30 = vld [vmem:[#allocation2 + $0xd58] sm:$0xff]  ;;  %v347_v2 = vld [vmem:[#allocation2 + $0x320] sm:$0xff] }
  0xb5   : > { %1187 = vmatpush.msra.mxu1 %v594_v8  ;;  %1208 = vmatpush.msra.mxu2 %v714_v9  ;;  %v810_v31 = vld [vmem:[#allocation2 + $0x1198] sm:$0xff]  ;;  %v483_v3 = vld [vmem:[#allocation2 + $0x760] sm:$0xff] }
  0xb6   : > { %1155 = vmatpush.msrb.mxu3 %v274_v10  ;;  %1169 = vmatpush.msra.mxu0 %v450_v11  ;;  %v410_v32 = vld [vmem:[#allocation2 + $0x518] sm:$0xff]  ;;  %v603_v4 = vld [vmem:[#allocation2 + $0xb20] sm:$0xff] }
  0xb7   : > { %1188 = vmatpush.msra.mxu1 %v586_v12  ;;  %1209 = vmatpush.msra.mxu2 %v706_v13  ;;  %v546_v33 = vld [vmem:[#allocation2 + $0x958] sm:$0xff]  ;;  %v339_v5 = vld [vmem:[#allocation2 + $0x2e0] sm:$0xff] }
  0xb8   : > { %1156 = vmatpush.msrb.mxu3 %v266_v14  ;;  %1170 = vmatpush.msra.mxu0 %v442_v15  ;;  %v666_v36 = vld [vmem:[#allocation2 + $0xd18] sm:$0xff]  ;;  %v595_v6 = vld [vmem:[#allocation2 + $0xae0] sm:$0xff] }
  0xb9   : > { %1189 = vmatpush.msra.mxu1 %v578_v16  ;;  %1210 = vmatpush.msra.mxu2 %v698_v17  ;;  %v802_v37 = vld [vmem:[#allocation2 + $0x1158] sm:$0xff]  ;;  %v731_v7 = vld [vmem:[#allocation2 + $0xf20] sm:$0xff] }
  0xba   : > { %1157 = vmatpush.msrb.mxu3 %v258_v18  ;;  %1171 = vmatpush.msra.mxu0 %v434_v19  ;;  %v402_v38 = vld [vmem:[#allocation2 + $0x4d8] sm:$0xff]  ;;  %v331_v8 = vld [vmem:[#allocation2 + $0x2a0] sm:$0xff] }
  0xbb   : > { %1190 = vmatpush.msra.mxu1 %v570_v20  ;;  %1211 = vmatpush.msra.mxu2 %v690_v21  ;;  %v538_v39 = vld [vmem:[#allocation2 + $0x918] sm:$0xff]  ;;  %v467_v9 = vld [vmem:[#allocation2 + $0x6e0] sm:$0xff] }
  0xbc   : > { %1158 = vmatpush.msrb.mxu3 %v250_v22  ;;  %1172 = vmatpush.msra.mxu0 %v426_v23  ;;  %v658_v41 = vld [vmem:[#allocation2 + $0xcd8] sm:$0xff]  ;;  %v587_v10 = vld [vmem:[#allocation2 + $0xaa0] sm:$0xff] }
  0xbd   : > { %1191 = vmatpush.msra.mxu1 %v562_v24  ;;  %1212 = vmatpush.msra.mxu2 %v682_v25  ;;  %v794_v42 = vld [vmem:[#allocation2 + $0x1118] sm:$0xff]  ;;  %v323_v11 = vld [vmem:[#allocation2 + $0x260] sm:$0xff] }
  0xbe   : > { %1231 = vmatpush.msra.mxu3 %v818_v26  ;;  %1173 = vmatpush.msra.mxu0 %v418_v27  ;;  %v394_v43 = vld [vmem:[#allocation2 + $0x498] sm:$0xff]  ;;  %v459_v12 = vld [vmem:[#allocation2 + $0x6a0] sm:$0xff] }
  0xbf   : > { %1192 = vmatpush.msra.mxu1 %v554_v28  ;;  %1213 = vmatpush.msra.mxu2 %v674_v30  ;;  %v530_v44 = vld [vmem:[#allocation2 + $0x8d8] sm:$0xff]  ;;  %v579_v13 = vld [vmem:[#allocation2 + $0xa60] sm:$0xff] }
  0xc0   : > { %1232 = vmatpush.msra.mxu3 %v810_v31  ;;  %1174 = vmatpush.msra.mxu0 %v410_v32  ;;  %v650_v45 = vld [vmem:[#allocation2 + $0xc98] sm:$0xff]  ;;  %v715_v14 = vld [vmem:[#allocation2 + $0xea0] sm:$0xff] }
  0xc1   : > { %1193 = vmatpush.msra.mxu1 %v546_v33  ;;  %1214 = vmatpush.msra.mxu2 %v666_v36  ;;  %v786_v46 = vld [vmem:[#allocation2 + $0x10d8] sm:$0xff]  ;;  %v315_v15 = vld [vmem:[#allocation2 + $0x220] sm:$0xff] }
  0xc2   : > { %1233 = vmatpush.msra.mxu3 %v802_v37  ;;  %1175 = vmatpush.msra.mxu0 %v402_v38  ;;  %v386_v47 = vld [vmem:[#allocation2 + $0x458] sm:$0xff]  ;;  %v451_v16 = vld [vmem:[#allocation2 + $0x660] sm:$0xff] }
  0xc3   : > { %1194 = vmatpush.msra.mxu1 %v538_v39  ;;  %1215 = vmatpush.msra.mxu2 %v658_v41  ;;  %v522_v48 = vld [vmem:[#allocation2 + $0x898] sm:$0xff]  ;;  %v571_v17 = vld [vmem:[#allocation2 + $0xa20] sm:$0xff] }
  0xc4   : > { %1234 = vmatpush.msra.mxu3 %v794_v42  ;;  %1176 = vmatpush.msra.mxu0 %v394_v43  ;;  %v642_v49 = vld [vmem:[#allocation2 + $0xc58] sm:$0xff]  ;;  %v707_v18 = vld [vmem:[#allocation2 + $0xe60] sm:$0xff] }
  0xc5   : > { %1159 = vmatmul.f32.vlgmr.msrb.gmra.mxu3 %v2048_v34  ;;  %1195 = vmatpush.msra.mxu1 %v530_v44  ;;  %v778_v50 = vld [vmem:[#allocation2 + $0x1098] sm:$0xff]  ;;  %v307_v19 = vld [vmem:[#allocation2 + $0x1e0] sm:$0xff] }
  0xc6   : > { %1216 = vmatpush.msra.mxu2 %v650_v45  ;;  %v378_v51 = vld [vmem:[#allocation2 + $0x418] sm:$0xff]  ;;  %1235 = vmatpush.msra.mxu3 %v786_v46  ;;  %v443_v20 = vld [vmem:[#allocation2 + $0x620] sm:$0xff] }
  0xc7   : > { %1177 = vmatpush.msra.mxu0 %v386_v47  ;;  %v514_v52 = vld [vmem:[#allocation2 + $0x858] sm:$0xff]  ;;  %1196 = vmatpush.msra.mxu1 %v522_v48  ;;  %v563_v21 = vld [vmem:[#allocation2 + $0x9e0] sm:$0xff] }
  0xc8   : > { %v634_v54 = vld [vmem:[#allocation2 + $0xc18] sm:$0xff]  ;;  %1217 = vmatpush.msra.mxu2 %v642_v49  ;;  %1236 = vmatpush.msra.mxu3 %v778_v50  ;;  %v699_v22 = vld [vmem:[#allocation2 + $0xe20] sm:$0xff] }
  0xc9   : > { %v770_v55 = vld [vmem:[#allocation2 + $0x1058] sm:$0xff]  ;;  %1178 = vmatpush.msra.mxu0 %v378_v51  ;;  %1197 = vmatpush.msra.mxu1 %v514_v52  ;;  %v299_v23 = vld [vmem:[#allocation2 + $0x1a0] sm:$0xff] }
  0xca   : > { %1218 = vmatpush.msra.mxu2 %v634_v54  ;;  %v506_v34 = vld [vmem:[#allocation2 + $0x818] sm:$0xff]  ;;  %1237 = vmatpush.msra.mxu3 %v770_v55  ;;  %v435_v24 = vld [vmem:[#allocation2 + $0x5e0] sm:$0xff] }
  0xcb   : > { %v762_v58 = vld [vmem:[#allocation2 + $0x1018] sm:$0xff]  ;;  %1219 = vmatmul.f32.vlgmr.msra.gmra.mxu2 %v2051_v35  ;;  %1243 = vmatpush.msrb.mxu0 %v371_v56  ;;  %v747_v35 = vld [vmem:[#allocation2 + $0xfa0] sm:$0xff] }
  0xcc   : > { %1283 = vmatpush.msrb.mxu2 %v627_v57  ;;  %1198 = vmatpush.msra.mxu1 %v506_v34  ;;  %v555_v25 = vld [vmem:[#allocation2 + $0x9a0] sm:$0xff]  ;;  %v500_v57 = vld [vmem:[#allocation2 + $0x7e8] sm:$0xff] }
  0xcd   : > { %1238 = vmatpush.msra.mxu3 %v762_v58  ;;  %1179 = vmatmul.f32.vlgmr.msra.gmra.mxu0 %v2054_v40  ;;  %v739_v40 = vld [vmem:[#allocation2 + $0xf60] sm:$0xff] }
  0xce   : > { %1799 = vmatmul.msk.f32.vlgmr.msra.gmra.mxu3 %vm840_vm0, %v2058_v53  ;;  %1244 = vmatpush.msrb.mxu0 %v363_v59  ;;  %v475_v53 = vld [vmem:[#allocation2 + $0x720] sm:$0xff] }
  0xcf   : > { %1263 = vmatpush.msrb.mxu1 %v499_v60  ;;  %1284 = vmatpush.msrb.mxu2 %v619_v61  ;;  %v691_v26 = vld [vmem:[#allocation2 + $0xde0] sm:$0xff]  ;;  %v372_v60 = vld [vmem:[#allocation2 + $0x3e8] sm:$0xff] }
  0xd0   : > { %1303 = vmatpush.msrb.mxu3 %v755_v62  ;;  %1199 = vmatmul.f32.vlgmr.msra.gmra.mxu1 %v2046_v29  ;;  %v723_v29 = vld [vmem:[#allocation2 + $0xee0] sm:$0xff]  ;;  %v492_v61 = vld [vmem:[#allocation2 + $0x7a8] sm:$0xff] }
  0xd1   : > { %1245 = vmatpush.msrb.mxu0 %v355_v63  ;;  %1264 = vmatpush.msrb.mxu1 %v491_v0  ;;  %v291_v27 = vld [vmem:[#allocation2 + $0x160] sm:$0xff]  ;;  %v628_v62 = vld [vmem:[#allocation2 + $0xbe8] sm:$0xff] }
  0xd2   : > { %1285 = vmatpush.msrb.mxu2 %v611_v1  ;;  %1304 = vmatpush.msrb.mxu3 %v747_v35  ;;  %v427_v28 = vld [vmem:[#allocation2 + $0x5a0] sm:$0xff]  ;;  %v364_v0 = vld [vmem:[#allocation2 + $0x3a8] sm:$0xff] }
  0xd3   : > { %1246 = vmatpush.msrb.mxu0 %v347_v2  ;;  %1265 = vmatpush.msrb.mxu1 %v483_v3  ;;  %v547_v30 = vld [vmem:[#allocation2 + $0x960] sm:$0xff]  ;;  %v484_v1 = vld [vmem:[#allocation2 + $0x768] sm:$0xff] }
  0xd4   : > { %1286 = vmatpush.msrb.mxu2 %v603_v4  ;;  %1305 = vmatpush.msrb.mxu3 %v739_v40  ;;  %v683_v31 = vld [vmem:[#allocation2 + $0xda0] sm:$0xff]  ;;  %v620_v35 = vld [vmem:[#allocation2 + $0xba8] sm:$0xff]  ;;  %v860_v40 = vpop.f32.mrf.mxu0 }
  0xd5   : > { %1247 = vmatpush.msrb.mxu0 %v339_v5  ;;  %1266 = vmatpush.msrb.mxu1 %v475_v53  ;;  %v283_v32 = vld [vmem:[#allocation2 + $0x120] sm:$0xff]  ;;  %v356_v3 = vld [vmem:[#allocation2 + $0x368] sm:$0xff] }
  0xd6   : > { %1287 = vmatpush.msrb.mxu2 %v595_v6  ;;  %1306 = vmatpush.msrb.mxu3 %v731_v7  ;;  %v419_v33 = vld [vmem:[#allocation2 + $0x560] sm:$0xff]  ;;  %v476_v4 = vld [vmem:[#allocation2 + $0x728] sm:$0xff] }
  0xd7   : > { %1248 = vmatpush.msrb.mxu0 %v331_v8  ;;  %1267 = vmatpush.msrb.mxu1 %v467_v9  ;;  %v539_v36 = vld [vmem:[#allocation2 + $0x920] sm:$0xff]  ;;  %v612_v5 = vld [vmem:[#allocation2 + $0xb68] sm:$0xff] }
  0xd8   : > { %1288 = vmatpush.msrb.mxu2 %v587_v10  ;;  %1307 = vmatpush.msrb.mxu3 %v723_v29  ;;  %v675_v37 = vld [vmem:[#allocation2 + $0xd60] sm:$0xff]  ;;  %v348_v6 = vld [vmem:[#allocation2 + $0x328] sm:$0xff] }
  0xd9   : > { %1249 = vmatpush.msrb.mxu0 %v323_v11  ;;  %1268 = vmatpush.msrb.mxu1 %v459_v12  ;;  %v275_v38 = vld [vmem:[#allocation2 + $0xe0] sm:$0xff]  ;;  %v468_v7 = vld [vmem:[#allocation2 + $0x6e8] sm:$0xff] }
  0xda   : > { %1289 = vmatpush.msrb.mxu2 %v579_v13  ;;  %1308 = vmatpush.msrb.mxu3 %v715_v14  ;;  %v411_v39 = vld [vmem:[#allocation2 + $0x520] sm:$0xff]  ;;  %v604_v8 = vld [vmem:[#allocation2 + $0xb28] sm:$0xff] }
  0xdb   : > { %1250 = vmatpush.msrb.mxu0 %v315_v15  ;;  %1269 = vmatpush.msrb.mxu1 %v451_v16  ;;  %v531_v41 = vld [vmem:[#allocation2 + $0x8e0] sm:$0xff]  ;;  %v340_v10 = vld [vmem:[#allocation2 + $0x2e8] sm:$0xff] }
  0xdc   : > { %1290 = vmatpush.msrb.mxu2 %v571_v17  ;;  %1309 = vmatpush.msrb.mxu3 %v707_v18  ;;  %v667_v42 = vld [vmem:[#allocation2 + $0xd20] sm:$0xff]  ;;  %v460_v29 = vld [vmem:[#allocation2 + $0x6a8] sm:$0xff] }
  0xdd   : > { %1251 = vmatpush.msrb.mxu0 %v307_v19  ;;  %1270 = vmatpush.msrb.mxu1 %v443_v20  ;;  %v267_v43 = vld [vmem:[#allocation2 + $0xa0] sm:$0xff]  ;;  %v596_v13 = vld [vmem:[#allocation2 + $0xae8] sm:$0xff] }
  0xde   : > { %1291 = vmatpush.msrb.mxu2 %v563_v21  ;;  %1310 = vmatpush.msrb.mxu3 %v699_v22  ;;  %v403_v44 = vld [vmem:[#allocation2 + $0x4e0] sm:$0xff]  ;;  %v332_v15 = vld [vmem:[#allocation2 + $0x2a8] sm:$0xff] }
  0xdf   : > { %1252 = vmatpush.msrb.mxu0 %v299_v23  ;;  %1271 = vmatpush.msrb.mxu1 %v435_v24  ;;  %v523_v45 = vld [vmem:[#allocation2 + $0x8a0] sm:$0xff]  ;;  %v452_v16 = vld [vmem:[#allocation2 + $0x668] sm:$0xff] }
  0xe0   : > { %1292 = vmatpush.msrb.mxu2 %v555_v25  ;;  %1311 = vmatpush.msrb.mxu3 %v691_v26  ;;  %v659_v46 = vld [vmem:[#allocation2 + $0xce0] sm:$0xff]  ;;  %v588_v17 = vld [vmem:[#allocation2 + $0xaa8] sm:$0xff] }
  0xe1   : > { %1253 = vmatpush.msrb.mxu0 %v291_v27  ;;  %1272 = vmatpush.msrb.mxu1 %v427_v28  ;;  %v259_v47 = vld [vmem:[#allocation2 + $0x60] sm:$0xff]  ;;  %v324_v20 = vld [vmem:[#allocation2 + $0x268] sm:$0xff] }
  0xe2   : > { %1293 = vmatpush.msrb.mxu2 %v547_v30  ;;  %1312 = vmatpush.msrb.mxu3 %v683_v31  ;;  %v395_v48 = vld [vmem:[#allocation2 + $0x4a0] sm:$0xff]  ;;  %v880_v11 = vpop.f32.mrf.mxu1  ;;  %v444_v22 = vld [vmem:[#allocation2 + $0x628] sm:$0xff] }
  0xe3   : > { %1254 = vmatpush.msrb.mxu0 %v283_v32  ;;  %1273 = vmatpush.msrb.mxu1 %v419_v33  ;;  %v515_v49 = vld [vmem:[#allocation2 + $0x860] sm:$0xff]  ;;  %v900_v12 = vpop.f32.mrf.mxu2  ;;  %v881_v21 = vadd.f32 %v880_v11, %v860_v40  ;;  %v580_v23 = vld [vmem:[#allocation2 + $0xa68] sm:$0xff]  ;;  %v2083_v32 = vld.sshfl [vmem:[#allocation1] sm:$0xff pattern:$0x75316420] }
  0xe4   : > { %1294 = vmatpush.msrb.mxu2 %v539_v36  ;;  %1313 = vmatpush.msrb.mxu3 %v675_v37  ;;  %v651_v50 = vld [vmem:[#allocation2 + $0xca0] sm:$0xff]  ;;  %v2080_v24 = vld.sshfl [vmem:[#allocation1 + $0x10] sm:$0xff pattern:$0x75316420] }
  0xe5   : > { %1255 = vmatpush.msrb.mxu0 %v275_v38  ;;  %1274 = vmatpush.msrb.mxu1 %v411_v39  ;;  %v251_v51 = vld [vmem:[#allocation2 + $0x20] sm:$0xff]  ;;  %v756_v26 = vld [vmem:[#allocation2 + $0xfe8] sm:$0xff]  ;;  %v901_v31 = vadd.f32 %v900_v12, %v881_v21  ;;  %v2086_v33 = vld.sshfl [vmem:[#allocation1 + $0x18] sm:$0xff pattern:$0x75316420] }
  0xe6   : > { %1295 = vmatpush.msrb.mxu2 %v531_v41  ;;  %1314 = vmatpush.msrb.mxu3 %v667_v42  ;;  %v387_v52 = vld [vmem:[#allocation2 + $0x460] sm:$0xff]  ;;  %v920_v18 = vpop.f32.mrf.mxu3  ;;  %v316_v27 = vld [vmem:[#allocation2 + $0x228] sm:$0xff] }
  0xe7   : > { %1256 = vmatpush.msrb.mxu0 %v267_v43  ;;  %1275 = vmatpush.msrb.mxu1 %v403_v44  ;;  %v507_v54 = vld [vmem:[#allocation2 + $0x820] sm:$0xff]  ;;  %v436_v28 = vld [vmem:[#allocation2 + $0x5e8] sm:$0xff] }
  0xe8   : > { %1296 = vmatpush.msrb.mxu2 %v523_v45  ;;  %1315 = vmatpush.msrb.mxu3 %v659_v46  ;;  %v643_v55 = vld [vmem:[#allocation2 + $0xc60] sm:$0xff]  ;;  %v940_v25 = vpop.f32.mrf.mxu0  ;;  %v572_v30 = vld [vmem:[#allocation2 + $0xa28] sm:$0xff]  ;;  %v2089_v45 = vpop.permute.xlu0 %1646 }
  0xe9   : > { %1257 = vmatpush.msrb.mxu0 %v259_v47  ;;  %1276 = vmatpush.msrb.mxu1 %v395_v48  ;;  %v819_v56 = vld [vmem:[#allocation2 + $0x11e0] sm:$0xff]  ;;  %v748_v36 = vld [vmem:[#allocation2 + $0xfa8] sm:$0xff] }
  0xea   : > { %1297 = vmatpush.msrb.mxu2 %v515_v49  ;;  %1316 = vmatpush.msrb.mxu3 %v651_v50  ;;  %v379_v34 = vld [vmem:[#allocation2 + $0x420] sm:$0xff]  ;;  %v308_v39 = vld [vmem:[#allocation2 + $0x1e8] sm:$0xff]  ;;  %v921_v50 = vadd.f32 %v920_v18, %v901_v31  ;;  %v493_v31 = vld [vmem:[#allocation2 + $0x7b0] sm:$0xff] }
  0xeb   : > { %1258 = vmatpush.msrb.mxu0 %v251_v51  ;;  %1277 = vmatpush.msrb.mxu1 %v387_v52  ;;  %v635_v58 = vld [vmem:[#allocation2 + $0xc20] sm:$0xff]  ;;  %v428_v41 = vld [vmem:[#allocation2 + $0x5a8] sm:$0xff] }
  0xec   : > { %1298 = vmatpush.msrb.mxu2 %v507_v54  ;;  %v811_v59 = vld [vmem:[#allocation2 + $0x11a0] sm:$0xff]  ;;  %1317 = vmatpush.msrb.mxu3 %v643_v55  ;;  %v564_v43 = vld [vmem:[#allocation2 + $0x9e8] sm:$0xff] }
  0xed   : > { %1331 = vmatpush.msra.mxu0 %v819_v56  ;;  %1278 = vmatpush.msrb.mxu1 %v379_v34  ;;  %v803_v63 = vld [vmem:[#allocation2 + $0x1160] sm:$0xff]  ;;  %v740_v44 = vld [vmem:[#allocation2 + $0xf68] sm:$0xff] }
  0xee   : > { %1363 = vmatpush.msra.mxu2 %v500_v57  ;;  %1318 = vmatpush.msrb.mxu3 %v635_v58  ;;  %v795_v2 = vld [vmem:[#allocation2 + $0x1120] sm:$0xff]  ;;  %v300_v47 = vld [vmem:[#allocation2 + $0x1a8] sm:$0xff] }
  0xef   : > { %1332 = vmatpush.msra.mxu0 %v811_v59  ;;  %1343 = vmatpush.msra.mxu1 %v372_v60  ;;  %v787_v53 = vld [vmem:[#allocation2 + $0x10e0] sm:$0xff]  ;;  %v420_v48 = vld [vmem:[#allocation2 + $0x568] sm:$0xff] }
  0xf0   : > { %1364 = vmatpush.msra.mxu2 %v492_v61  ;;  %1383 = vmatpush.msra.mxu3 %v628_v62  ;;  %v779_v9 = vld [vmem:[#allocation2 + $0x10a0] sm:$0xff]  ;;  %v556_v51 = vld [vmem:[#allocation2 + $0x9a8] sm:$0xff]  ;;  %v941_v61 = vadd.f32 %v940_v25, %v921_v50  ;;  %v501_v25 = vld [vmem:[#allocation2 + $0x7f0] sm:$0xff] }
  0xf1   : > { %1333 = vmatpush.msra.mxu0 %v803_v63  ;;  %1344 = vmatpush.msra.mxu1 %v364_v0  ;;  %v771_v14 = vld [vmem:[#allocation2 + $0x1060] sm:$0xff]  ;;  %v732_v52 = vld [vmem:[#allocation2 + $0xf28] sm:$0xff]  ;;  %v2094_v0 = vld.sshfl [vmem:[#allocation1 + $0x20] sm:$0xff pattern:$0x75316420] }
  0xf2   : > { %1365 = vmatpush.msra.mxu2 %v484_v1  ;;  %1384 = vmatpush.msra.mxu3 %v620_v35  ;;  %v763_v19 = vld [vmem:[#allocation2 + $0x1020] sm:$0xff]  ;;  %v292_v55 = vld [vmem:[#allocation2 + $0x168] sm:$0xff]  ;;  %v469_v50 = vld [vmem:[#allocation2 + $0x6f0] sm:$0xff] }
  0xf3   : > { %1334 = vmatpush.msra.mxu0 %v795_v2  ;;  %1345 = vmatpush.msra.mxu1 %v356_v3  ;;  %v2091_v46 = vld.sshfl [vmem:[#allocation1 + $0x8] sm:$0xff pattern:$0x75316420]  ;;  %v412_v56 = vld [vmem:[#allocation2 + $0x528] sm:$0xff] }
  0xf4   : > { %1366 = vmatpush.msra.mxu2 %v476_v4  ;;  %1385 = vmatpush.msra.mxu3 %v612_v5  ;;  %v548_v57 = vld [vmem:[#allocation2 + $0x968] sm:$0xff] }
  0xf5   : > { %1335 = vmatpush.msra.mxu0 %v787_v53  ;;  %1346 = vmatpush.msra.mxu1 %v348_v6  ;;  %v724_v58 = vld [vmem:[#allocation2 + $0xee8] sm:$0xff]  ;;  %v1649_v6 = vsub.f32 %v941_v61, %v2089_v45  ;;  %v309_v61 = vld [vmem:[#allocation2 + $0x1f0] sm:$0xff] }
  0xf6   : > { %1367 = vmatpush.msra.mxu2 %v468_v7  ;;  %1386 = vmatpush.msra.mxu3 %v604_v8  ;;  %v284_v59 = vld [vmem:[#allocation2 + $0x128] sm:$0xff] }
  0xf7   : > { %1336 = vmatpush.msra.mxu0 %v779_v9  ;;  %1347 = vmatpush.msra.mxu1 %v340_v10  ;;  %v404_v62 = vld [vmem:[#allocation2 + $0x4e8] sm:$0xff]  ;;  %v2100_v10 = vpop.permute.xlu0 %1660 }
  0xf8   : > { %1368 = vmatpush.msra.mxu2 %v460_v29  ;;  %1387 = vmatpush.msra.mxu3 %v596_v13  ;;  %v540_v63 = vld [vmem:[#allocation2 + $0x928] sm:$0xff] }
  0xf9   : > { %1337 = vmatpush.msra.mxu0 %v771_v14  ;;  %1348 = vmatpush.msra.mxu1 %v332_v15  ;;  %v716_v1 = vld [vmem:[#allocation2 + $0xea8] sm:$0xff] }
  0xfa   : > { %1369 = vmatpush.msra.mxu2 %v452_v16  ;;  %1388 = vmatpush.msra.mxu3 %v588_v17  ;;  %v276_v35 = vld [vmem:[#allocation2 + $0xe8] sm:$0xff]  ;;  %v373_v16 = vld [vmem:[#allocation2 + $0x3f0] sm:$0xff] }
  0xfb   : > { %1299 = vmatmul.f32.vlgmr.msrb.gmra.mxu2 %v2080_v24  ;;  %1338 = vmatpush.msra.mxu0 %v763_v19  ;;  %v396_v3 = vld [vmem:[#allocation2 + $0x4a8] sm:$0xff]  ;;  %v1663_v19 = vmul.f32 %v2100_v10, %v1649_v6  ;;  %v741_v6 = vld [vmem:[#allocation2 + $0xf70] sm:$0xff] }
  0xfc   : > { %1349 = vmatpush.msra.mxu1 %v324_v20  ;;  %1370 = vmatpush.msra.mxu2 %v444_v22  ;;  %v532_v4 = vld [vmem:[#allocation2 + $0x8e8] sm:$0xff] }
  0xfd   : > { %1389 = vmatpush.msra.mxu3 %v580_v23  ;;  %1259 = vmatmul.f32.vlgmr.msrb.gmra.mxu0 %v2083_v32  ;;  %v960_v37 = vpop.f32.mrf.mxu1  ;;  %v708_v5 = vld [vmem:[#allocation2 + $0xe68] sm:$0xff]  ;;  %v365_v23 = vld [vmem:[#allocation2 + $0x3b0] sm:$0xff] }
  0xfe   : > { %1319 = vmatmul.f32.vlgmr.msrb.gmra.mxu3 %v2086_v33  ;;  %v980_v38 = vpop.f32.mrf.mxu2  ;;  %1403 = vmatpush.msrb.mxu0 %v756_v26  ;;  %v268_v53 = vld [vmem:[#allocation2 + $0xa8] sm:$0xff] }
  0xff   : > { %1350 = vmatpush.msra.mxu1 %v316_v27  ;;  %v981_v42 = vadd.f32 %v980_v38, %v960_v37  ;;  %1371 = vmatpush.msra.mxu2 %v436_v28  ;;  %v388_v7 = vld [vmem:[#allocation2 + $0x468] sm:$0xff]  ;;  %v349_v38 = vld [vmem:[#allocation2 + $0x330] sm:$0xff] }
 0x100   : > { %1390 = vmatpush.msra.mxu3 %v572_v30  ;;  %1279 = vmatmul.f32.vlgmr.msrb.gmra.mxu1 %v2091_v46  ;;  %v524_v8 = vld [vmem:[#allocation2 + $0x8a8] sm:$0xff]  ;;  %v357_v30 = vld [vmem:[#allocation2 + $0x370] sm:$0xff] }
 0x101   : > { %1404 = vmatpush.msrb.mxu0 %v748_v36  ;;  %v1000_v49 = vpop.f32.mrf.mxu3  ;;  %1351 = vmatpush.msra.mxu1 %v308_v39  ;;  %v700_v29 = vld [vmem:[#allocation2 + $0xe28] sm:$0xff]  ;;  %v485_v39 = vld [vmem:[#allocation2 + $0x770] sm:$0xff] }
 0x102   : > { %1372 = vmatpush.msra.mxu2 %v428_v41  ;;  %v1001_v54 = vadd.f32 %v1000_v49, %v981_v42  ;;  %1391 = vmatpush.msra.mxu3 %v564_v43  ;;  %v260_v11 = vld [vmem:[#allocation2 + $0x68] sm:$0xff]  ;;  %v341_v43 = vld [vmem:[#allocation2 + $0x2f0] sm:$0xff] }
 0x103   : > { %1405 = vmatpush.msrb.mxu0 %v740_v44  ;;  %1352 = vmatpush.msra.mxu1 %v300_v47  ;;  %v380_v12 = vld [vmem:[#allocation2 + $0x428] sm:$0xff]  ;;  %v477_v44 = vld [vmem:[#allocation2 + $0x730] sm:$0xff] }
 0x104   : > { %1373 = vmatpush.msra.mxu2 %v420_v48  ;;  %v1020_v34 = vpop.f32.mrf.mxu0  ;;  %1392 = vmatpush.msra.mxu3 %v556_v51  ;;  %v516_v13 = vld [vmem:[#allocation2 + $0x868] sm:$0xff]  ;;  %v333_v49 = vld [vmem:[#allocation2 + $0x2b0] sm:$0xff] }
 0x105   : > { %1406 = vmatpush.msrb.mxu0 %v732_v52  ;;  %v1021_v60 = vadd.f32 %v1020_v34, %v1001_v54  ;;  %1353 = vmatpush.msra.mxu1 %v292_v55  ;;  %v692_v15 = vld [vmem:[#allocation2 + $0xde8] sm:$0xff]  ;;  %v325_v54 = vld [vmem:[#allocation2 + $0x270] sm:$0xff] }
 0x106   : > { %1374 = vmatpush.msra.mxu2 %v412_v56  ;;  %1393 = vmatpush.msra.mxu3 %v548_v57  ;;  %v1040_v2 = vpop.f32.mrf.mxu1  ;;  %v252_v17 = vld [vmem:[#allocation2 + $0x28] sm:$0xff]  ;;  %v461_v55 = vld [vmem:[#allocation2 + $0x6b0] sm:$0xff] }
 0x107   : > { %1800 = vmatmul.msk.f32.vlgmr.msra.gmra.mxu0 %vm840_vm0, %v2094_v0  ;;  %1354 = vmatpush.msra.mxu1 %v284_v59  ;;  %v1041_v40 = vadd.f32 %v1040_v2, %v1021_v60  ;;  %v508_v18 = vld [vmem:[#allocation2 + $0x828] sm:$0xff]  ;;  %v317_v34 = vld [vmem:[#allocation2 + $0x230] sm:$0xff] }
 0x108   : > { %1407 = vmatpush.msrb.mxu0 %v724_v58  ;;  %1375 = vmatpush.msra.mxu2 %v404_v62  ;;  %v684_v21 = vld [vmem:[#allocation2 + $0xda8] sm:$0xff]  ;;  %v453_v58 = vld [vmem:[#allocation2 + $0x670] sm:$0xff] }
 0x109   : > { %1394 = vmatpush.msra.mxu3 %v540_v63  ;;  %1355 = vmatpush.msra.mxu1 %v276_v35  ;;  %v1650_v9 = vsub.f32 %v1041_v40, %v2089_v45  ;;  %v820_v22 = vld [vmem:[#allocation2 + $0x11e8] sm:$0xff]  ;;  %v629_v59 = vld [vmem:[#allocation2 + $0xbf0] sm:$0xff] }
 0x10a   : > { %1408 = vmatpush.msrb.mxu0 %v716_v1  ;;  %1376 = vmatpush.msra.mxu2 %v396_v3  ;;  %v676_v27 = vld [vmem:[#allocation2 + $0xd68] sm:$0xff]  ;;  %v445_v62 = vld [vmem:[#allocation2 + $0x630] sm:$0xff] }
 0x10b   : > { %1395 = vmatpush.msra.mxu3 %v532_v4  ;;  %1356 = vmatpush.msra.mxu1 %v268_v53  ;;  %v1664_v14 = vmul.f32 %v2100_v10, %v1650_v9  ;;  %v812_v28 = vld [vmem:[#allocation2 + $0x11a8] sm:$0xff]  ;;  %v621_v63 = vld [vmem:[#allocation2 + $0xbb0] sm:$0xff] }
 0x10c   : > { %1409 = vmatpush.msrb.mxu0 %v708_v5  ;;  %1377 = vmatpush.msra.mxu2 %v388_v7  ;;  %v668_v36 = vld [vmem:[#allocation2 + $0xd28] sm:$0xff]  ;;  %v757_v1 = vld [vmem:[#allocation2 + $0xff0] sm:$0xff] }
 0x10d   : > { %1396 = vmatpush.msra.mxu3 %v524_v8  ;;  %1357 = vmatpush.msra.mxu1 %v260_v11  ;;  %v1679_v20 = vrot.slane %v1664_v14, 4  ;;  %v804_v37 = vld [vmem:[#allocation2 + $0x1168] sm:$0xff]  ;;  %v301_v35 = vld [vmem:[#allocation2 + $0x1b0] sm:$0xff] }
 0x10e   : > { %1410 = vmatpush.msrb.mxu0 %v700_v29  ;;  %1378 = vmatpush.msra.mxu2 %v380_v12  ;;  %v660_v41 = vld [vmem:[#allocation2 + $0xce8] sm:$0xff]  ;;  %v437_v2 = vld [vmem:[#allocation2 + $0x5f0] sm:$0xff] }
 0x10f   : > { %1397 = vmatpush.msra.mxu3 %v516_v13  ;;  %v1684_v26 = vsel %vm1683_vm1, %v1663_v19, %v1679_v20  ;;  %1358 = vmatpush.msra.mxu1 %v252_v17  ;;  %v796_v42 = vld [vmem:[#allocation2 + $0x1128] sm:$0xff]  ;;  %v613_v3 = vld [vmem:[#allocation2 + $0xb70] sm:$0xff] }
 0x110   : > { %1411 = vmatpush.msrb.mxu0 %v692_v15  ;;  %1443 = vmatpush.msrb.mxu2 %v373_v16  ;;  %1692 = vst [vmem:[%s2107_s17] sm:$0x77] %v1684_v26  ;;  %v652_v47 = vld [vmem:[#allocation2 + $0xca8] sm:$0xff]  ;;  %v749_v4 = vld [vmem:[#allocation2 + $0xfb0] sm:$0xff] }
 0x111   : > { %1398 = vmatpush.msra.mxu3 %v508_v18  ;;  %1431 = vmatpush.msrb.mxu1 %v820_v22  ;;  %v788_v48 = vld [vmem:[#allocation2 + $0x10e8] sm:$0xff]  ;;  %v293_v40 = vld [vmem:[#allocation2 + $0x170] sm:$0xff] }
 0x112   : > { %1412 = vmatpush.msrb.mxu0 %v684_v21  ;;  %1444 = vmatpush.msrb.mxu2 %v365_v23  ;;  %v644_v51 = vld [vmem:[#allocation2 + $0xc68] sm:$0xff]  ;;  %v429_v5 = vld [vmem:[#allocation2 + $0x5b0] sm:$0xff] }
 0x113   : > { %1463 = vmatpush.msrb.mxu3 %v501_v25  ;;  %1432 = vmatpush.msrb.mxu1 %v812_v28  ;;  %v780_v52 = vld [vmem:[#allocation2 + $0x10a8] sm:$0xff]  ;;  %v605_v53 = vld [vmem:[#allocation2 + $0xb30] sm:$0xff] }
 0x114   : > { %1413 = vmatpush.msrb.mxu0 %v676_v27  ;;  %1445 = vmatpush.msrb.mxu2 %v357_v30  ;;  %v636_v56 = vld [vmem:[#allocation2 + $0xc28] sm:$0xff]  ;;  %v285_v7 = vld [vmem:[#allocation2 + $0x130] sm:$0xff] }
 0x115   : > { %1464 = vmatpush.msrb.mxu3 %v493_v31  ;;  %1379 = vmatmul.f32.vlgmr.msra.gmra.mxu2 %v2091_v46  ;;  %v772_v57 = vld [vmem:[#allocation2 + $0x1068] sm:$0xff]  ;;  %v421_v8 = vld [vmem:[#allocation2 + $0x570] sm:$0xff] }
 0x116   : > { %1414 = vmatpush.msrb.mxu0 %v668_v36  ;;  %1433 = vmatpush.msrb.mxu1 %v804_v37  ;;  %v764_v60 = vld [vmem:[#allocation2 + $0x1028] sm:$0xff]  ;;  %v597_v9 = vld [vmem:[#allocation2 + $0xaf0] sm:$0xff] }
 0x117   : > { %1446 = vmatpush.msrb.mxu2 %v349_v38  ;;  %1465 = vmatpush.msrb.mxu3 %v485_v39  ;;  %v733_v29 = vld [vmem:[#allocation2 + $0xf30] sm:$0xff]  ;;  %v374_v38 = vld [vmem:[#allocation2 + $0x3f8] sm:$0xff] }
 0x118   : > { %1415 = vmatpush.msrb.mxu0 %v660_v41  ;;  %1399 = vmatmul.f32.vlgmr.msra.gmra.mxu3 %v2080_v24  ;;  %v277_v11 = vld [vmem:[#allocation2 + $0xf0] sm:$0xff] }
 0x119   : > { %1434 = vmatpush.msrb.mxu1 %v796_v42  ;;  %1447 = vmatpush.msrb.mxu2 %v341_v43  ;;  %v413_v12 = vld [vmem:[#allocation2 + $0x530] sm:$0xff]  ;;  %v366_v43 = vld [vmem:[#allocation2 + $0x3b8] sm:$0xff] }
 0x11a   : > { %1466 = vmatpush.msrb.mxu3 %v477_v44  ;;  %1359 = vmatmul.f32.vlgmr.msra.gmra.mxu1 %v2083_v32  ;;  %v589_v13 = vld [vmem:[#allocation2 + $0xab0] sm:$0xff] }
 0x11b   : > { %1416 = vmatpush.msrb.mxu0 %v652_v47  ;;  %1435 = vmatpush.msrb.mxu1 %v788_v48  ;;  %v725_v14 = vld [vmem:[#allocation2 + $0xef0] sm:$0xff] }
 0x11c   : > { %1448 = vmatpush.msrb.mxu2 %v333_v49  ;;  %1467 = vmatpush.msrb.mxu3 %v469_v50  ;;  %v269_v15 = vld [vmem:[#allocation2 + $0xb0] sm:$0xff]  ;;  %v358_v49 = vld [vmem:[#allocation2 + $0x378] sm:$0xff] }
 0x11d   : > { %1417 = vmatpush.msrb.mxu0 %v644_v51  ;;  %1436 = vmatpush.msrb.mxu1 %v780_v52  ;;  %v405_v16 = vld [vmem:[#allocation2 + $0x4f0] sm:$0xff] }
 0x11e   : > { %1449 = vmatpush.msrb.mxu2 %v325_v54  ;;  %1468 = vmatpush.msrb.mxu3 %v461_v55  ;;  %v581_v17 = vld [vmem:[#allocation2 + $0xa70] sm:$0xff]  ;;  %v350_v54 = vld [vmem:[#allocation2 + $0x338] sm:$0xff] }
 0x11f   : > { %1418 = vmatpush.msrb.mxu0 %v636_v56  ;;  %1437 = vmatpush.msrb.mxu1 %v772_v57  ;;  %v717_v18 = vld [vmem:[#allocation2 + $0xeb0] sm:$0xff] }
 0x120   : > { %1450 = vmatpush.msrb.mxu2 %v317_v34  ;;  %1469 = vmatpush.msrb.mxu3 %v453_v58  ;;  %v261_v19 = vld [vmem:[#allocation2 + $0x70] sm:$0xff]  ;;  %v342_v34 = vld [vmem:[#allocation2 + $0x2f8] sm:$0xff] }
 0x121   : > { %1419 = vmatmul.f32.vlgmr.msrb.gmra.mxu0 %v2086_v33  ;;  %1438 = vmatpush.msrb.mxu1 %v764_v60  ;;  %v397_v20 = vld [vmem:[#allocation2 + $0x4b0] sm:$0xff] }
 0x122   : > { %1483 = vmatpush.msra.mxu0 %v629_v59  ;;  %1451 = vmatpush.msrb.mxu2 %v309_v61  ;;  %v573_v21 = vld [vmem:[#allocation2 + $0xa30] sm:$0xff] }
 0x123   : > { %1470 = vmatpush.msrb.mxu3 %v445_v62  ;;  %1801 = vmatmul.msk.f32.vlgmr.msrb.gmra.mxu1 %vm840_vm0, %v2094_v0  ;;  %v709_v22 = vld [vmem:[#allocation2 + $0xe70] sm:$0xff]  ;;  %v334_v62 = vld [vmem:[#allocation2 + $0x2b8] sm:$0xff] }
 0x124   : > { %1484 = vmatpush.msra.mxu0 %v621_v63  ;;  %1503 = vmatpush.msra.mxu1 %v757_v1  ;;  %v253_v23 = vld [vmem:[#allocation2 + $0x30] sm:$0xff] }
 0x125   : > { %1452 = vmatpush.msrb.mxu2 %v301_v35  ;;  %1471 = vmatpush.msrb.mxu3 %v437_v2  ;;  %v389_v25 = vld [vmem:[#allocation2 + $0x470] sm:$0xff]  ;;  %v326_v2 = vld [vmem:[#allocation2 + $0x278] sm:$0xff] }
 0x126   : > { %1485 = vmatpush.msra.mxu0 %v613_v3  ;;  %1504 = vmatpush.msra.mxu1 %v749_v4  ;;  %v565_v26 = vld [vmem:[#allocation2 + $0x9f0] sm:$0xff]  ;;  %v502_v4 = vld [vmem:[#allocation2 + $0x7f8] sm:$0xff] }
 0x127   : > { %1453 = vmatpush.msrb.mxu2 %v293_v40  ;;  %1472 = vmatpush.msrb.mxu3 %v429_v5  ;;  %v701_v27 = vld [vmem:[#allocation2 + $0xe30] sm:$0xff]  ;;  %v758_v40 = vld [vmem:[#allocation2 + $0xff8] sm:$0xff] }
 0x128   : > { %1486 = vmatpush.msra.mxu0 %v605_v53  ;;  %1505 = vmatpush.msra.mxu1 %v741_v6  ;;  %v821_v28 = vld [vmem:[#allocation2 + $0x11f0] sm:$0xff]  ;;  %v318_v53 = vld [vmem:[#allocation2 + $0x238] sm:$0xff] }
 0x129   : > { %1454 = vmatpush.msrb.mxu2 %v285_v7  ;;  %1473 = vmatpush.msrb.mxu3 %v421_v8  ;;  %v381_v30 = vld [vmem:[#allocation2 + $0x430] sm:$0xff]  ;;  %v1060_v59 = vpop.f32.mrf.mxu2  ;;  %v494_v6 = vld [vmem:[#allocation2 + $0x7b8] sm:$0xff] }
 0x12a   : > { %1487 = vmatpush.msra.mxu0 %v597_v9  ;;  %1506 = vmatpush.msra.mxu1 %v733_v29  ;;  %v557_v31 = vld [vmem:[#allocation2 + $0x9b0] sm:$0xff]  ;;  %v630_v8 = vld [vmem:[#allocation2 + $0xbf8] sm:$0xff] }
 0x12b   : > { %1455 = vmatpush.msrb.mxu2 %v277_v11  ;;  %1474 = vmatpush.msrb.mxu3 %v413_v12  ;;  %v693_v36 = vld [vmem:[#allocation2 + $0xdf0] sm:$0xff]  ;;  %v750_v9 = vld [vmem:[#allocation2 + $0xfb8] sm:$0xff] }
 0x12c   : > { %1488 = vmatpush.msra.mxu0 %v589_v13  ;;  %1507 = vmatpush.msra.mxu1 %v725_v14  ;;  %v813_v37 = vld [vmem:[#allocation2 + $0x11b0] sm:$0xff]  ;;  %v1080_v3 = vpop.f32.mrf.mxu3  ;;  %v310_v29 = vld [vmem:[#allocation2 + $0x1f8] sm:$0xff] }
 0x12d   : > { %1456 = vmatpush.msrb.mxu2 %v269_v15  ;;  %1475 = vmatpush.msrb.mxu3 %v405_v16  ;;  %v549_v39 = vld [vmem:[#allocation2 + $0x970] sm:$0xff]  ;;  %v486_v11 = vld [vmem:[#allocation2 + $0x778] sm:$0xff]  ;;  %v1081_v12 = vadd.f32 %v1080_v3, %v1060_v59 }
 0x12e   : > { %1489 = vmatpush.msra.mxu0 %v581_v17  ;;  %1508 = vmatpush.msra.mxu1 %v717_v18  ;;  %v685_v41 = vld [vmem:[#allocation2 + $0xdb0] sm:$0xff]  ;;  %v1100_v7 = vpop.f32.mrf.mxu0  ;;  %v622_v13 = vld [vmem:[#allocation2 + $0xbb8] sm:$0xff] }
 0x12f   : > { %1457 = vmatpush.msrb.mxu2 %v261_v19  ;;  %1476 = vmatpush.msrb.mxu3 %v397_v20  ;;  %v805_v42 = vld [vmem:[#allocation2 + $0x1170] sm:$0xff]  ;;  %v742_v14 = vld [vmem:[#allocation2 + $0xf78] sm:$0xff] }
 0x130   : > { %1490 = vmatpush.msra.mxu0 %v573_v21  ;;  %1509 = vmatpush.msra.mxu1 %v709_v22  ;;  %v541_v44 = vld [vmem:[#allocation2 + $0x930] sm:$0xff]  ;;  %v302_v17 = vld [vmem:[#allocation2 + $0x1b8] sm:$0xff] }
 0x131   : > { %1458 = vmatpush.msrb.mxu2 %v253_v23  ;;  %1477 = vmatpush.msrb.mxu3 %v389_v25  ;;  %v677_v47 = vld [vmem:[#allocation2 + $0xd70] sm:$0xff]  ;;  %v1120_v15 = vpop.f32.mrf.mxu1  ;;  %v478_v18 = vld [vmem:[#allocation2 + $0x738] sm:$0xff]  ;;  %v1101_v23 = vadd.f32 %v1100_v7, %v1081_v12 }
 0x132   : > { %1491 = vmatpush.msra.mxu0 %v565_v26  ;;  %1510 = vmatpush.msra.mxu1 %v701_v27  ;;  %v797_v48 = vld [vmem:[#allocation2 + $0x1130] sm:$0xff]  ;;  %v1140_v16 = vpop.f32.mrf.mxu2  ;;  %v614_v19 = vld [vmem:[#allocation2 + $0xb78] sm:$0xff] }
 0x133   : > { %1531 = vmatpush.msra.mxu2 %v821_v28  ;;  %1478 = vmatpush.msrb.mxu3 %v381_v30  ;;  %v533_v50 = vld [vmem:[#allocation2 + $0x8f0] sm:$0xff]  ;;  %v734_v20 = vld [vmem:[#allocation2 + $0xf38] sm:$0xff] }
 0x134   : > { %1492 = vmatpush.msra.mxu0 %v557_v31  ;;  %1511 = vmatpush.msra.mxu1 %v693_v36  ;;  %v669_v51 = vld [vmem:[#allocation2 + $0xd30] sm:$0xff]  ;;  %v294_v21 = vld [vmem:[#allocation2 + $0x178] sm:$0xff] }
 0x135   : > { %1532 = vmatpush.msra.mxu2 %v813_v37  ;;  %1543 = vmatpush.msra.mxu3 %v374_v38  ;;  %v789_v52 = vld [vmem:[#allocation2 + $0x10f0] sm:$0xff]  ;;  %v606_v25 = vld [vmem:[#allocation2 + $0xb38] sm:$0xff]  ;;  %v1121_v38 = vadd.f32 %v1120_v15, %v1101_v23 }
 0x136   : > { %1493 = vmatpush.msra.mxu0 %v549_v39  ;;  %1512 = vmatpush.msra.mxu1 %v685_v41  ;;  %v525_v55 = vld [vmem:[#allocation2 + $0x8b0] sm:$0xff]  ;;  %v470_v26 = vld [vmem:[#allocation2 + $0x6f8] sm:$0xff] }
 0x137   : > { %1533 = vmatpush.msra.mxu2 %v805_v42  ;;  %1544 = vmatpush.msra.mxu3 %v366_v43  ;;  %v661_v56 = vld [vmem:[#allocation2 + $0xcf0] sm:$0xff]  ;;  %v726_v27 = vld [vmem:[#allocation2 + $0xef8] sm:$0xff] }
 0x138   : > { %1494 = vmatpush.msra.mxu0 %v541_v44  ;;  %1513 = vmatpush.msra.mxu1 %v677_v47  ;;  %v781_v57 = vld [vmem:[#allocation2 + $0x10b0] sm:$0xff]  ;;  %v286_v28 = vld [vmem:[#allocation2 + $0x138] sm:$0xff] }
 0x139   : > { %1534 = vmatpush.msra.mxu2 %v797_v48  ;;  %1545 = vmatpush.msra.mxu3 %v358_v49  ;;  %v517_v58 = vld [vmem:[#allocation2 + $0x870] sm:$0xff]  ;;  %v462_v31 = vld [vmem:[#allocation2 + $0x6b8] sm:$0xff] }
 0x13a   : > { %1495 = vmatpush.msra.mxu0 %v533_v50  ;;  %1514 = vmatpush.msra.mxu1 %v669_v51  ;;  %v653_v60 = vld [vmem:[#allocation2 + $0xcb0] sm:$0xff]  ;;  %v598_v36 = vld [vmem:[#allocation2 + $0xaf8] sm:$0xff] }
 0x13b   : > { %1535 = vmatpush.msra.mxu2 %v789_v52  ;;  %1546 = vmatpush.msra.mxu3 %v350_v54  ;;  %v773_v61 = vld [vmem:[#allocation2 + $0x1070] sm:$0xff]  ;;  %v718_v39 = vld [vmem:[#allocation2 + $0xeb8] sm:$0xff]  ;;  %v1141_v54 = vadd.f32 %v1140_v16, %v1121_v38 }
 0x13c   : > { %1496 = vmatpush.msra.mxu0 %v525_v55  ;;  %1515 = vmatpush.msra.mxu1 %v661_v56  ;;  %v509_v63 = vld [vmem:[#allocation2 + $0x830] sm:$0xff]  ;;  %v278_v41 = vld [vmem:[#allocation2 + $0xf8] sm:$0xff] }
 0x13d   : > { %1536 = vmatpush.msra.mxu2 %v781_v57  ;;  %1547 = vmatpush.msra.mxu3 %v342_v34  ;;  %v645_v1 = vld [vmem:[#allocation2 + $0xc70] sm:$0xff]  ;;  %v454_v42 = vld [vmem:[#allocation2 + $0x678] sm:$0xff] }
 0x13e   : > { %1497 = vmatpush.msra.mxu0 %v517_v58  ;;  %1516 = vmatpush.msra.mxu1 %v653_v60  ;;  %v765_v35 = vld [vmem:[#allocation2 + $0x1030] sm:$0xff]  ;;  %v590_v43 = vld [vmem:[#allocation2 + $0xab8] sm:$0xff] }
 0x13f   : > { %1537 = vmatpush.msra.mxu2 %v773_v61  ;;  %1548 = vmatpush.msra.mxu3 %v334_v62  ;;  %v637_v5 = vld [vmem:[#allocation2 + $0xc30] sm:$0xff]  ;;  %v710_v48 = vld [vmem:[#allocation2 + $0xe78] sm:$0xff] }
 0x140   : > { %1459 = vmatmul.f32.vlgmr.msrb.gmra.mxu2 %v2083_v32  ;;  %1498 = vmatpush.msra.mxu0 %v509_v63  ;;  %v270_v49 = vld [vmem:[#allocation2 + $0xb8] sm:$0xff] }
 0x141   : > { %1517 = vmatpush.msra.mxu1 %v645_v1  ;;  %1538 = vmatpush.msra.mxu2 %v765_v35  ;;  %v446_v51 = vld [vmem:[#allocation2 + $0x638] sm:$0xff]  ;;  %v1651_v35 = vsub.f32 %v1141_v54, %v2089_v45 }
 0x142   : > { %1549 = vmatpush.msra.mxu3 %v326_v2  ;;  %1563 = vmatpush.msrb.mxu0 %v502_v4  ;;  %v582_v52 = vld [vmem:[#allocation2 + $0xa78] sm:$0xff] }
 0x143   : > { %1479 = vmatmul.f32.vlgmr.msrb.gmra.mxu3 %v2091_v46  ;;  %1603 = vmatpush.msrb.mxu2 %v758_v40  ;;  %v702_v55 = vld [vmem:[#allocation2 + $0xe38] sm:$0xff] }
 0x144   : > { %1518 = vmatpush.msra.mxu1 %v637_v5  ;;  %1550 = vmatpush.msra.mxu3 %v318_v53  ;;  %v262_v56 = vld [vmem:[#allocation2 + $0x78] sm:$0xff] }
 0x145   : > { %1564 = vmatpush.msrb.mxu0 %v494_v6  ;;  %1604 = vmatpush.msrb.mxu2 %v750_v9  ;;  %v438_v58 = vld [vmem:[#allocation2 + $0x5f8] sm:$0xff] }
 0x146   : > { %1583 = vmatpush.msrb.mxu1 %v630_v8  ;;  %1551 = vmatpush.msra.mxu3 %v310_v29  ;;  %v574_v59 = vld [vmem:[#allocation2 + $0xa38] sm:$0xff]  ;;  %v1665_v29 = vmul.f32 %v2100_v10, %v1651_v35 }
 0x147   : > { %1565 = vmatpush.msrb.mxu0 %v486_v11  ;;  %1605 = vmatpush.msrb.mxu2 %v742_v14  ;;  %v694_v60 = vld [vmem:[#allocation2 + $0xdf8] sm:$0xff] }
 0x148   : > { %1584 = vmatpush.msrb.mxu1 %v622_v13  ;;  %v1160_v22 = vpop.f32.mrf.mxu3  ;;  %1552 = vmatpush.msra.mxu3 %v302_v17  ;;  %v254_v61 = vld [vmem:[#allocation2 + $0x38] sm:$0xff] }
 0x149   : > { %1802 = vmatmul.msk.f32.vlgmr.msra.gmra.mxu2 %vm840_vm0, %v2094_v0  ;;  %1566 = vmatpush.msrb.mxu0 %v478_v18  ;;  %v430_v63 = vld [vmem:[#allocation2 + $0x5b8] sm:$0xff] }
 0x14a   : > { %1585 = vmatpush.msrb.mxu1 %v614_v19  ;;  %1606 = vmatpush.msrb.mxu2 %v734_v20  ;;  %v1180_v30 = vpop.f32.mrf.mxu0  ;;  %v566_v1 = vld [vmem:[#allocation2 + $0x9f8] sm:$0xff] }
 0x14b   : > { %1553 = vmatpush.msra.mxu3 %v294_v21  ;;  %1499 = vmatmul.f32.vlgmr.msra.gmra.mxu0 %v2080_v24  ;;  %v1181_v37 = vadd.f32 %v1180_v30, %v1160_v22  ;;  %v686_v2 = vld [vmem:[#allocation2 + $0xdb8] sm:$0xff] }
 0x14c   : > { %1586 = vmatpush.msrb.mxu1 %v606_v25  ;;  %1567 = vmatpush.msrb.mxu0 %v470_v26  ;;  %v822_v3 = vld [vmem:[#allocation2 + $0x11f8] sm:$0xff] }
 0x14d   : > { %1607 = vmatpush.msrb.mxu2 %v726_v27  ;;  %1554 = vmatpush.msra.mxu3 %v286_v28  ;;  %v1200_v44 = vpop.f32.mrf.mxu1  ;;  %v422_v40 = vld [vmem:[#allocation2 + $0x578] sm:$0xff] }
 0x14e   : > { %1519 = vmatmul.f32.vlgmr.msra.gmra.mxu1 %v2086_v33  ;;  %v1220_v47 = vpop.f32.mrf.mxu2  ;;  %1568 = vmatpush.msrb.mxu0 %v462_v31  ;;  %v1201_v50 = vadd.f32 %v1200_v44, %v1181_v37  ;;  %v558_v5 = vld [vmem:[#allocation2 + $0x9b8] sm:$0xff] }
 0x14f   : > { %1587 = vmatpush.msrb.mxu1 %v598_v36  ;;  %1608 = vmatpush.msrb.mxu2 %v718_v39  ;;  %v678_v53 = vld [vmem:[#allocation2 + $0xd78] sm:$0xff] }
 0x150   : > { %1555 = vmatpush.msra.mxu3 %v278_v41  ;;  %1569 = vmatpush.msrb.mxu0 %v454_v42  ;;  %v1221_v57 = vadd.f32 %v1220_v47, %v1201_v50  ;;  %v814_v6 = vld [vmem:[#allocation2 + $0x11b8] sm:$0xff] }
 0x151   : > { %1588 = vmatpush.msrb.mxu1 %v590_v43  ;;  %v1240_v34 = vpop.f32.mrf.mxu3  ;;  %1609 = vmatpush.msrb.mxu2 %v710_v48  ;;  %v414_v8 = vld [vmem:[#allocation2 + $0x538] sm:$0xff] }
 0x152   : > { %1556 = vmatpush.msra.mxu3 %v270_v49  ;;  %1570 = vmatpush.msrb.mxu0 %v446_v51  ;;  %v1241_v62 = vadd.f32 %v1240_v34, %v1221_v57  ;;  %v550_v9 = vld [vmem:[#allocation2 + $0x978] sm:$0xff] }
 0x153   : > { %1589 = vmatpush.msrb.mxu1 %v582_v52  ;;  %1610 = vmatpush.msrb.mxu2 %v702_v55  ;;  %v670_v11 = vld [vmem:[#allocation2 + $0xd38] sm:$0xff] }
 0x154   : > { %1557 = vmatpush.msra.mxu3 %v262_v56  ;;  %1571 = vmatpush.msrb.mxu0 %v438_v58  ;;  %v1652_v4 = vsub.f32 %v1241_v62, %v2089_v45  ;;  %v806_v12 = vld [vmem:[#allocation2 + $0x1178] sm:$0xff] }
 0x155   : > { %1590 = vmatpush.msrb.mxu1 %v574_v59  ;;  %1611 = vmatpush.msrb.mxu2 %v694_v60  ;;  %v406_v14 = vld [vmem:[#allocation2 + $0x4f8] sm:$0xff] }
 0x156   : > { %1558 = vmatpush.msra.mxu3 %v254_v61  ;;  %1572 = vmatpush.msrb.mxu0 %v430_v63  ;;  %v1666_v7 = vmul.f32 %v2100_v10, %v1652_v4  ;;  %v542_v15 = vld [vmem:[#allocation2 + $0x938] sm:$0xff] }
 0x157   : > { %1591 = vmatpush.msrb.mxu1 %v566_v1  ;;  %1612 = vmatpush.msrb.mxu2 %v686_v2  ;;  %v662_v16 = vld [vmem:[#allocation2 + $0xcf8] sm:$0xff] }
 0x158   : > { %1631 = vmatpush.msrb.mxu3 %v822_v3  ;;  %1573 = vmatpush.msrb.mxu0 %v422_v40  ;;  %v1680_v13 = vrot.slane %v1666_v7, 4  ;;  %v798_v17 = vld [vmem:[#allocation2 + $0x1138] sm:$0xff] }
 0x159   : > { %1592 = vmatpush.msrb.mxu1 %v558_v5  ;;  %1613 = vmatpush.msrb.mxu2 %v678_v53  ;;  %v398_v19 = vld [vmem:[#allocation2 + $0x4b8] sm:$0xff] }
 0x15a   : > { %1632 = vmatpush.msrb.mxu3 %v814_v6  ;;  %1574 = vmatpush.msrb.mxu0 %v414_v8  ;;  %v1685_v18 = vsel %vm1683_vm1, %v1665_v29, %v1680_v13  ;;  %v534_v20 = vld [vmem:[#allocation2 + $0x8f8] sm:$0xff] }
 0x15b   : > { %1593 = vmatpush.msrb.mxu1 %v550_v9  ;;  %1614 = vmatpush.msrb.mxu2 %v670_v11  ;;  %1693 = vst [vmem:[%s2107_s17 + $0x8] sm:$0x77] %v1685_v18  ;;  %v654_v21 = vld [vmem:[#allocation2 + $0xcb8] sm:$0xff] }
 0x15c   : > { %1633 = vmatpush.msrb.mxu3 %v806_v12  ;;  %1575 = vmatpush.msrb.mxu0 %v406_v14  ;;  %v790_v22 = vld [vmem:[#allocation2 + $0x10f8] sm:$0xff] }
 0x15d   : > { %1594 = vmatpush.msrb.mxu1 %v542_v15  ;;  %1615 = vmatpush.msrb.mxu2 %v662_v16  ;;  %v390_v23 = vld [vmem:[#allocation2 + $0x478] sm:$0xff] }
 0x15e   : > { %1634 = vmatpush.msrb.mxu3 %v798_v17  ;;  %1576 = vmatpush.msrb.mxu0 %v398_v19  ;;  %v526_v25 = vld [vmem:[#allocation2 + $0x8b8] sm:$0xff] }
 0x15f   : > { %1559 = vmatmul.f32.vlgmr.msra.gmra.mxu3 %v2083_v32  ;;  %v646_v26 = vld [vmem:[#allocation2 + $0xc78] sm:$0xff]  ;;  %1595 = vmatpush.msrb.mxu1 %v534_v20 }
 0x160   : > { %1616 = vmatpush.msrb.mxu2 %v654_v21  ;;  %v782_v27 = vld [vmem:[#allocation2 + $0x10b8] sm:$0xff]  ;;  %1635 = vmatpush.msrb.mxu3 %v790_v22 }
 0x161   : > { %v382_v28 = vld [vmem:[#allocation2 + $0x438] sm:$0xff]  ;;  %1577 = vmatpush.msrb.mxu0 %v390_v23  ;;  %1596 = vmatpush.msrb.mxu1 %v526_v25 }
 0x162   : > { %v518_v30 = vld [vmem:[#allocation2 + $0x878] sm:$0xff]  ;;  %1617 = vmatpush.msrb.mxu2 %v646_v26  ;;  %1636 = vmatpush.msrb.mxu3 %v782_v27 }
 0x163   : > { %v638_v31 = vld [vmem:[#allocation2 + $0xc38] sm:$0xff]  ;;  %1578 = vmatpush.msrb.mxu0 %v382_v28  ;;  %1597 = vmatpush.msrb.mxu1 %v518_v30 }
 0x164   : > { %v774_v36 = vld [vmem:[#allocation2 + $0x1078] sm:$0xff]  ;;  %1618 = vmatpush.msrb.mxu2 %v638_v31  ;;  %1579 = vmatmul.f32.vlgmr.msrb.gmra.mxu0 %v2091_v46 }
 0x165   : > { %v510_v37 = vld [vmem:[#allocation2 + $0x838] sm:$0xff]  ;;  %1637 = vmatpush.msrb.mxu3 %v774_v36  ;;  %1619 = vmatmul.f32.vlgmr.msrb.gmra.mxu2 %v2086_v33 }
 0x166   : > { %v766_v32 = vld [vmem:[#allocation2 + $0x1038] sm:$0xff]  ;;  %1598 = vmatpush.msrb.mxu1 %v510_v37 }
 0x167   : > { %1638 = vmatpush.msrb.mxu3 %v766_v32  ;;  %1599 = vmatmul.f32.vlgmr.msrb.gmra.mxu1 %v2080_v24 }
 0x168   : > { %1803 = vmatmul.msk.f32.vlgmr.msrb.gmra.mxu3 %vm840_vm0, %v2094_v0 }
 0x17a   : > { %v1260_v38 = vpop.f32.mrf.mxu0 }
 0x17d   : > { %v1280_v39 = vpop.f32.mrf.mxu1 }
 0x17e   : > { %v1300_v41 = vpop.f32.mrf.mxu2  ;;  %v1281_v42 = vadd.f32 %v1280_v39, %v1260_v38 }
 0x180   : > { %v1301_v47 = vadd.f32 %v1300_v41, %v1281_v42 }
 0x181   : > { %v1320_v43 = vpop.f32.mrf.mxu3 }
 0x182   : > { %v1321_v50 = vadd.f32 %v1320_v43, %v1301_v47 }
 0x184   : > { %v1340_v44 = vpop.f32.mrf.mxu0 }
 0x185   : > { %v1341_v24 = vadd.f32 %v1340_v44, %v1321_v50 }
 0x187   : > { %v1653_v0 = vsub.f32 %v1341_v24, %v2089_v45 }
 0x189   : > { %v1667_v58 = vmul.f32 %v2100_v10, %v1653_v0 }
 0x197   : > { %v1360_v48 = vpop.f32.mrf.mxu1 }
 0x198   : > { %v1380_v49 = vpop.f32.mrf.mxu2 }
 0x199   : > { %v1381_v46 = vadd.f32 %v1380_v49, %v1360_v48 }
 0x19b   : > { %v1400_v33 = vpop.f32.mrf.mxu3 }
 0x19c   : > { %v1401_v51 = vadd.f32 %v1400_v33, %v1381_v46 }
 0x19e   : > { %v1420_v52 = vpop.f32.mrf.mxu0 }
 0x19f   : > { %v1421_v54 = vadd.f32 %v1420_v52, %v1401_v51 }
 0x1a0   : > { %v1440_v55 = vpop.f32.mrf.mxu1 }
 0x1a1   : > { %v1441_v56 = vadd.f32 %v1440_v55, %v1421_v54 }
 0x1a3   : > { %v1654_v57 = vsub.f32 %v1441_v56, %v2089_v45 }
 0x1a5   : > { %v1668_v34 = vmul.f32 %v2100_v10, %v1654_v57 }
 0x1a7   : > { %v1681_v59 = vrot.slane %v1668_v34, 4 }
 0x1a9   : > { %v1686_v60 = vsel %vm1683_vm1, %v1667_v58, %v1681_v59 }
 0x1aa   : > { %1694 = vst [vmem:[%s2107_s17 + $0x10] sm:$0x77] %v1686_v60 }
 0x1c3   : > { %v1460_v61 = vpop.f32.mrf.mxu2 }
 0x1c6   : > { %v1480_v62 = vpop.f32.mrf.mxu3 }
 0x1c7   : > { %v1481_v35 = vadd.f32 %v1480_v62, %v1460_v61 }
 0x1c8   : > { %v1500_v63 = vpop.f32.mrf.mxu0 }
 0x1c9   : > { %v1501_v3 = vadd.f32 %v1500_v63, %v1481_v35 }
 0x1cb   : > { %v1520_v1 = vpop.f32.mrf.mxu1 }
 0x1cc   : > { %v1540_v2 = vpop.f32.mrf.mxu2  ;;  %v1521_v6 = vadd.f32 %v1520_v1, %v1501_v3 }
 0x1ce   : > { %v1541_v9 = vadd.f32 %v1540_v2, %v1521_v6 }
 0x1d0   : > { %v1655_v13 = vsub.f32 %v1541_v9, %v2089_v45 }
 0x1d2   : > { %v1669_v16 = vmul.f32 %v2100_v10, %v1655_v13 }
 0x1e1   : > { %v1580_v40 = vpop.f32.mrf.mxu0 }
 0x1e2   : > { %v1560_v4 = vpop.f32.mrf.mxu3 }
 0x1e3   : > { %v1581_v5 = vadd.f32 %v1580_v40, %v1560_v4 }
 0x1e4   : > { %v1600_v53 = vpop.f32.mrf.mxu1 }
 0x1e5   : > { %v1601_v7 = vadd.f32 %v1600_v53, %v1581_v5 }
 0x1e8   : > { %v1620_v8 = vpop.f32.mrf.mxu2 }
 0x1e9   : > { %v1621_v29 = vadd.f32 %v1620_v8, %v1601_v7 }
 0x1eb   : > { %v1640_v11 = vpop.f32.mrf.mxu3 }
 0x1ec   : > { %v1641_v12 = vadd.f32 %v1640_v11, %v1621_v29 }
 0x1ee   : > { %v1656_v14 = vsub.f32 %v1641_v12, %v2089_v45 }
 0x1f0   : > { %v1670_v15 = vmul.f32 %v2100_v10, %v1656_v14 }
 0x1f2   : > { %v1682_v17 = vrot.slane %v1670_v15, 4 }
 0x1f4   : > { %v1687_v18 = vsel %vm1683_vm1, %v1669_v16, %v1682_v17 }
 0x1f5   : > { %1695 = vst [vmem:[%s2107_s17 + $0x18] sm:$0x77] %v1687_v18 }
 0x1f6 PF: > { %s16_s15 = sadd.s32 1, %s1960_s15  }
 0x1f7   : > { %p13_p7 = scmp.ge.s32.totalorder %s16_s15, 4  }
 0x1f9   :  { %15 = sbr.rel (!%p13_p7) target bundleno = 2 (0x2), region = 81 }
 0x1fe   :  { %1717 = vsyncpa [#allocation3], 1 }
 0x1ff   :  { %1719 = vsyncpa [#allocation3 + $0x1], 1 }
 0x200   :  { %1720 = vsyncpa [#allocation5], 1 }

// kernel: foundation_backbone_forward.4
= control target key start
LH: loop header
LB: loop body
LE: loop exit
PB: predicated region body
PF: predicated region fallthrough
CT: control target
= control target key end

     0   :  { %s2369_s0 = inlined_call_operand.vmem [shape: f32[2,16,192], index: 0, kind: input, shape index: {}]   ;;  %s2370_s1 = inlined_call_operand.hbm [shape: f32[16,32], index: 1, kind: input, shape index: {}]   ;;  %s2371_s2 = inlined_call_operand.hbm [shape: f32[192,32], index: 2, kind: input, shape index: {}]   ;;  %s2372_s3 = inlined_call_operand.vmem [shape: f32[1,32], index: 3, kind: input, shape index: {}, may-alias: {3,5,7,9,11,13,15,19,21}]   ;;  %s2373_s4 = inlined_call_operand.vmem [shape: f32[1,32], index: 4, kind: input, shape index: {}, may-alias: {4,14,20}]   ;;  %s2374_s5 = inlined_call_operand.vmem [shape: f32[1,32], index: 5, kind: input, shape index: {}, may-alias: {3,5,7,9,11,13,15,19,21}]   ;;  %s2375_s6 = inlined_call_operand.hbm [shape: f32[32,32], index: 6, kind: input, shape index: {}]   ;;  %s2376_s7 = inlined_call_operand.vmem [shape: f32[1,32], index: 7, kind: input, shape index: {}, may-alias: {3,5,7,9,11,13,15,19,21}]   ;;  %s2377_s8 = inlined_call_operand.hbm [shape: f32[32,32], index: 8, kind: input, shape index: {}]   ;;  %s2378_s9 = inlined_call_operand.vmem [shape: f32[1,32], index: 9, kind: input, shape index: {}, may-alias: {3,5,7,9,11,13,15,19,21}]   ;;  %s2379_s10 = inlined_call_operand.hbm [shape: f32[32,32], index: 10, kind: input, shape index: {}]   ;;  %s2380_s11 = inlined_call_operand.vmem [shape: f32[1,32], index: 11, kind: input, shape index: {}, may-alias: {3,5,7,9,11,13,15,19,21}]   ;;  %s2381_s12 = inlined_call_operand.hbm [shape: f32[32,32], index: 12, kind: input, shape index: {}]   ;;  %s2382_s13 = inlined_call_operand.vmem [shape: f32[1,32], index: 13, kind: input, shape index: {}, may-alias: {3,5,7,9,11,13,15,19,21}]   ;;  %s2383_s14 = inlined_call_operand.vmem [shape: f32[1,32], index: 14, kind: input, shape index: {}, may-alias: {4,14,20}]   ;;  %s2384_s15 = inlined_call_operand.vmem [shape: f32[1,32], index: 15, kind: input, shape index: {}, may-alias: {3,5,7,9,11,13,15,19,21}]   ;;  %s2385_s16 = inlined_call_operand.hbm [shape: f32[32,128], index: 16, kind: input, shape index: {}]   ;;  %s2386_s17 = inlined_call_operand.vmem [shape: f32[1,128], index: 17, kind: input, shape index: {}]   ;;  %s2387_s18 = inlined_call_operand.hbm [shape: f32[128,32], index: 18, kind: input, shape index: {}]   ;;  %s2388_s19 = inlined_call_operand.vmem [shape: f32[1,32], index: 19, kind: input, shape index: {}, may-alias: {3,5,7,9,11,13,15,19,21}]   ;;  %s2389_s20 = inlined_call_operand.vmem [shape: f32[1,32], index: 20, kind: input, shape index: {}, may-alias: {4,14,20}]   ;;  %s2390_s21 = inlined_call_operand.vmem [shape: f32[1,32], index: 21, kind: input, shape index: {}, may-alias: {3,5,7,9,11,13,15,19,21}]   ;;  %s2391_s22 = inlined_call_operand.vmem [shape: f32[2,16,32], index: 22, kind: output, shape index: {}]  }
   0x1   :  { %2393 = sst [smem:[#allocation21_spill]] %s2369_s0 }
   0x2   :  { %2394 = sst [smem:[#allocation22_spill]] %s2370_s1 }
   0x3   :  { %2395 = sst [smem:[#allocation23_spill]] %s2371_s2 }
   0x4   :  { %2396 = sst [smem:[#allocation24_spill]] %s2372_s3 }
   0x5   :  { %2397 = sst [smem:[#allocation25_spill]] %s2373_s4 }
   0x6   :  { %2398 = sst [smem:[#allocation26_spill]] %s2374_s5 }
   0x7   :  { %2399 = sst [smem:[#allocation27_spill]] %s2375_s6 }
   0x8   :  { %2400 = sst [smem:[#allocation28_spill]] %s2377_s8 }
   0x9   :  { %2401 = sst [smem:[#allocation29_spill]] %s2381_s12 }
   0xa   :  { %2402 = sst [smem:[#allocation30_spill]] %s2391_s22 }
   0xb   :  { %27 = vsyncpa [#allocation3], 0 }
   0xc   :  { %28 = vsyncpa [#allocation5], 0 }
   0xd   :  { %29 = vsyncpa [#allocation8], 0 }
   0xe   :  { %30 = vsyncpa [#allocation11], 0 }
   0xf   :  { %31 = vsyncpa [#allocation14], 0  ;;  %s2133_s3 = smov 0  }
  0x10 LB: > { %2403 = sst [smem:[#allocation20_spill]] %s2005_s3  ;;  %s2139_s28 = sadd.s32 4294967295, %s2005_s3   ;;  %s2005_s3 = sphi %s2133_s3, %s37_s3  }
  0x11   : > { %p1547_p0 = scmp.ge.s32.totalorder %s2005_s3, 1  ;;  %p535_p1 = scmp.lt.s32.totalorder %s2005_s3, 3 }
  0x12   : > { %p1665_p2 = scmp.eq.s32.totalorder %s2139_s28, 0  ;;  %s2404_s4 = sld [smem:[#allocation23_spill]] }
  0x13   : > { %p2147_p3 = pnand %p1547_p0, %p535_p1  ;;  %s2406_s8 = sld [smem:[#allocation28_spill]] }
  0x14   : > { %s2007_s6 = smov [#allocation4]   ;;  %s2008_s2 = smov [#allocation7]  }
  0x15   : > { %p1640_p4 = pneg %p2147_p3  ;;  %s562_s25 = sshll.u32 %s2007_s6, 4  ;;  %s563_s25 = int_to_ptr.vmem [resolvable:$true] %s562_s25 }
  0x16   : > { %s602_s27 = sshll.u32 %s2008_s2, 4  ;;  %s2408_s12 = sld [smem:[#allocation29_spill]]  ;;  %s603_s27 = int_to_ptr.vmem [resolvable:$true] %s602_s27 }
  0x17   : > { %p2158_p5 = pnand %p1665_p2, %p1640_p4  ;;  %s2009_s1 = smov 128  }
  0x18   : > { %s560_s0 = sshll.u32 %s2404_s4, 4  ;;  %s2010_s5 = smov 8   ;;  %s561_s0 = int_to_ptr.hbm [resolvable:$true] %s560_s0 }
  0x19   : > { %s600_s24 = sshll.u32 %s2406_s8, 4  ;;  %s2011_s6 = smov [#allocation10]   ;;  %s601_s24 = int_to_ptr.hbm [resolvable:$true] %s600_s24 }
  0x1a   : > { %1646 = dma.hbm_to_vmem [thread:$0]  (!%p2158_p5), %s561_s0, 3072, %s563_s25, [#allocation5], %s2009_s1, %s2009_s1, %s2010_s5  }
  0x1b   : > { %1652 = dma.hbm_to_vmem [thread:$0]  (!%p2158_p5), %s601_s24, 512, %s603_s27, [#allocation8], %s2009_s1, %s2009_s1, %s2010_s5  }
  0x1c   : > { %s634_s4 = sshll.u32 %s2408_s12, 4  ;;  %s636_s2 = sshll.u32 %s2011_s6, 4  ;;  %s635_s4 = int_to_ptr.hbm [resolvable:$true] %s634_s4  ;;  %s637_s2 = int_to_ptr.vmem [resolvable:$true] %s636_s2 }
  0x1d   : > { %s2409_s30 = sld [smem:[#allocation22_spill]]  ;;  %s2012_s24 = smov [#allocation2]  }
  0x1e   : > { %1658 = dma.hbm_to_vmem [thread:$0]  (!%p2158_p5), %s635_s4, 512, %s637_s2, [#allocation11], %s2009_s1, %s2009_s1, %s2010_s5  }
  0x1f   : > { %s2410_s3 = sld [smem:[#allocation27_spill]]  ;;  %s548_s27 = sshll.u32 %s2012_s24, 4  ;;  %s549_s27 = int_to_ptr.vmem [resolvable:$true] %s548_s27 }
  0x20   : > { %s2013_s8 = smov [#allocation6]   ;;  %s617_s4 = sshll.u32 %s2379_s10, 4  ;;  %s618_s4 = int_to_ptr.hbm [resolvable:$true] %s617_s4 }
  0x21   : > { %s585_s6 = sshll.u32 %s2013_s8, 4  ;;  %s657_s0 = sshll.u32 %s2385_s16, 4  ;;  %s586_s6 = int_to_ptr.vmem [resolvable:$true] %s585_s6  ;;  %s658_s0 = int_to_ptr.hbm [resolvable:$true] %s657_s0 }
  0x22   : > { %s2015_s24 = smov [#allocation12]  }
  0x23   : > { %s546_s12 = sshll.u32 %s2409_s30, 4  ;;  %s547_s12 = int_to_ptr.hbm [resolvable:$true] %s546_s12 }
  0x24   : > { %1643 = dma.hbm_to_vmem [thread:$0]  (!%p2158_p5), %s547_s12, 256, %s549_s27, [#allocation3], %s2009_s1, %s2009_s1, %s2010_s5  }
  0x25   : > { %s583_s22 = sshll.u32 %s2410_s3, 4  ;;  %s2014_s12 = smov [#allocation9]   ;;  %s584_s22 = int_to_ptr.hbm [resolvable:$true] %s583_s22 }
  0x26   : > { %1649 = dma.hbm_to_vmem [thread:$0]  (!%p2158_p5), %s584_s22, 512, %s586_s6, [#allocation5], %s2009_s1, %s2009_s1, %s2010_s5  }
  0x27   : > { %s619_s25 = sshll.u32 %s2014_s12, 4  ;;  %s659_s27 = sshll.u32 %s2015_s24, 4  ;;  %s620_s25 = int_to_ptr.vmem [resolvable:$true] %s619_s25  ;;  %s660_s27 = int_to_ptr.vmem [resolvable:$true] %s659_s27 }
  0x28   : > { %1655 = dma.hbm_to_vmem [thread:$0]  (!%p2158_p5), %s618_s4, 512, %s620_s25, [#allocation8], %s2009_s1, %s2009_s1, %s2010_s5  }
  0x29   : > { %s674_s22 = sshll.u32 %s2387_s18, 4  ;;  %s2016_s6 = smov [#allocation13]   ;;  %s675_s22 = int_to_ptr.hbm [resolvable:$true] %s674_s22 }
  0x2a   : > { %1661 = dma.hbm_to_vmem [thread:$0]  (!%p2158_p5), %s658_s0, 512, %s660_s27, [#allocation11], %s2009_s1, %s2009_s1, %s2010_s5  }
  0x2b   : > { %s676_s30 = sshll.u32 %s2016_s6, 4  ;;  %709 = sbr.rel (%p2147_p3) target bundleno = 2120 (0x848), region = 108  ;;  %s677_s30 = int_to_ptr.vmem [resolvable:$true] %s676_s30 }
  0x2c   : > { %1664 = dma.hbm_to_vmem [thread:$0]  (!%p2158_p5), %s675_s22, 2048, %s677_s30, [#allocation14], %s2009_s1, %s2009_s1, %s2010_s5  }
  0x30   : > { %1984 = dma.done.wait (%p1665_p2), [#allocation3], 256  }
  0x31   : > { %1986 = vsyncadd (%p1665_p2), [#allocation3], 4294967040 }
  0x32   : > { %1988 = dma.done.wait (%p1665_p2), [#allocation5], 3584  }
  0x33   : > { %1990 = vsyncadd (%p1665_p2), [#allocation5], 4294963712 }
  0x34   : > { %1992 = dma.done.wait (%p1665_p2), [#allocation8], 1024  }
  0x35   : > { %1994 = vsyncadd (%p1665_p2), [#allocation8], 4294966272 }
  0x36   : > { %1996 = dma.done.wait (%p1665_p2), [#allocation11], 1024  }
  0x37   : > { %1998 = vsyncadd (%p1665_p2), [#allocation11], 4294966272 }
  0x38   : > { %2000 = dma.done.wait (%p1665_p2), [#allocation14], 2048  }
  0x39   : > { %2002 = vsyncadd (%p1665_p2), [#allocation14], 4294965248  ;;  %v836_v0 = vld [vmem:[#allocation4 + $0x78] sm:$0xff]  ;;  %v835_v1 = vld [vmem:[#allocation4 + $0x70] sm:$0xff]  ;;  %p807_p6 = scmp.lt.s32.totalorder %s2139_s28, 1  ;;  %s2411_s5 = sld [smem:[#allocation21_spill]] }
  0x3a   : > { %856 = vmatpush.msra.mxu0 %v836_v0  ;;  %v834_v2 = vld [vmem:[#allocation4 + $0x68] sm:$0xff]  ;;  %v844_v3 = vld [vmem:[#allocation4 + $0xb8] sm:$0xff]  ;;  %v833_v4 = vld [vmem:[#allocation4 + $0x60] sm:$0xff]  ;;  %vm849_vm0 = vcmask 523264   ;;  %s2412_s0 = sld [smem:[#allocation24_spill]]  ;;  %vm908_vm1 = vcmask 261120  }
  0x3b   : > { %887 = vmatpush.msra.mxu1 %v844_v3  ;;  %v843_v5 = vld [vmem:[#allocation4 + $0xb0] sm:$0xff]  ;;  %v842_v6 = vld [vmem:[#allocation4 + $0xa8] sm:$0xff]  ;;  %s2418_s28 = smov (!%p807_p6, %s2139_s28), 1  ;;  %v832_v7 = vld [vmem:[#allocation4 + $0x58] sm:$0xff]  ;;  %v2017_v43 = vmov 32.0   ;;  %s2413_s24 = sld [smem:[#allocation25_spill]] }
  0x3c   : > { %857 = vmatpush.msra.mxu0 %v835_v1  ;;  %v841_v8 = vld [vmem:[#allocation4 + $0xa0] sm:$0xff]  ;;  %v831_v9 = vld [vmem:[#allocation4 + $0x50] sm:$0xff]  ;;  %v830_v10 = vld [vmem:[#allocation4 + $0x48] sm:$0xff]  ;;  %s1590_s23 = sshll.u32 %s2418_s28, 5  ;;  %1713 = vrcp.f32 %v2017_v43  ;;  %s2414_s29 = sld [smem:[#allocation26_spill]]  ;;  %vm1106_vm9 = vcmask 130048  }
  0x3d   : > { %888 = vmatpush.msra.mxu1 %v843_v5  ;;  %v840_v11 = vld [vmem:[#allocation4 + $0x98] sm:$0xff]  ;;  %v839_v12 = vld [vmem:[#allocation4 + $0x90] sm:$0xff]  ;;  %v829_v13 = vld [vmem:[#allocation4 + $0x40] sm:$0xff]  ;;  %s1591_s6 = sshll.u32 %s2418_s28, 4 }
  0x3e   : > { %858 = vmatpush.msra.mxu0 %v834_v2  ;;  %v838_v14 = vld [vmem:[#allocation4 + $0x88] sm:$0xff]  ;;  %v828_v15 = vld [vmem:[#allocation4 + $0x38] sm:$0xff]  ;;  %v837_v16 = vld [vmem:[#allocation4 + $0x80] sm:$0xff] }
  0x3f   : > { %889 = vmatpush.msra.mxu1 %v842_v6  ;;  %s811_s4 = scalar_lea.vmem %s2411_s5, %s1590_s23  ;;  %v827_v17 = vld [vmem:[#allocation4 + $0x30] sm:$0xff]  ;;  %v826_v19 = vld [vmem:[#allocation4 + $0x28] sm:$0xff]  ;;  %v825_v20 = vld [vmem:[#allocation4 + $0x20] sm:$0xff]  ;;  %s2415_s5 = sld [smem:[#allocation30_spill]] }
  0x40   : > { %859 = vmatpush.msra.mxu0 %v833_v4  ;;  %v818_v18 = vld [vmem:[%s811_s4 + $0x8] sm:$0xff]  ;;  %v823_v22 = vld [vmem:[#allocation4 + $0x10] sm:$0xff]  ;;  %v820_v23 = vld [vmem:[%s811_s4 + $0x18] sm:$0xff] }
  0x41   : > { %890 = vmatpush.msra.mxu1 %v841_v8  ;;  %v824_v21 = vld [vmem:[#allocation4 + $0x18] sm:$0xff]  ;;  %v822_v24 = vld [vmem:[#allocation4 + $0x8] sm:$0xff]  ;;  %v821_v25 = vld [vmem:[#allocation4] sm:$0xff] }
  0x42   : > { %860 = vmatpush.msra.mxu0 %v832_v7  ;;  %v817_v26 = vld [vmem:[%s811_s4] sm:$0xff]  ;;  %v819_v27 = vld [vmem:[%s811_s4 + $0x10] sm:$0xff]  ;;  %v903_v39 = vld [vmem:[#allocation2 + $0x8] sm:$0xff]  ;;  %v1714_v44 = vpop.eup %1713 }
  0x43   : > { %891 = vmatpush.msra.mxu1 %v840_v11  ;;  %v1700_v28 = vld [vmem:[%s2412_s0] ss:$0 sm:$0xff]  ;;  %v916_v45 = vmul.f32 32.0, %v1714_v44  ;;  %vm920_vm2 = vweird.f32 %v1714_v44  ;;  %v973_v60 = vld [vmem:[#allocation6 + $0x18] sm:$0xff]  ;;  %v971_v0 = vld [vmem:[#allocation6 + $0x8] sm:$0xff] }
  0x44   : > { %861 = vmatpush.msra.mxu0 %v831_v9  ;;  %v902_v32 = vld [vmem:[#allocation2] sm:$0xff]  ;;  %v1010_v61 = vld [vmem:[#allocation7 + $0x18] sm:$0xff]  ;;  %996 = vmatpush.msra.mxu2 %v973_v60  ;;  %v1008_v1 = vld [vmem:[#allocation7 + $0x8] sm:$0xff] }
  0x45   : > { %892 = vmatpush.msra.mxu1 %v839_v12  ;;  %v917_v46 = vsub.f32 1.0, %v916_v45  ;;  %1027 = vmatpush.msra.mxu3 %v1010_v61  ;;  %v972_v62 = vld [vmem:[#allocation6 + $0x10] sm:$0xff]  ;;  %v970_v2 = vld [vmem:[#allocation6] sm:$0xff]  ;;  %v1041_v7 = vld [vmem:[#allocation9 + $0x18] sm:$0xff]  ;;  %s816_s4 = scalar_lea.vmem %s2415_s5, %s1591_s6 }
  0x46   : > { %862 = vmatpush.msra.mxu0 %v830_v10  ;;  %v1009_v63 = vld [vmem:[#allocation7 + $0x10] sm:$0xff]  ;;  %997 = vmatpush.msra.mxu2 %v972_v62  ;;  %v1007_v3 = vld [vmem:[#allocation7] sm:$0xff]  ;;  %v1039_v9 = vld [vmem:[#allocation9 + $0x8] sm:$0xff] }
  0x47   : > { %893 = vmatpush.msra.mxu1 %v838_v14  ;;  %v918_v47 = vmul.f32 %v1714_v44, %v917_v46  ;;  %1028 = vmatpush.msra.mxu3 %v1009_v63  ;;  %v1040_v8 = vld [vmem:[#allocation9 + $0x10] sm:$0xff]  ;;  %v1038_v12 = vld [vmem:[#allocation9] sm:$0xff] }
  0x48   : > { %863 = vmatpush.msra.mxu0 %v829_v13  ;;  %998 = vmatpush.msra.mxu2 %v971_v0 }
  0x49   : > { %894 = vmatpush.msra.mxu1 %v837_v16  ;;  %v919_v48 = vadd.f32 %v1714_v44, %v918_v47  ;;  %1029 = vmatpush.msra.mxu3 %v1008_v1 }
  0x4a   : > { %864 = vmatpush.msra.mxu0 %v828_v15  ;;  %1570 = vmatmul.msk.f32.vlgmr.msra.gmra.mxu1 %vm849_vm0, %v818_v18 }
  0x4b   : > { %v2261_v49 = vsel %vm920_vm2, %v1714_v44, %v919_v48  ;;  %999 = vmatpush.msra.mxu2 %v970_v2  ;;  %1030 = vmatpush.msra.mxu3 %v1007_v3  ;;  %v1703_v44 = vld [vmem:[%s2376_s7] ss:$0 sm:$0xff] }
  0x4c   : > { %865 = vmatpush.msra.mxu0 %v827_v17  ;;  %v1705_v48 = vld [vmem:[%s2380_s11] ss:$0 sm:$0xff] }
  0x4d   : > { %1058 = vmatpush.msrb.mxu2 %v1041_v7  ;;  %v1160_v7 = vld [vmem:[#allocation10 + $0x10] sm:$0xff] }
  0x4e   : > { %866 = vmatpush.msra.mxu0 %v826_v19 }
  0x4f   : > { %1059 = vmatpush.msrb.mxu2 %v1040_v8  ;;  %v1159_v8 = vld [vmem:[#allocation10 + $0x8] sm:$0xff] }
  0x50   : > { %867 = vmatpush.msra.mxu0 %v825_v20 }
  0x51   : > { %1060 = vmatpush.msrb.mxu2 %v1039_v9 }
  0x52   : > { %868 = vmatpush.msra.mxu0 %v824_v21  ;;  %1571 = vmatmul.msk.f32.gmra.mxu1 %vm849_vm0, %v820_v23 }
  0x53   : > { %1061 = vmatpush.msrb.mxu2 %v1038_v12 }
  0x54   : > { %869 = vmatpush.msra.mxu0 %v823_v22  ;;  %v1701_v22 = vld [vmem:[%s2413_s24] ss:$0 sm:$0xff] }
  0x56   : > { %870 = vmatpush.msra.mxu0 %v822_v24 }
  0x58   : > { %871 = vmatpush.msra.mxu0 %v821_v25 }
  0x59   : > { %872 = vmatmul.f32.vlgmr.msra.gmra.mxu0 %v817_v26  ;;  %v1702_v26 = vld [vmem:[%s2414_s29] ss:$0 sm:$0xff] }
  0x61   : > { %875 = vmatmul.f32.gmra.mxu0 %v819_v27 }
  0xc7   : > { %v896_v29 = vpop.f32.mrf.mxu1 }
  0xcf   : > { %v899_v37 = vpop.f32.mrf.mxu1 }
  0xd6   : > { %v873_v30 = vpop.f32.mrf.mxu0 }
  0xd7   : > { %v874_v31 = vadd.f32 %v1700_v28, %v873_v30 }
  0xd9   : > { %v897_v33 = vadd.f32 %v896_v29, %v874_v31 }
  0xdb   : > { %v2253_v34 = vadd.f32 %v902_v32, %v897_v33 }
  0xdd   : > { %v909_v35 = vsel %vm908_vm1, %v2253_v34, 0.0 }
  0xde   : > { %v876_v36 = vpop.f32.mrf.mxu0  ;;  %910 = vadd.xlane.f32.xlu0 %v909_v35 }
  0xdf   : > { %v877_v38 = vadd.f32 %v1700_v28, %v876_v36 }
  0xe1   : > { %v900_v40 = vadd.f32 %v899_v37, %v877_v38 }
  0xe3   : > { %v2257_v41 = vadd.f32 %v903_v39, %v900_v40  ;;  %v1704_v39 = vld [vmem:[%s2378_s9] ss:$0 sm:$0xff] }
  0xe5   : > { %v912_v42 = vsel %vm908_vm1, %v2257_v41, 0.0 }
  0xe6   : > { %913 = vadd.xlane.f32.xlu0 %v912_v42 }
 0x151   : > { %v911_v50 = vpop.xlane.xlu0 %910 }
 0x152   : > { %v922_v51 = vmul.f32 %v2261_v49, %v911_v50 }
 0x154   : > { %v924_v52 = vsub.f32 %v2253_v34, %v922_v51 }
 0x156   : > { %v926_v53 = vmul.f32 %v924_v52, %v924_v52 }
 0x158   : > { %v928_v54 = vsel %vm908_vm1, %v926_v53, 0.0 }
 0x159   : > { %929 = vadd.xlane.f32.xlu1 %v928_v54  ;;  %v914_v55 = vpop.xlane.xlu0 %913 }
 0x15a   : > { %v923_v56 = vmul.f32 %v2261_v49, %v914_v55 }
 0x15c   : > { %v2268_v57 = vsub.f32 %v2257_v41, %v923_v56 }
 0x15e   : > { %v927_v58 = vmul.f32 %v2268_v57, %v2268_v57 }
 0x160   : > { %v931_v59 = vsel %vm908_vm1, %v927_v58, 0.0 }
 0x161   : > { %932 = vadd.xlane.f32.xlu1 %v931_v59 }
 0x1cc   : > { %v930_v4 = vpop.xlane.xlu1 %929 }
 0x1cd   : > { %v934_v5 = vmul.f32 %v930_v4, %v2261_v49 }
 0x1cf   : > { %v936_v6 = vadd.f32 1e-06, %v934_v5 }
 0x1d1   : > { %1715 = vrsqrt.f32 %v936_v6  ;;  %vm944_vm4 = vweird.f32 %v936_v6 }
 0x1d4   : > { %v933_v10 = vpop.xlane.xlu1 %932 }
 0x1d5   : > { %v935_v11 = vmul.f32 %v933_v10, %v2261_v49 }
 0x1d7   : > { %v1716_v13 = vpop.eup %1715  ;;  %v937_v14 = vadd.f32 1e-06, %v935_v11 }
 0x1d8   : > { %v939_v15 = vmul.f32 %v1716_v13, %v936_v6  ;;  %vm945_vm3 = vweird.f32 %v1716_v13  ;;  %v1161_v6 = vld [vmem:[#allocation10 + $0x18] sm:$0xff] }
 0x1d9   : > { %1717 = vrsqrt.f32 %v937_v14  ;;  %vm946_vm5 = vmor %vm944_vm4, %vm945_vm3  ;;  %vm954_vm7 = vweird.f32 %v937_v14 }
 0x1da   : > { %v940_v16 = vmul.f32 %v1716_v13, %v939_v15  ;;  %v1158_v15 = vld [vmem:[#allocation10] sm:$0xff] }
 0x1dc   : > { %v941_v17 = vmul.f32 0.5, %v940_v16 }
 0x1de   : > { %v942_v18 = vsub.f32 1.5, %v941_v17 }
 0x1df   : > { %v1718_v19 = vpop.eup %1717 }
 0x1e0   : > { %v943_v20 = vmul.f32 %v1716_v13, %v942_v18  ;;  %v949_v21 = vmul.f32 %v1718_v19, %v937_v14  ;;  %vm955_vm6 = vweird.f32 %v1718_v19  ;;  %v1706_v18 = vld [vmem:[%s2382_s13] ss:$0 sm:$0xff] }
 0x1e1   : > { %vm956_vm8 = vmor %vm954_vm7, %vm955_vm6 }
 0x1e2   : > { %v947_v23 = vsel %vm946_vm5, %v1716_v13, %v943_v20  ;;  %v950_v24 = vmul.f32 %v1718_v19, %v949_v21 }
 0x1e3   : > { %v958_v25 = vmul.f32 %v947_v23, %v924_v52 }
 0x1e4   : > { %v951_v27 = vmul.f32 0.5, %v950_v24 }
 0x1e5   : > { %v963_v28 = vmul.f32 %v1701_v22, %v958_v25 }
 0x1e6   : > { %v952_v29 = vsub.f32 1.5, %v951_v27 }
 0x1e7   : > { %v968_v30 = vadd.f32 %v1702_v26, %v963_v28 }
 0x1e8   : > { %v953_v31 = vmul.f32 %v1718_v19, %v952_v29 }
 0x1e9   : > { %1572 = vmatmul.msk.f32.vlgmr.msra.gmra.mxu2 %vm908_vm1, %v968_v30  ;;  %1574 = vmatmul.msk.f32.vlgmr.msra.gmra.mxu3 %vm908_vm1, %v968_v30 }
 0x1ea   : > { %v957_v32 = vsel %vm956_vm8, %v1718_v19, %v953_v31  ;;  %1184 = vmatpush.msra.mxu2 %v1161_v6 }
 0x1eb   : > { %v959_v33 = vmul.f32 %v957_v32, %v2268_v57 }
 0x1ec   : > { %1185 = vmatpush.msra.mxu2 %v1160_v7 }
 0x1ed   : > { %v964_v35 = vmul.f32 %v1701_v22, %v959_v33 }
 0x1ee   : > { %1186 = vmatpush.msra.mxu2 %v1159_v8 }
 0x1ef   : > { %v969_v36 = vadd.f32 %v1702_v26, %v964_v35 }
 0x1f0   : > { %1187 = vmatpush.msra.mxu2 %v1158_v15  ;;  %v1314_v15 = vld [vmem:[#allocation13 + $0x30] sm:$0xff] }
 0x1f1   : > { %1573 = vmatmul.msk.f32.gmra.mxu2 %vm908_vm1, %v969_v36  ;;  %1575 = vmatmul.msk.f32.gmra.mxu3 %vm908_vm1, %v969_v36 }
 0x1f9   : > { %1576 = vmatmul.msk.f32.vlgmr.msrb.gmra.mxu2 %vm908_vm1, %v968_v30 }
 0x201   : > { %1577 = vmatmul.msk.f32.gmra.mxu2 %vm908_vm1, %v969_v36  ;;  %v1256_v36 = vld [vmem:[#allocation12 + $0x18] sm:$0xff] }
 0x26c   : > { %v1001_v37 = vpop.f32.mrf.mxu2  ;;  %v1032_v38 = vpop.f32.mrf.mxu3 }
 0x26d   : > { %v1033_v45 = vadd.f32 %v1704_v39, %v1032_v38  ;;  %v1002_v46 = vadd.f32 %v1703_v44, %v1001_v37  ;;  %v1255_v37 = vld [vmem:[#allocation12 + $0x10] sm:$0xff]  ;;  %v1254_v38 = vld [vmem:[#allocation12 + $0x8] sm:$0xff] }
 0x274   : > { %v1004_v40 = vpop.f32.mrf.mxu2  ;;  %v1035_v42 = vpop.f32.mrf.mxu3 }
 0x275   : > { %v1036_v43 = vadd.f32 %v1704_v39, %v1035_v42  ;;  %v1005_v50 = vadd.f32 %v1703_v44, %v1004_v40  ;;  %v1253_v39 = vld [vmem:[#allocation12] sm:$0xff]  ;;  %v1323_v44 = vld [vmem:[#allocation13 + $0x78] sm:$0xff] }
 0x276   : > { %1328 = vmatpush.msrb.mxu0 %v1323_v44 }
 0x277   : > { %1578 = vmatpush.xpose.msk.msrb.mxu3 %vm908_vm1, %v1036_v43 }
 0x27b   : > { %1579 = vmatpush.xpose.msk.msrb.mxu3 %vm908_vm1, %v1033_v45  ;;  %v1322_v45 = vld [vmem:[#allocation13 + $0x70] sm:$0xff] }
 0x27c   : > { %v1063_v47 = vpop.f32.mrf.mxu2  ;;  %1329 = vmatpush.msrb.mxu0 %v1322_v45 }
 0x27d   : > { %v1064_v53 = vadd.f32 %v1705_v48, %v1063_v47 }
 0x27e   : > { %1580 = vmatmul.msk.f32.vlgmr.msrb.gmra.mxu3 %vm908_vm1, %v1002_v46  ;;  %v1321_v46 = vld [vmem:[#allocation13 + $0x68] sm:$0xff] }
 0x27f   : > { %1279 = vmatpush.msra.mxu3 %v1256_v36  ;;  %1330 = vmatpush.msrb.mxu0 %v1321_v46 }
 0x281   : > { %1280 = vmatpush.msra.mxu3 %v1255_v37 }
 0x283   : > { %1281 = vmatpush.msra.mxu3 %v1254_v38 }
 0x284   : > { %v1066_v51 = vpop.f32.mrf.mxu2 }
 0x285   : > { %v1067_v52 = vadd.f32 %v1705_v48, %v1066_v51  ;;  %1282 = vmatpush.msra.mxu3 %v1253_v39 }
 0x286   : > { %1581 = vmatmul.msk.f32.gmra.mxu3 %vm908_vm1, %v1005_v50 }
 0x287   : > { %1149 = vmatpush.msrb.mxu1 %v1067_v52 }
 0x289   : > { %1150 = vmatpush.msrb.mxu1 %v1064_v53 }
 0x28b   : > { %1592 = vmatpush.msra.mxu1 %v1323_v44 }
 0x28d   : > { %1593 = vmatpush.msra.mxu1 %v1322_v45 }
 0x28f   : > { %1594 = vmatpush.msra.mxu1 %v1321_v46 }
 0x301   : > { %v1098_v54 = vpop.f32.mrf.mxu3 }
 0x302   : > { %v1104_v55 = vmul.f32 0.17677669, %v1098_v54 }
 0x304   : > { %v1107_v56 = vsel %vm1106_vm9, %v1104_v55, -inf }
 0x305   : > { %1108 = vmax.xlane.f32.xlu2 %v1107_v56 }
 0x309   : > { %v1101_v57 = vpop.f32.mrf.mxu3 }
 0x30a   : > { %v1105_v58 = vmul.f32 0.17677669, %v1101_v57 }
 0x30c   : > { %v1110_v59 = vsel %vm1106_vm9, %v1105_v58, -inf }
 0x30d   : > { %1111 = vmax.xlane.f32.xlu2 %v1110_v59  ;;  %v1707_v59 = vld [vmem:[%s2383_s14] ss:$0 sm:$0xff] }
 0x378   : > { %v1109_v60 = vpop.xlane.xlu2 %1108 }
 0x379   : > { %v1113_v61 = vsub.f32 %v1104_v55, %v1109_v60 }
 0x37b   : > { %v1115_v62 = vmul.f32 1.442695, %v1113_v61 }
 0x37d   : > { %1719 = vpow2.f32 %v1115_v62 }
 0x380   : > { %v1112_v63 = vpop.xlane.xlu2 %1111 }
 0x381   : > { %v1114_v0 = vsub.f32 %v1105_v58, %v1112_v63  ;;  %v1708_v63 = vld [vmem:[%s2384_s15] ss:$0 sm:$0xff] }
 0x383   : > { %v1720_v1 = vpop.eup %1719  ;;  %v1117_v2 = vmul.f32 1.442695, %v1114_v0 }
 0x384   : > { %v1119_v3 = vsel %vm1106_vm9, %v1720_v1, 0.0 }
 0x385   : > { %1721 = vpow2.f32 %v1117_v2  ;;  %1120 = vadd.xlane.f32.xlu0 %v1119_v3 }
 0x38b   : > { %v1722_v4 = vpop.eup %1721 }
 0x38c   : > { %v1122_v5 = vsel %vm1106_vm9, %v1722_v4, 0.0 }
 0x38d   : > { %1123 = vadd.xlane.f32.xlu1 %v1122_v5 }
 0x3f8   : > { %v1121_v9 = vpop.xlane.xlu0 %1120 }
 0x3f9   : > { %1723 = vrcp.f32 %v1121_v9  ;;  %v1320_v9 = vld [vmem:[#allocation13 + $0x60] sm:$0xff] }
 0x3fa   : > { %1331 = vmatpush.msrb.mxu0 %v1320_v9  ;;  %1595 = vmatpush.msra.mxu1 %v1320_v9 }
 0x3ff   : > { %v1724_v10 = vpop.eup %1723 }
 0x400   : > { %v1124_v11 = vpop.xlane.xlu1 %1123  ;;  %v1127_v12 = vmul.f32 %v1724_v10, %v1720_v1  ;;  %v1319_v10 = vld [vmem:[#allocation13 + $0x58] sm:$0xff] }
 0x401   : > { %1725 = vrcp.f32 %v1124_v11  ;;  %1332 = vmatpush.msrb.mxu0 %v1319_v10  ;;  %1596 = vmatpush.msra.mxu1 %v1319_v10  ;;  %v1318_v11 = vld [vmem:[#allocation13 + $0x50] sm:$0xff] }
 0x402   : > { %1582 = vmatmul.msk.f32.vlgmr.msrb.gmra.mxu1 %vm1106_vm9, %v1127_v12  ;;  %v1317_v12 = vld [vmem:[#allocation13 + $0x48] sm:$0xff] }
 0x403   : > { %1333 = vmatpush.msrb.mxu0 %v1318_v11  ;;  %1597 = vmatpush.msra.mxu1 %v1318_v11 }
 0x405   : > { %1334 = vmatpush.msrb.mxu0 %v1317_v12  ;;  %1598 = vmatpush.msra.mxu1 %v1317_v12 }
 0x407   : > { %v1726_v13 = vpop.eup %1725 }
 0x408   : > { %v1128_v14 = vmul.f32 %v1726_v13, %v1722_v4  ;;  %v1316_v13 = vld [vmem:[#allocation13 + $0x40] sm:$0xff] }
 0x409   : > { %1335 = vmatpush.msrb.mxu0 %v1316_v13  ;;  %1599 = vmatpush.msra.mxu1 %v1316_v13 }
 0x40a   : > { %1583 = vmatmul.msk.f32.gmra.mxu1 %vm1106_vm9, %v1128_v14  ;;  %v1315_v14 = vld [vmem:[#allocation13 + $0x38] sm:$0xff] }
 0x40b   : > { %1336 = vmatpush.msrb.mxu0 %v1315_v14  ;;  %1600 = vmatpush.msra.mxu1 %v1315_v14 }
 0x40d   : > { %1337 = vmatpush.msrb.mxu0 %v1314_v15  ;;  %1601 = vmatpush.msra.mxu1 %v1314_v15  ;;  %v1711_v15 = vld [vmem:[%s2389_s20] ss:$0 sm:$0xff] }
 0x47f   : > { %v1152_v16 = vpop.f32.mrf.mxu1 }
 0x480   : > { %1584 = vmatmul.msk.f32.vlgmr.msra.gmra.mxu2 %vm908_vm1, %v1152_v16  ;;  %v1313_v16 = vld [vmem:[#allocation13 + $0x28] sm:$0xff] }
 0x481   : > { %1338 = vmatpush.msrb.mxu0 %v1313_v16  ;;  %1602 = vmatpush.msra.mxu1 %v1313_v16 }
 0x487   : > { %v1155_v17 = vpop.f32.mrf.mxu1 }
 0x488   : > { %1585 = vmatmul.msk.f32.gmra.mxu2 %vm908_vm1, %v1155_v17  ;;  %v1312_v17 = vld [vmem:[#allocation13 + $0x20] sm:$0xff] }
 0x489   : > { %1339 = vmatpush.msrb.mxu0 %v1312_v17  ;;  %1603 = vmatpush.msra.mxu1 %v1312_v17  ;;  %v1712_v17 = vld [vmem:[%s2390_s21] ss:$0 sm:$0xff] }
 0x503   : > { %v1189_v19 = vpop.f32.mrf.mxu2 }
 0x504   : > { %v1190_v20 = vadd.f32 %v1706_v18, %v1189_v19  ;;  %v1310_v19 = vld [vmem:[#allocation13 + $0x10] sm:$0xff] }
 0x506   : > { %v2313_v21 = vadd.f32 %v1190_v20, %v2253_v34  ;;  %v1309_v20 = vld [vmem:[#allocation13 + $0x8] sm:$0xff] }
 0x508   : > { %v1199_v22 = vsel %vm908_vm1, %v2313_v21, 0.0 }
 0x509   : > { %1200 = vadd.xlane.f32.xlu2 %v1199_v22  ;;  %v1308_v22 = vld [vmem:[#allocation13] sm:$0xff] }
 0x50b   : > { %v1192_v23 = vpop.f32.mrf.mxu2 }
 0x50c   : > { %v1193_v24 = vadd.f32 %v1706_v18, %v1192_v23  ;;  %v1311_v18 = vld [vmem:[#allocation13 + $0x18] sm:$0xff]  ;;  %v1709_v23 = vld [vmem:[%s2386_s17] ss:$0 sm:$0xff] }
 0x50d   : > { %1340 = vmatpush.msrb.mxu0 %v1311_v18  ;;  %1604 = vmatpush.msra.mxu1 %v1311_v18 }
 0x50e   : > { %v2318_v25 = vadd.f32 %v1193_v24, %v2257_v41 }
 0x50f   : > { %1341 = vmatpush.msrb.mxu0 %v1310_v19  ;;  %1605 = vmatpush.msra.mxu1 %v1310_v19 }
 0x510   : > { %v1202_v26 = vsel %vm908_vm1, %v2318_v25, 0.0 }
 0x511   : > { %1203 = vadd.xlane.f32.xlu0 %v1202_v26  ;;  %1342 = vmatpush.msrb.mxu0 %v1309_v20 }
 0x512   : > { %1606 = vmatpush.msra.mxu1 %v1309_v20 }
 0x513   : > { %1343 = vmatpush.msrb.mxu0 %v1308_v22 }
 0x514   : > { %1607 = vmatpush.msra.mxu1 %v1308_v22 }
 0x57c   : > { %v1201_v27 = vpop.xlane.xlu2 %1200 }
 0x57d   : > { %v1205_v28 = vmul.f32 %v1201_v27, %v2261_v49 }
 0x57f   : > { %v1207_v29 = vsub.f32 %v2313_v21, %v1205_v28 }
 0x581   : > { %v1209_v34 = vmul.f32 %v1207_v29, %v1207_v29 }
 0x583   : > { %v1211_v30 = vsel %vm908_vm1, %v1209_v34, 0.0 }
 0x584   : > { %v1204_v31 = vpop.xlane.xlu0 %1203  ;;  %1212 = vadd.xlane.f32.xlu1 %v1211_v30 }
 0x585   : > { %v1206_v32 = vmul.f32 %v1204_v31, %v2261_v49 }
 0x587   : > { %v1208_v33 = vsub.f32 %v2318_v25, %v1206_v32 }
 0x589   : > { %v1210_v41 = vmul.f32 %v1208_v33, %v1208_v33 }
 0x58b   : > { %v1214_v35 = vsel %vm908_vm1, %v1210_v41, 0.0 }
 0x58c   : > { %1215 = vadd.xlane.f32.xlu2 %v1214_v35 }
 0x5f7   : > { %v1213_v40 = vpop.xlane.xlu1 %1212 }
 0x5f8   : > { %v1217_v42 = vmul.f32 %v1213_v40, %v2261_v49 }
 0x5fa   : > { %v1219_v43 = vadd.f32 1e-06, %v1217_v42 }
 0x5fc   : > { %1727 = vrsqrt.f32 %v1219_v43  ;;  %vm1227_vm11 = vweird.f32 %v1219_v43 }
 0x5ff   : > { %v1216_v47 = vpop.xlane.xlu2 %1215 }
 0x600   : > { %v1218_v48 = vmul.f32 %v1216_v47, %v2261_v49  ;;  %v1710_v47 = vld [vmem:[%s2388_s19] ss:$0 sm:$0xff] }
 0x602   : > { %v1728_v50 = vpop.eup %1727  ;;  %v1220_v51 = vadd.f32 1e-06, %v1218_v48 }
 0x603   : > { %v1222_v52 = vmul.f32 %v1728_v50, %v1219_v43  ;;  %vm1228_vm10 = vweird.f32 %v1728_v50 }
 0x604   : > { %1729 = vrsqrt.f32 %v1220_v51  ;;  %vm1229_vm12 = vmor %vm1227_vm11, %vm1228_vm10  ;;  %vm1237_vm14 = vweird.f32 %v1220_v51 }
 0x605   : > { %v1223_v53 = vmul.f32 %v1728_v50, %v1222_v52 }
 0x607   : > { %v1224_v54 = vmul.f32 0.5, %v1223_v53 }
 0x609   : > { %v1225_v55 = vsub.f32 1.5, %v1224_v54 }
 0x60a   : > { %v1730_v56 = vpop.eup %1729 }
 0x60b   : > { %v1226_v57 = vmul.f32 %v1728_v50, %v1225_v55  ;;  %v1232_v58 = vmul.f32 %v1730_v56, %v1220_v51  ;;  %vm1238_vm13 = vweird.f32 %v1730_v56 }
 0x60c   : > { %vm1239_vm15 = vmor %vm1237_vm14, %vm1238_vm13 }
 0x60d   : > { %v1230_v60 = vsel %vm1229_vm12, %v1728_v50, %v1226_v57  ;;  %v1233_v61 = vmul.f32 %v1730_v56, %v1232_v58 }
 0x60e   : > { %v1241_v62 = vmul.f32 %v1230_v60, %v1207_v29 }
 0x60f   : > { %v1234_v0 = vmul.f32 0.5, %v1233_v61 }
 0x610   : > { %v1246_v1 = vmul.f32 %v1707_v59, %v1241_v62 }
 0x611   : > { %v1235_v2 = vsub.f32 1.5, %v1234_v0 }
 0x612   : > { %v1251_v3 = vadd.f32 %v1708_v63, %v1246_v1 }
 0x613   : > { %v1236_v4 = vmul.f32 %v1730_v56, %v1235_v2 }
 0x614   : > { %1586 = vmatmul.msk.f32.vlgmr.msra.gmra.mxu3 %vm908_vm1, %v1251_v3 }
 0x615   : > { %v1240_v5 = vsel %vm1239_vm15, %v1730_v56, %v1236_v4 }
 0x616   : > { %v1242_v6 = vmul.f32 %v1240_v5, %v1208_v33 }
 0x618   : > { %v1247_v7 = vmul.f32 %v1707_v59, %v1242_v6 }
 0x61a   : > { %v1252_v8 = vadd.f32 %v1708_v63, %v1247_v7 }
 0x61c   : > { %1587 = vmatmul.msk.f32.gmra.mxu3 %vm908_vm1, %v1252_v8 }
 0x697   : > { %v1284_v24 = vpop.f32.mrf.mxu3 }
 0x698   : > { %v1285_v26 = vadd.f32 %v1709_v23, %v1284_v24 }
 0x69a   : > { %v1290_v27 = vmul.f32 %v1285_v26, %v1285_v26 }
 0x69c   : > { %v1292_v28 = vmul.f32 %v1290_v27, %v1285_v26 }
 0x69e   : > { %v1294_v29 = vmul.f32 0.044715, %v1292_v28 }
 0x69f   : > { %v1287_v34 = vpop.f32.mrf.mxu3 }
 0x6a0   : > { %v1296_v30 = vadd.f32 %v1294_v29, %v1285_v26  ;;  %v1288_v31 = vadd.f32 %v1709_v23, %v1287_v34 }
 0x6a2   : > { %v1291_v32 = vmul.f32 %v1288_v31, %v1288_v31  ;;  %v1298_v33 = vmul.f32 0.7978846, %v1296_v30 }
 0x6a4   : > { %v1293_v41 = vmul.f32 %v1291_v32, %v1288_v31  ;;  %1731 = vtanh.f32 %v1298_v33 }
 0x6a6   : > { %v1295_v35 = vmul.f32 0.044715, %v1293_v41 }
 0x6a8   : > { %v1297_v36 = vadd.f32 %v1295_v35, %v1288_v31 }
 0x6aa   : > { %v1732_v37 = vpop.eup %1731  ;;  %v1299_v38 = vmul.f32 0.7978846, %v1297_v36 }
 0x6ab   : > { %v1302_v39 = vadd.f32 1.0, %v1732_v37 }
 0x6ac   : > { %1733 = vtanh.f32 %v1299_v38 }
 0x6ad   : > { %v1304_v40 = vmul.f32 0.5, %v1302_v39 }
 0x6af   : > { %v1306_v42 = vmul.f32 %v1304_v40, %v1285_v26 }
 0x6b1   : > { %1344 = vmatmul.f32.vlgmr.msrb.gmra.mxu0 %v1306_v42 }
 0x6b2   : > { %v1734_v43 = vpop.eup %1733 }
 0x6b3   : > { %v1303_v44 = vadd.f32 1.0, %v1734_v43 }
 0x6b5   : > { %v1305_v45 = vmul.f32 0.5, %v1303_v44 }
 0x6b7   : > { %v1307_v46 = vmul.f32 %v1305_v45, %v1288_v31 }
 0x6b9   : > { %1347 = vmatmul.f32.vlgmr.msra.gmra.mxu1 %v1307_v46 }
 0x72e   : > { %v1345_v48 = vpop.f32.mrf.mxu0 }
 0x72f   : > { %v1346_v50 = vadd.f32 %v1710_v47, %v1345_v48 }
 0x731   : > { %v1351_v51 = vadd.f32 %v1346_v50, %v2313_v21 }
 0x733   : > { %v1355_v52 = vsel %vm908_vm1, %v1351_v51, 0.0 }
 0x734   : > { %1356 = vadd.xlane.f32.xlu0 %v1355_v52 }
 0x736   : > { %v1348_v53 = vpop.f32.mrf.mxu1 }
 0x737   : > { %v1349_v54 = vadd.f32 %v1710_v47, %v1348_v53 }
 0x739   : > { %v1352_v55 = vadd.f32 %v1349_v54, %v2318_v25 }
 0x73b   : > { %v1358_v56 = vsel %vm908_vm1, %v1352_v55, 0.0 }
 0x73c   : > { %1359 = vadd.xlane.f32.xlu1 %v1358_v56 }
 0x7a7   : > { %v1357_v57 = vpop.xlane.xlu0 %1356 }
 0x7a8   : > { %v1361_v58 = vmul.f32 %v1357_v57, %v2261_v49 }
 0x7aa   : > { %v1363_v59 = vsub.f32 %v1351_v51, %v1361_v58 }
 0x7ac   : > { %v1365_v60 = vmul.f32 %v1363_v59, %v1363_v59 }
 0x7ae   : > { %v1367_v61 = vsel %vm908_vm1, %v1365_v60, 0.0 }
 0x7af   : > { %1368 = vadd.xlane.f32.xlu2 %v1367_v61  ;;  %v1360_v62 = vpop.xlane.xlu1 %1359 }
 0x7b0   : > { %v1362_v21 = vmul.f32 %v1360_v62, %v2261_v49 }
 0x7b2   : > { %v1364_v63 = vsub.f32 %v1352_v55, %v1362_v21 }
 0x7b4   : > { %v1366_v0 = vmul.f32 %v1364_v63, %v1364_v63 }
 0x7b6   : > { %v1370_v1 = vsel %vm908_vm1, %v1366_v0, 0.0 }
 0x7b7   : > { %1371 = vadd.xlane.f32.xlu0 %v1370_v1 }
 0x822   : > { %v1369_v25 = vpop.xlane.xlu2 %1368 }
 0x823   : > { %v1373_v2 = vmul.f32 %v1369_v25, %v2261_v49 }
 0x825   : > { %v1375_v3 = vadd.f32 1e-06, %v1373_v2 }
 0x827   : > { %1735 = vrsqrt.f32 %v1375_v3  ;;  %vm1383_vm2 = vweird.f32 %v1375_v3 }
 0x82a   : > { %v1372_v4 = vpop.xlane.xlu0 %1371 }
 0x82b   : > { %v1374_v5 = vmul.f32 %v1372_v4, %v2261_v49 }
 0x82d   : > { %v1736_v6 = vpop.eup %1735  ;;  %v1376_v7 = vadd.f32 1e-06, %v1374_v5 }
 0x82e   : > { %v1378_v8 = vmul.f32 %v1736_v6, %v1375_v3  ;;  %vm1384_vm0 = vweird.f32 %v1736_v6 }
 0x82f   : > { %1737 = vrsqrt.f32 %v1376_v7  ;;  %vm1385_vm3 = vmor %vm1383_vm2, %vm1384_vm0  ;;  %vm1393_vm5 = vweird.f32 %v1376_v7 }
 0x830   : > { %v1379_v9 = vmul.f32 %v1736_v6, %v1378_v8 }
 0x832   : > { %v1380_v10 = vmul.f32 0.5, %v1379_v9 }
 0x834   : > { %v1381_v11 = vsub.f32 1.5, %v1380_v10 }
 0x835   : > { %v1738_v12 = vpop.eup %1737 }
 0x836   : > { %v1382_v13 = vmul.f32 %v1736_v6, %v1381_v11  ;;  %v1388_v14 = vmul.f32 %v1738_v12, %v1376_v7  ;;  %vm1394_vm4 = vweird.f32 %v1738_v12 }
 0x837   : > { %vm1395_vm6 = vmor %vm1393_vm5, %vm1394_vm4 }
 0x838   : > { %v1386_v16 = vsel %vm1385_vm3, %v1736_v6, %v1382_v13  ;;  %v1389_v49 = vmul.f32 %v1738_v12, %v1388_v14 }
 0x839   : > { %v1397_v18 = vmul.f32 %v1386_v16, %v1363_v59 }
 0x83a   : > { %v1390_v19 = vmul.f32 0.5, %v1389_v49 }
 0x83b   : > { %v1402_v20 = vmul.f32 %v1711_v15, %v1397_v18 }
 0x83c   : > { %v1391_v22 = vsub.f32 1.5, %v1390_v19 }
 0x83d   : > { %v1407_v23 = vadd.f32 %v1712_v17, %v1402_v20 }
 0x83e   : > { %v1392_v24 = vmul.f32 %v1738_v12, %v1391_v22 }
 0x83f   : > { %1409 = vst.msk [vmem:[%s816_s4] sm:$0xff] %vm908_vm1, %v1407_v23 }
 0x840   : > { %v1396_v26 = vsel %vm1395_vm6, %v1738_v12, %v1392_v24 }
 0x841   : > { %v1398_v27 = vmul.f32 %v1396_v26, %v1364_v63 }
 0x843   : > { %v1403_v28 = vmul.f32 %v1711_v15, %v1398_v27 }
 0x845   : > { %v1408_v29 = vadd.f32 %v1712_v17, %v1403_v28 }
 0x847   : > { %1410 = vst.msk [vmem:[%s816_s4 + $0x8] sm:$0xff] %vm908_vm1, %v1408_v29 }
 0x848 PF: > { %s2416_s28 = sld [smem:[#allocation20_spill]] }
 0x84e   : > { %s37_s3 = sadd.s32 1, %s2416_s28  }
 0x84f   : > { %p34_p7 = scmp.ge.s32.totalorder %s37_s3, 4  }
 0x851   :  { %36 = sbr.rel (!%p34_p7) target bundleno = 16 (0x10), region = 171 }
 0x856   :  { %1432 = vsyncpa [#allocation3], 1 }
 0x857   :  { %1434 = vsyncpa [#allocation3 + $0x1], 1 }
 0x858   :  { %1435 = vsyncpa [#allocation5], 1 }
 0x859   :  { %1436 = vsyncpa [#allocation8], 1 }
 0x85a   :  { %1437 = vsyncpa [#allocation11], 1 }
 0x85b   :  { %1438 = vsyncpa [#allocation14], 1 }

// kernel: foundation_backbone_forward.5
= control target key start
LH: loop header
LB: loop body
LE: loop exit
PB: predicated region body
PF: predicated region fallthrough
CT: control target
= control target key end

     0   :  { %15 = vsyncpa [#allocation3], 0  ;;  %s4020_s0 = inlined_call_operand.vmem [shape: f32[2,32,16], index: 0, kind: input, shape index: {}]   ;;  %s4021_s1 = inlined_call_operand.hbm [shape: f32[9,16,256], index: 1, kind: input, shape index: {}]   ;;  %s4022_s2 = inlined_call_operand.hbm [shape: f32[9,64,32], index: 2, kind: input, shape index: {}]   ;;  %s4023_s3 = inlined_call_operand.vmem [shape: f32[64,1], index: 3, kind: input, shape index: {}]   ;;  %s4024_s4 = inlined_call_operand.hbm [shape: f32[16,64], index: 4, kind: input, shape index: {}]   ;;  %s4025_s5 = inlined_call_operand.vmem [shape: f32[16,1], index: 5, kind: input, shape index: {}]   ;;  %s4026_s6 = inlined_call_operand.hbm [shape: f32[1,16], index: 6, kind: input, shape index: {}]   ;;  %s4027_s7 = inlined_call_operand.vmem [shape: f32[2,32,256], index: 7, kind: output, shape index: {0}]   ;;  %s4028_s8 = inlined_call_operand.vmem [shape: f32[2,16,256], index: 8, kind: output, shape index: {1}]   ;;  %s4029_s9 = inlined_call_operand.vmem [shape: f32[2,1,256], index: 9, kind: output, shape index: {2}]  }
   0x1   :  { %16 = vsyncpa [#allocation5], 0 }
   0x2   :  { %17 = vsyncpa [#allocation8], 0  ;;  %s3221_s30 = smov 0  }
   0x3 LB: > { %s283_s12 = sshll.u32 %s4022_s2, 4  ;;  %s3230_s13 = sadd.s32 4294967295, %s3160_s30   ;;  %s3160_s30 = sphi %s3221_s30, %s23_s30   ;;  %s284_s12 = int_to_ptr.hbm [resolvable:$true] %s283_s12 }
   0x4   : > { %p2698_p0 = scmp.ge.s32.totalorder %s3160_s30, 1  ;;  %p258_p1 = scmp.lt.s32.totalorder %s3160_s30, 3 }
   0x5   : > { %p2982_p2 = scmp.eq.s32.totalorder %s3230_s13, 0  ;;  %s3162_s15 = smov [#allocation4]  }
   0x6   : > { %p3235_p3 = pnand %p2698_p0, %p258_p1  ;;  %s285_s16 = sshll.u32 %s3162_s15, 4  ;;  %s286_s16 = int_to_ptr.vmem [resolvable:$true] %s285_s16 }
   0x7   : > { %s269_s19 = sshll.u32 %s4021_s1, 4  ;;  %s3163_s21 = smov [#allocation2]   ;;  %s270_s19 = int_to_ptr.hbm [resolvable:$true] %s269_s19 }
   0x8   : > { %p2969_p4 = pneg %p3235_p3  ;;  %s271_s22 = sshll.u32 %s3163_s21, 4  ;;  %s272_s22 = int_to_ptr.vmem [resolvable:$true] %s271_s22 }
   0x9   : > { %s3164_s23 = smov 128   ;;  %s3165_s24 = smov 8  }
   0xa   : > { %p3246_p5 = pnand %p2982_p2, %p2969_p4  ;;  %s300_s27 = sshll.u32 %s4024_s4, 4  ;;  %s301_s27 = int_to_ptr.hbm [resolvable:$true] %s300_s27 }
   0xb   : > { %s3166_s28 = smov 256   ;;  %s3167_s29 = smov 16  }
   0xc   : > { %2975 = dma.hbm_to_vmem [thread:$0]  (!%p3246_p5), %s284_s12, 9216, %s286_s16, [#allocation5], %s3164_s23, %s3164_s23, %s3165_s24  }
   0xd   : > { %2972 = dma.hbm_to_vmem [thread:$0]  (!%p3246_p5), %s270_s19, 4608, %s272_s22, [#allocation3], %s3166_s28, %s3166_s28, %s3167_s29  }
   0xe   : > { %s3168_s10 = smov [#allocation6]   ;;  %s318_s18 = sshll.u32 %s4026_s6, 4  ;;  %s319_s18 = int_to_ptr.hbm [resolvable:$true] %s318_s18 }
   0xf   : > { %s302_s11 = sshll.u32 %s3168_s10, 4  ;;  %s3169_s12 = smov [#allocation7]   ;;  %s303_s11 = int_to_ptr.vmem [resolvable:$true] %s302_s11 }
  0x10   : > { %2978 = dma.hbm_to_vmem [thread:$0]  (!%p3246_p5), %s301_s27, 256, %s303_s11, [#allocation5], %s3164_s23, %s3164_s23, %s3165_s24  }
  0x11   : > { %s320_s16 = sshll.u32 %s3169_s12, 4  ;;  %341 = sbr.rel (%p3235_p3) target bundleno = 1504 (0x5e0), region = 48  ;;  %s321_s16 = int_to_ptr.vmem [resolvable:$true] %s320_s16 }
  0x12   : > { %2981 = dma.hbm_to_vmem [thread:$0]  (!%p3246_p5), %s319_s18, 16, %s321_s16, [#allocation8]  }
  0x16   : > { %3147 = dma.done.wait (%p2982_p2), [#allocation3], 4608  }
  0x17   : > { %3149 = vsyncadd (%p2982_p2), [#allocation3], 4294962688 }
  0x18   : > { %3151 = dma.done.wait (%p2982_p2), [#allocation5], 9472  }
  0x19   : > { %3153 = vsyncadd (%p2982_p2), [#allocation5], 4294957824 }
  0x1a   : > { %3155 = dma.done.wait (%p2982_p2), [#allocation8], 16  }
  0x1b   : > { %3157 = vsyncadd (%p2982_p2), [#allocation8], 4294967280  ;;  %p402_p6 = scmp.lt.s32.totalorder %s3230_s13, 1  ;;  %v3288_v0 = vld [vmem:[#allocation2 + $0x90] sm:$0xff]  ;;  %v3290_v1 = vld [vmem:[#allocation2 + $0x80] sm:$0xff]  ;;  %vm430_vm0 = vcmask 130048  }
  0x1c   : > { %2951 = vmatpush.msra.mxu3 %v3288_v0  ;;  %457 = vmatpush.msra.mxu0 %v3288_v0  ;;  %v509_v6 = vld [vmem:[#allocation4] sm:$0xff]  ;;  %vm517_vm1 = vcmask 261120   ;;  %v510_v7 = vld [vmem:[#allocation4 + $0x8] sm:$0xff]  ;;  %v511_v9 = vld [vmem:[#allocation4 + $0x10] sm:$0xff]  ;;  %vm2378_vm2 = vcmask 523264   ;;  %vm2528_vm3 = vcmask 1040384  }
  0x1d   : > { %s4115_s13 = smov (!%p402_p6, %s3230_s13), 1  ;;  %v588_v8 = vld [vmem:[#allocation4 + $0x40] sm:$0xff]  ;;  %v589_v10 = vld [vmem:[#allocation4 + $0x48] sm:$0xff]  ;;  %v512_v11 = vld [vmem:[#allocation4 + $0x18] sm:$0xff] }
  0x1e   : > { %s2948_s14 = sshll.u32 %s4115_s13, 5  ;;  %2952 = vmatpush.msra.mxu3 %v3290_v1  ;;  %458 = vmatpush.msra.mxu0 %v3290_v1  ;;  %v590_v12 = vld [vmem:[#allocation4 + $0x50] sm:$0xff]  ;;  %v513_v13 = vld [vmem:[#allocation4 + $0x20] sm:$0xff]  ;;  %v591_v14 = vld [vmem:[#allocation4 + $0x58] sm:$0xff]  ;;  %s2949_s22 = sshll.u32 %s4115_s13, 6 }
  0x1f   : > { %s406_s21 = scalar_lea.vmem %s4020_s0, %s2948_s14  ;;  %v3329_v15 = vld [vmem:[#allocation2 + $0x98] sm:$0xff]  ;;  %v3331_v16 = vld [vmem:[#allocation2 + $0x88] sm:$0xff]  ;;  %v592_v18 = vld [vmem:[#allocation4 + $0x60] sm:$0xff]  ;;  %s3362_s25 = scalar_lea.vmem %s4027_s7, %s2949_s22 }
  0x20   : > { %v3293_v2 = vld [vmem:[%s406_s21 + $0x10] sm:$0xff]  ;;  %v3295_v3 = vld [vmem:[%s406_s21 + $0x18] sm:$0xff]  ;;  %v3300_v4 = vld [vmem:[%s406_s21 + $0x8] sm:$0xff]  ;;  %486 = vmatpush.msra.mxu1 %v3329_v15  ;;  %s416_s10 = scalar_lea.vmem %s4028_s8, %s2948_s14  ;;  %s2715_s14 = sshll.u32 %s4115_s13, 1 }
  0x21   : > { %554 = vmatpush.msra.mxu2 %v3295_v3  ;;  %2718 = vmatmul.msk.f32.vlgmr.msra.gmra.mxu3 %vm430_vm0, %v3293_v2  ;;  %v3306_v5 = vld [vmem:[%s406_s21] sm:$0xff]  ;;  %v514_v17 = vld [vmem:[#allocation4 + $0x28] sm:$0xff]  ;;  %v515_v19 = vld [vmem:[#allocation4 + $0x30] sm:$0xff]  ;;  %s420_s17 = scalar_lea.vmem %s4029_s9, %s2715_s14 }
  0x22   : > { %632 = vmatpush.msrb.mxu3 %v3295_v3  ;;  %2716 = vmatmul.msk.f32.vlgmr.msra.gmra.mxu0 %vm430_vm0, %v3306_v5  ;;  %v593_v20 = vld [vmem:[#allocation4 + $0x68] sm:$0xff]  ;;  %v516_v21 = vld [vmem:[#allocation4 + $0x38] sm:$0xff]  ;;  %v594_v22 = vld [vmem:[#allocation4 + $0x70] sm:$0xff] }
  0x23   : > { %555 = vmatpush.msra.mxu2 %v3293_v2  ;;  %487 = vmatpush.msra.mxu1 %v3331_v16  ;;  %v595_v23 = vld [vmem:[#allocation4 + $0x78] sm:$0xff]  ;;  %v585_v24 = vld [vmem:[#allocation2 + $0x10] sm:$0xff]  ;;  %v583_v26 = vld [vmem:[#allocation2] sm:$0xff] }
  0x24   : > { %633 = vmatpush.msrb.mxu3 %v3293_v2  ;;  %2720 = vmatmul.msk.f32.vlgmr.msra.gmra.mxu1 %vm430_vm0, %v3306_v5  ;;  %v586_v25 = vld [vmem:[#allocation2 + $0x18] sm:$0xff]  ;;  %v584_v27 = vld [vmem:[#allocation2 + $0x8] sm:$0xff]  ;;  %v664_v28 = vld [vmem:[#allocation2 + $0x30] sm:$0xff] }
  0x25   : > { %556 = vmatpush.msra.mxu2 %v3300_v4  ;;  %v665_v29 = vld [vmem:[#allocation2 + $0x38] sm:$0xff]  ;;  %704 = vmatpush.msrb.mxu0 %v664_v28  ;;  %v662_v30 = vld [vmem:[#allocation2 + $0x20] sm:$0xff]  ;;  %v663_v31 = vld [vmem:[#allocation2 + $0x28] sm:$0xff] }
  0x26   : > { %634 = vmatpush.msrb.mxu3 %v3300_v4  ;;  %745 = vmatpush.msrb.mxu1 %v665_v29  ;;  %v1080_v49 = vld [vmem:[#allocation4 + $0xc0] sm:$0xff]  ;;  %v1081_v52 = vld [vmem:[#allocation4 + $0xc8] sm:$0xff]  ;;  %v1082_v55 = vld [vmem:[#allocation4 + $0xd0] sm:$0xff] }
  0x27   : > { %557 = vmatpush.msra.mxu2 %v3306_v5  ;;  %705 = vmatpush.msrb.mxu0 %v662_v30  ;;  %v879_v53 = vld [vmem:[#allocation4 + $0x80] sm:$0xff]  ;;  %v880_v56 = vld [vmem:[#allocation4 + $0x88] sm:$0xff]  ;;  %v1083_v59 = vld [vmem:[#allocation4 + $0xd8] sm:$0xff] }
  0x28   : > { %2724 = vmatmul.msk.f32.vlgmr.msra.gmra.mxu2 %vm517_vm1, %v509_v6  ;;  %635 = vmatpush.msrb.mxu3 %v3306_v5  ;;  %v881_v60 = vld [vmem:[#allocation4 + $0x90] sm:$0xff]  ;;  %v1084_v63 = vld [vmem:[#allocation4 + $0xe0] sm:$0xff] }
  0x29   : > { %2719 = vmatmul.msk.f32.gmra.mxu3 %vm430_vm0, %v3295_v3  ;;  %810 = vmatpush.msrb.mxu2 %v585_v24  ;;  %v883_v6 = vld [vmem:[#allocation4 + $0xa0] sm:$0xff] }
  0x2a   : > { %2717 = vmatmul.msk.f32.gmra.mxu0 %vm430_vm0, %v3300_v4  ;;  %851 = vmatpush.msra.mxu3 %v586_v25  ;;  %v953_v25 = vld [vmem:[#allocation2 + $0x40] sm:$0xff] }
  0x2b   : > { %811 = vmatpush.msrb.mxu2 %v583_v26  ;;  %746 = vmatpush.msrb.mxu1 %v663_v31  ;;  %v954_v26 = vld [vmem:[#allocation2 + $0x48] sm:$0xff]  ;;  %v1154_v29 = vld [vmem:[#allocation2 + $0x60] sm:$0xff] }
  0x2c   : > { %2721 = vmatmul.msk.f32.gmra.mxu1 %vm430_vm0, %v3300_v4  ;;  %852 = vmatpush.msra.mxu3 %v584_v27  ;;  %v1156_v27 = vld [vmem:[#allocation2 + $0x70] sm:$0xff] }
  0x2d   : > { %923 = vmatpush.msra.mxu0 %v3295_v3 }
  0x2f   : > { %924 = vmatpush.msra.mxu0 %v3293_v2 }
  0x30   : > { %2725 = vmatmul.msk.f32.gmra.mxu2 %vm517_vm1, %v510_v7  ;;  %v1086_v7 = vld [vmem:[#allocation4 + $0xf0] sm:$0xff] }
  0x31   : > { %2732 = vmatmul.msk.f32.vlgmr.msrb.gmra.mxu3 %vm517_vm1, %v588_v8  ;;  %925 = vmatpush.msra.mxu0 %v3300_v4  ;;  %v884_v8 = vld [vmem:[#allocation4 + $0xa8] sm:$0xff] }
  0x32   : > { %1124 = vmatpush.msrb.mxu3 %v3295_v3 }
  0x33   : > { %926 = vmatpush.msra.mxu0 %v3306_v5 }
  0x34   : > { %2722 = vmatmul.msk.f32.gmra.mxu1 %vm430_vm0, %v3293_v2  ;;  %1125 = vmatpush.msrb.mxu3 %v3293_v2 }
  0x36   : > { %1126 = vmatpush.msrb.mxu3 %v3300_v4 }
  0x38   : > { %2726 = vmatmul.msk.f32.gmra.mxu2 %vm517_vm1, %v511_v9  ;;  %1127 = vmatpush.msrb.mxu3 %v3306_v5  ;;  %v1087_v9 = vld [vmem:[#allocation4 + $0xf8] sm:$0xff] }
  0x39   : > { %2733 = vmatmul.msk.f32.gmra.mxu3 %vm517_vm1, %v589_v10  ;;  %v885_v10 = vld [vmem:[#allocation4 + $0xb0] sm:$0xff] }
  0x3c   : > { %2723 = vmatmul.msk.f32.gmra.mxu1 %vm430_vm0, %v3295_v3 }
  0x40   : > { %2727 = vmatmul.msk.f32.gmra.mxu2 %vm517_vm1, %v512_v11  ;;  %v886_v11 = vld [vmem:[#allocation4 + $0xb8] sm:$0xff] }
  0x41   : > { %2734 = vmatmul.msk.f32.gmra.mxu3 %vm517_vm1, %v590_v12 }
  0x48   : > { %2728 = vmatmul.msk.f32.gmra.mxu2 %vm517_vm1, %v513_v13 }
  0x49   : > { %2735 = vmatmul.msk.f32.gmra.mxu3 %vm517_vm1, %v591_v14 }
  0x50   : > { %2729 = vmatmul.msk.f32.gmra.mxu2 %vm517_vm1, %v514_v17 }
  0x51   : > { %2736 = vmatmul.msk.f32.gmra.mxu3 %vm517_vm1, %v592_v18 }
  0x58   : > { %2730 = vmatmul.msk.f32.gmra.mxu2 %vm517_vm1, %v515_v19 }
  0x59   : > { %2737 = vmatmul.msk.f32.gmra.mxu3 %vm517_vm1, %v593_v20 }
  0x60   : > { %2731 = vmatmul.msk.f32.gmra.mxu2 %vm517_vm1, %v516_v21 }
  0x61   : > { %2738 = vmatmul.msk.f32.gmra.mxu3 %vm517_vm1, %v594_v22  ;;  %v955_v22 = vld [vmem:[#allocation2 + $0x50] sm:$0xff] }
  0x62   : > { %995 = vmatpush.msra.mxu1 %v955_v22 }
  0x64   : > { %996 = vmatpush.msra.mxu1 %v953_v25  ;;  %v1288_v25 = vld [vmem:[#allocation4 + $0x138] sm:$0xff] }
  0x69   : > { %2739 = vmatmul.msk.f32.gmra.mxu3 %vm517_vm1, %v595_v23  ;;  %v956_v23 = vld [vmem:[#allocation2 + $0x58] sm:$0xff] }
  0x6a   : > { %1036 = vmatpush.msra.mxu2 %v956_v23 }
  0x6c   : > { %1037 = vmatpush.msra.mxu2 %v954_v26 }
  0x9f   : > { %v460_v57 = vpop.f32.mrf.mxu0 }
  0xa0   : > { %501 = vst [vmem:[%s3362_s25] sm:$0xff] %v460_v57 }
  0xa1   : > { %v489_v51 = vpop.f32.mrf.mxu1 }
  0xa2   : > { %502 = vst [vmem:[%s3362_s25 + $0x8] sm:$0xff] %v489_v51 }
  0xa4   : > { %v466_v32 = vpop.f32.mrf.mxu3 }
  0xa5   : > { %505 = vst [vmem:[%s3362_s25 + $0x20] sm:$0xff] %v466_v32 }
  0xa7   : > { %v463_v61 = vpop.f32.mrf.mxu0 }
  0xa8   : > { %503 = vst [vmem:[%s3362_s25 + $0x10] sm:$0xff] %v463_v61  ;;  %v1283_v61 = vld [vmem:[#allocation4 + $0x110] sm:$0xff] }
  0xa9   : > { %v492_v54 = vpop.f32.mrf.mxu1 }
  0xaa   : > { %504 = vst [vmem:[%s3362_s25 + $0x18] sm:$0xff] %v492_v54 }
  0xab   : > { %v559_v33 = vpop.f32.mrf.mxu2 }
  0xac   : > { %2756 = vmatmul.msk.f32.vlgmr.msrb.gmra.mxu2 %vm430_vm0, %v559_v33  ;;  %2764 = vmatmul.msk.f32.vlgmr.msra.gmra.mxu3 %vm430_vm0, %v559_v33  ;;  %v469_v34 = vpop.f32.mrf.mxu3 }
  0xad   : > { %1396 = vmatpush.msra.mxu3 %v3288_v0  ;;  %507 = vst [vmem:[%s3362_s25 + $0x30] sm:$0xff] %v469_v34  ;;  %v882_v0 = vld [vmem:[#allocation4 + $0x98] sm:$0xff]  ;;  %1325 = vmatpush.msrb.mxu2 %v3295_v3 }
  0xaf   : > { %1397 = vmatpush.msra.mxu3 %v3290_v1  ;;  %v1085_v1 = vld [vmem:[#allocation4 + $0xe8] sm:$0xff]  ;;  %1326 = vmatpush.msrb.mxu2 %v3293_v2 }
  0xb1   : > { %v495_v58 = vpop.f32.mrf.mxu1  ;;  %1327 = vmatpush.msrb.mxu2 %v3300_v4 }
  0xb2   : > { %506 = vst [vmem:[%s3362_s25 + $0x28] sm:$0xff] %v495_v58  ;;  %v1282_v58 = vld [vmem:[#allocation4 + $0x108] sm:$0xff] }
  0xb3   : > { %v562_v35 = vpop.f32.mrf.mxu2  ;;  %1328 = vmatpush.msrb.mxu2 %v3306_v5 }
  0xb4   : > { %2757 = vmatmul.msk.f32.gmra.mxu2 %vm430_vm0, %v562_v35  ;;  %2765 = vmatmul.msk.f32.gmra.mxu3 %vm430_vm0, %v562_v35  ;;  %v637_v36 = vpop.f32.mrf.mxu3 }
  0xb5   : > { %2740 = vmatmul.msk.f32.vlgmr.msrb.gmra.mxu0 %vm430_vm0, %v637_v36  ;;  %2748 = vmatmul.msk.f32.vlgmr.msrb.gmra.mxu1 %vm430_vm0, %v637_v36 }
  0xb6   : > { %1196 = vmatpush.msrb.mxu0 %v1156_v27 }
  0xb8   : > { %1197 = vmatpush.msrb.mxu0 %v1154_v29  ;;  %v1481_v29 = vld [vmem:[#allocation4 + $0x140] sm:$0xff] }
  0xb9   : > { %v498_v62 = vpop.f32.mrf.mxu1 }
  0xba   : > { %508 = vst [vmem:[%s3362_s25 + $0x38] sm:$0xff] %v498_v62 }
  0xbb   : > { %v565_v37 = vpop.f32.mrf.mxu2 }
  0xbc   : > { %2758 = vmatmul.msk.f32.gmra.mxu2 %vm430_vm0, %v565_v37  ;;  %2766 = vmatmul.msk.f32.gmra.mxu3 %vm430_vm0, %v565_v37  ;;  %v640_v38 = vpop.f32.mrf.mxu3 }
  0xbd   : > { %2741 = vmatmul.msk.f32.gmra.mxu0 %vm430_vm0, %v640_v38  ;;  %2749 = vmatmul.msk.f32.gmra.mxu1 %vm430_vm0, %v640_v38 }
  0xc3   : > { %v568_v39 = vpop.f32.mrf.mxu2 }
  0xc4   : > { %2759 = vmatmul.msk.f32.gmra.mxu2 %vm430_vm0, %v568_v39  ;;  %2767 = vmatmul.msk.f32.gmra.mxu3 %vm430_vm0, %v568_v39  ;;  %v643_v40 = vpop.f32.mrf.mxu3 }
  0xc5   : > { %2742 = vmatmul.msk.f32.gmra.mxu0 %vm430_vm0, %v643_v40  ;;  %2750 = vmatmul.msk.f32.gmra.mxu1 %vm430_vm0, %v643_v40 }
  0xcb   : > { %v571_v41 = vpop.f32.mrf.mxu2 }
  0xcc   : > { %2760 = vmatmul.msk.f32.gmra.mxu2 %vm430_vm0, %v571_v41  ;;  %2768 = vmatmul.msk.f32.gmra.mxu3 %vm430_vm0, %v571_v41  ;;  %v646_v42 = vpop.f32.mrf.mxu3 }
  0xcd   : > { %2743 = vmatmul.msk.f32.gmra.mxu0 %vm430_vm0, %v646_v42  ;;  %2751 = vmatmul.msk.f32.gmra.mxu1 %vm430_vm0, %v646_v42  ;;  %v1157_v42 = vld [vmem:[#allocation2 + $0x78] sm:$0xff] }
  0xce   : > { %1237 = vmatpush.msrb.mxu1 %v1157_v42  ;;  %v1484_v42 = vld [vmem:[#allocation4 + $0x158] sm:$0xff] }
  0xd3   : > { %v574_v43 = vpop.f32.mrf.mxu2 }
  0xd4   : > { %2761 = vmatmul.msk.f32.gmra.mxu2 %vm430_vm0, %v574_v43  ;;  %2769 = vmatmul.msk.f32.gmra.mxu3 %vm430_vm0, %v574_v43  ;;  %v649_v44 = vpop.f32.mrf.mxu3  ;;  %v1155_v43 = vld [vmem:[#allocation2 + $0x68] sm:$0xff] }
  0xd5   : > { %2744 = vmatmul.msk.f32.gmra.mxu0 %vm430_vm0, %v649_v44  ;;  %2752 = vmatmul.msk.f32.gmra.mxu1 %vm430_vm0, %v649_v44 }
  0xd6   : > { %1238 = vmatpush.msrb.mxu1 %v1155_v43 }
  0xdb   : > { %v577_v45 = vpop.f32.mrf.mxu2 }
  0xdc   : > { %2762 = vmatmul.msk.f32.gmra.mxu2 %vm430_vm0, %v577_v45  ;;  %2770 = vmatmul.msk.f32.gmra.mxu3 %vm430_vm0, %v577_v45  ;;  %v652_v46 = vpop.f32.mrf.mxu3 }
  0xdd   : > { %2745 = vmatmul.msk.f32.gmra.mxu0 %vm430_vm0, %v652_v46  ;;  %2753 = vmatmul.msk.f32.gmra.mxu1 %vm430_vm0, %v652_v46 }
  0xe3   : > { %v580_v47 = vpop.f32.mrf.mxu2 }
  0xe4   : > { %2763 = vmatmul.msk.f32.gmra.mxu2 %vm430_vm0, %v580_v47  ;;  %2771 = vmatmul.msk.f32.gmra.mxu3 %vm430_vm0, %v580_v47  ;;  %v655_v48 = vpop.f32.mrf.mxu3 }
  0xe5   : > { %2746 = vmatmul.msk.f32.gmra.mxu0 %vm430_vm0, %v655_v48  ;;  %2754 = vmatmul.msk.f32.gmra.mxu1 %vm430_vm0, %v655_v48 }
  0xec   : > { %2796 = vmatmul.msk.f32.vlgmr.msrb.gmra.mxu3 %vm517_vm1, %v1080_v49  ;;  %v658_v50 = vpop.f32.mrf.mxu3 }
  0xed   : > { %2747 = vmatmul.msk.f32.gmra.mxu0 %vm430_vm0, %v658_v50  ;;  %2755 = vmatmul.msk.f32.gmra.mxu1 %vm430_vm0, %v658_v50 }
  0xf4   : > { %2797 = vmatmul.msk.f32.gmra.mxu3 %vm517_vm1, %v1081_v52 }
  0xf5   : > { %2772 = vmatmul.msk.f32.vlgmr.msra.gmra.mxu0 %vm517_vm1, %v879_v53 }
  0xf6   : > { %1437 = vmatpush.msra.mxu0 %v3329_v15 }
  0xf8   : > { %1438 = vmatpush.msra.mxu0 %v3331_v16 }
  0xfc   : > { %2798 = vmatmul.msk.f32.gmra.mxu3 %vm517_vm1, %v1082_v55  ;;  %v1281_v55 = vld [vmem:[#allocation4 + $0x100] sm:$0xff] }
  0xfd   : > { %2773 = vmatmul.msk.f32.gmra.mxu0 %vm517_vm1, %v880_v56 }
 0x104   : > { %2799 = vmatmul.msk.f32.gmra.mxu3 %vm517_vm1, %v1083_v59 }
 0x105   : > { %2774 = vmatmul.msk.f32.gmra.mxu0 %vm517_vm1, %v881_v60 }
 0x10c   : > { %2800 = vmatmul.msk.f32.gmra.mxu3 %vm517_vm1, %v1084_v63  ;;  %v1284_v63 = vld [vmem:[#allocation4 + $0x118] sm:$0xff] }
 0x10d   : > { %2775 = vmatmul.msk.f32.gmra.mxu0 %vm517_vm1, %v882_v0 }
 0x114   : > { %2801 = vmatmul.msk.f32.gmra.mxu3 %vm517_vm1, %v1085_v1 }
 0x115   : > { %2776 = vmatmul.msk.f32.gmra.mxu0 %vm517_vm1, %v883_v6  ;;  %v1285_v6 = vld [vmem:[#allocation4 + $0x120] sm:$0xff] }
 0x11c   : > { %2802 = vmatmul.msk.f32.gmra.mxu3 %vm517_vm1, %v1086_v7 }
 0x11d   : > { %2777 = vmatmul.msk.f32.gmra.mxu0 %vm517_vm1, %v884_v8  ;;  %v1286_v8 = vld [vmem:[#allocation4 + $0x128] sm:$0xff] }
 0x124   : > { %2803 = vmatmul.msk.f32.gmra.mxu3 %vm517_vm1, %v1087_v9 }
 0x125   : > { %2778 = vmatmul.msk.f32.gmra.mxu0 %vm517_vm1, %v885_v10 }
 0x12d   : > { %2779 = vmatmul.msk.f32.gmra.mxu0 %vm517_vm1, %v886_v11  ;;  %v1287_v11 = vld [vmem:[#allocation4 + $0x130] sm:$0xff] }
 0x12f   : > { %v3422_v12 = vpop.f32.mrf.mxu3  ;;  %v3492_v52 = vpop.f32.mrf.mxu2 }
 0x130   : > { %4038 = vst [vmem:[#allocation18_spill] sm:$0xff] %v3492_v52  ;;  %v1689_v52 = vld [vmem:[#allocation4 + $0x1b8] sm:$0xff] }
 0x132   : > { %v3424_v13 = vpop.f32.mrf.mxu0  ;;  %v3487_v49 = vpop.f32.mrf.mxu1 }
 0x133   : > { %4032 = vst [vmem:[#allocation12_spill] sm:$0xff] %v3424_v13 }
 0x137   : > { %v3426_v14 = vpop.f32.mrf.mxu3  ;;  %v3498_v56 = vpop.f32.mrf.mxu2 }
 0x13a   : > { %v3428_v17 = vpop.f32.mrf.mxu0  ;;  %v3496_v54 = vpop.f32.mrf.mxu1 }
 0x13f   : > { %v3430_v18 = vpop.f32.mrf.mxu3  ;;  %v3506_v59 = vpop.f32.mrf.mxu2 }
 0x142   : > { %v3432_v19 = vpop.f32.mrf.mxu0  ;;  %v3502_v57 = vpop.f32.mrf.mxu1 }
 0x147   : > { %v3434_v20 = vpop.f32.mrf.mxu3  ;;  %v3512_v62 = vpop.f32.mrf.mxu2 }
 0x14a   : > { %v3436_v21 = vpop.f32.mrf.mxu0  ;;  %v3508_v60 = vpop.f32.mrf.mxu1 }
 0x14f   : > { %v3438_v24 = vpop.f32.mrf.mxu3  ;;  %v3518_v1 = vpop.f32.mrf.mxu2 }
 0x152   : > { %v3440_v28 = vpop.f32.mrf.mxu0  ;;  %v3514_v0 = vpop.f32.mrf.mxu1 }
 0x157   : > { %v3443_v30 = vpop.f32.mrf.mxu3  ;;  %v3524_v9 = vpop.f32.mrf.mxu2 }
 0x158   : > { %4033 = vst [vmem:[#allocation13_spill] sm:$0xff] %v3443_v30  ;;  %v2088_v30 = vld [vmem:[#allocation4 + $0x220] sm:$0xff] }
 0x15a   : > { %v3450_v31 = vpop.f32.mrf.mxu0  ;;  %v3522_v7 = vpop.f32.mrf.mxu1 }
 0x15b   : > { %4039 = vst [vmem:[#allocation19_spill] sm:$0xff] %v3522_v7 }
 0x15f   : > { %v3452_v32 = vpop.f32.mrf.mxu3  ;;  %v3532_v22 = vpop.f32.mrf.mxu2 }
 0x160   : > { %4034 = vst [vmem:[#allocation14_spill] sm:$0xff] %v3452_v32  ;;  %v1887_v32 = vld [vmem:[#allocation4 + $0x1e0] sm:$0xff] }
 0x161   : > { %4041 = vst [vmem:[#allocation21_spill] sm:$0xff] %v3532_v22 }
 0x162   : > { %v3454_v33 = vpop.f32.mrf.mxu0  ;;  %v3528_v10 = vpop.f32.mrf.mxu1 }
 0x163   : > { %4035 = vst [vmem:[#allocation15_spill] sm:$0xff] %v3454_v33  ;;  %v1684_v33 = vld [vmem:[#allocation4 + $0x190] sm:$0xff] }
 0x164   : > { %4040 = vst [vmem:[#allocation20_spill] sm:$0xff] %v3528_v10  ;;  %v1960_v10 = vld [vmem:[#allocation2 + $0xf8] sm:$0xff] }
 0x167   : > { %v3456_v34 = vpop.f32.mrf.mxu3  ;;  %v3538_v26 = vpop.f32.mrf.mxu2 }
 0x168   : > { %4036 = vst [vmem:[#allocation16_spill] sm:$0xff] %v3456_v34  ;;  %v1886_v34 = vld [vmem:[#allocation4 + $0x1d8] sm:$0xff] }
 0x169   : > { %4043 = vst [vmem:[#allocation23_spill] sm:$0xff] %v3538_v26 }
 0x16a   : > { %v3458_v35 = vpop.f32.mrf.mxu0  ;;  %v3534_v23 = vpop.f32.mrf.mxu1 }
 0x16b   : > { %4037 = vst [vmem:[#allocation17_spill] sm:$0xff] %v3458_v35  ;;  %v1683_v35 = vld [vmem:[#allocation4 + $0x188] sm:$0xff] }
 0x16c   : > { %4042 = vst [vmem:[#allocation22_spill] sm:$0xff] %v3534_v23 }
 0x16f   : > { %v1129_v36 = vpop.f32.mrf.mxu3 }
 0x170   : > { %2804 = vmatmul.msk.f32.vlgmr.msrb.gmra.mxu0 %vm430_vm0, %v1129_v36 }
 0x171   : > { %1726 = vmatpush.msrb.mxu0 %v3295_v3 }
 0x172   : > { %v928_v15 = vpop.f32.mrf.mxu0 }
 0x173   : > { %1727 = vmatpush.msrb.mxu0 %v3293_v2  ;;  %2780 = vmatmul.msk.f32.vlgmr.msra.gmra.mxu1 %vm430_vm0, %v928_v15 }
 0x174   : > { %2788 = vmatmul.msk.f32.vlgmr.msra.gmra.mxu2 %vm430_vm0, %v928_v15  ;;  %1525 = vmatpush.msra.mxu1 %v3295_v3 }
 0x175   : > { %1728 = vmatpush.msrb.mxu0 %v3300_v4 }
 0x176   : > { %1526 = vmatpush.msra.mxu1 %v3293_v2 }
 0x177   : > { %v1132_v16 = vpop.f32.mrf.mxu3  ;;  %1729 = vmatpush.msrb.mxu0 %v3306_v5 }
 0x178   : > { %2805 = vmatmul.msk.f32.gmra.mxu0 %vm430_vm0, %v1132_v16  ;;  %1527 = vmatpush.msra.mxu1 %v3300_v4 }
 0x17a   : > { %v931_v37 = vpop.f32.mrf.mxu0  ;;  %1528 = vmatpush.msra.mxu1 %v3306_v5 }
 0x17b   : > { %2781 = vmatmul.msk.f32.gmra.mxu1 %vm430_vm0, %v931_v37 }
 0x17c   : > { %2789 = vmatmul.msk.f32.gmra.mxu2 %vm430_vm0, %v931_v37 }
 0x17f   : > { %v1135_v38 = vpop.f32.mrf.mxu3 }
 0x180   : > { %2806 = vmatmul.msk.f32.gmra.mxu0 %vm430_vm0, %v1135_v38 }
 0x182   : > { %v934_v39 = vpop.f32.mrf.mxu0 }
 0x183   : > { %2782 = vmatmul.msk.f32.gmra.mxu1 %vm430_vm0, %v934_v39 }
 0x184   : > { %2790 = vmatmul.msk.f32.gmra.mxu2 %vm430_vm0, %v934_v39  ;;  %v1483_v39 = vld [vmem:[#allocation4 + $0x150] sm:$0xff] }
 0x187   : > { %v1138_v40 = vpop.f32.mrf.mxu3 }
 0x188   : > { %2807 = vmatmul.msk.f32.gmra.mxu0 %vm430_vm0, %v1138_v40 }
 0x18a   : > { %v937_v41 = vpop.f32.mrf.mxu0 }
 0x18b   : > { %2783 = vmatmul.msk.f32.gmra.mxu1 %vm430_vm0, %v937_v41 }
 0x18c   : > { %2791 = vmatmul.msk.f32.gmra.mxu2 %vm430_vm0, %v937_v41 }
 0x18f   : > { %v1141_v44 = vpop.f32.mrf.mxu3 }
 0x190   : > { %2808 = vmatmul.msk.f32.gmra.mxu0 %vm430_vm0, %v1141_v44 }
 0x192   : > { %v940_v45 = vpop.f32.mrf.mxu0 }
 0x193   : > { %2784 = vmatmul.msk.f32.gmra.mxu1 %vm430_vm0, %v940_v45 }
 0x194   : > { %2792 = vmatmul.msk.f32.gmra.mxu2 %vm430_vm0, %v940_v45  ;;  %v1485_v45 = vld [vmem:[#allocation4 + $0x160] sm:$0xff] }
 0x197   : > { %v1144_v46 = vpop.f32.mrf.mxu3 }
 0x198   : > { %2809 = vmatmul.msk.f32.gmra.mxu0 %vm430_vm0, %v1144_v46 }
 0x19a   : > { %v943_v47 = vpop.f32.mrf.mxu0 }
 0x19b   : > { %2785 = vmatmul.msk.f32.gmra.mxu1 %vm430_vm0, %v943_v47 }
 0x19c   : > { %2793 = vmatmul.msk.f32.gmra.mxu2 %vm430_vm0, %v943_v47 }
 0x19f   : > { %v1147_v48 = vpop.f32.mrf.mxu3 }
 0x1a0   : > { %2810 = vmatmul.msk.f32.gmra.mxu0 %vm430_vm0, %v1147_v48 }
 0x1a2   : > { %v946_v50 = vpop.f32.mrf.mxu0 }
 0x1a3   : > { %2786 = vmatmul.msk.f32.gmra.mxu1 %vm430_vm0, %v946_v50 }
 0x1a4   : > { %2794 = vmatmul.msk.f32.gmra.mxu2 %vm430_vm0, %v946_v50 }
 0x1a7   : > { %v1150_v51 = vpop.f32.mrf.mxu3 }
 0x1a8   : > { %2811 = vmatmul.msk.f32.gmra.mxu0 %vm430_vm0, %v1150_v51 }
 0x1aa   : > { %v949_v53 = vpop.f32.mrf.mxu0 }
 0x1ab   : > { %2787 = vmatmul.msk.f32.gmra.mxu1 %vm430_vm0, %v949_v53 }
 0x1ac   : > { %2795 = vmatmul.msk.f32.gmra.mxu2 %vm430_vm0, %v949_v53  ;;  %v1487_v53 = vld [vmem:[#allocation4 + $0x170] sm:$0xff] }
 0x1b3   : > { %2812 = vmatmul.msk.f32.vlgmr.msrb.gmra.mxu1 %vm430_vm0, %v1129_v36 }
 0x1b4   : > { %2820 = vmatmul.msk.f32.vlgmr.msrb.gmra.mxu2 %vm517_vm1, %v1281_v55 }
 0x1bb   : > { %2813 = vmatmul.msk.f32.gmra.mxu1 %vm430_vm0, %v1132_v16  ;;  %v1482_v16 = vld [vmem:[#allocation4 + $0x148] sm:$0xff] }
 0x1bc   : > { %2821 = vmatmul.msk.f32.gmra.mxu2 %vm517_vm1, %v1282_v58 }
 0x1c3   : > { %2814 = vmatmul.msk.f32.gmra.mxu1 %vm430_vm0, %v1135_v38 }
 0x1c4   : > { %2822 = vmatmul.msk.f32.gmra.mxu2 %vm517_vm1, %v1283_v61  ;;  %v1488_v61 = vld [vmem:[#allocation4 + $0x178] sm:$0xff] }
 0x1cb   : > { %2815 = vmatmul.msk.f32.gmra.mxu1 %vm430_vm0, %v1138_v40 }
 0x1cc   : > { %2823 = vmatmul.msk.f32.gmra.mxu2 %vm517_vm1, %v1284_v63 }
 0x1d3   : > { %2816 = vmatmul.msk.f32.gmra.mxu1 %vm430_vm0, %v1141_v44 }
 0x1d4   : > { %2824 = vmatmul.msk.f32.gmra.mxu2 %vm517_vm1, %v1285_v6 }
 0x1db   : > { %2817 = vmatmul.msk.f32.gmra.mxu1 %vm430_vm0, %v1144_v46 }
 0x1dc   : > { %2825 = vmatmul.msk.f32.gmra.mxu2 %vm517_vm1, %v1286_v8 }
 0x1e3   : > { %2818 = vmatmul.msk.f32.gmra.mxu1 %vm430_vm0, %v1147_v48  ;;  %v1486_v48 = vld [vmem:[#allocation4 + $0x168] sm:$0xff] }
 0x1e4   : > { %2826 = vmatmul.msk.f32.gmra.mxu2 %vm517_vm1, %v1287_v11 }
 0x1eb   : > { %2819 = vmatmul.msk.f32.gmra.mxu1 %vm430_vm0, %v1150_v51 }
 0x1ec   : > { %2827 = vmatmul.msk.f32.gmra.mxu2 %vm517_vm1, %v1288_v25 }
 0x1f0   : > { %v3540_v27 = vpop.f32.mrf.mxu1 }
 0x1f1   : > { %4044 = vst [vmem:[#allocation24_spill] sm:$0xff] %v3540_v27  ;;  %v1687_v27 = vld [vmem:[#allocation4 + $0x1a8] sm:$0xff] }
 0x1f3   : > { %2844 = vmatmul.msk.f32.vlgmr.msra.gmra.mxu1 %vm517_vm1, %v1481_v29 }
 0x1f7   : > { %v3543_v36 = vpop.f32.mrf.mxu2 }
 0x1f8   : > { %v3545_v15 = vpop.f32.mrf.mxu1 }
 0x1fb   : > { %2845 = vmatmul.msk.f32.gmra.mxu1 %vm517_vm1, %v1482_v16 }
 0x1ff   : > { %v3548_v37 = vpop.f32.mrf.mxu2 }
 0x200   : > { %v3550_v38 = vpop.f32.mrf.mxu1 }
 0x203   : > { %2846 = vmatmul.msk.f32.gmra.mxu1 %vm517_vm1, %v1483_v39 }
 0x207   : > { %v3553_v40 = vpop.f32.mrf.mxu2 }
 0x208   : > { %v3555_v41 = vpop.f32.mrf.mxu1 }
 0x20b   : > { %2847 = vmatmul.msk.f32.gmra.mxu1 %vm517_vm1, %v1484_v42  ;;  %v1557_v42 = vld [vmem:[#allocation2 + $0xb0] sm:$0xff] }
 0x20c   : > { %1597 = vmatpush.msra.mxu2 %v1557_v42 }
 0x20f   : > { %v3558_v43 = vpop.f32.mrf.mxu2 }
 0x210   : > { %v3560_v44 = vpop.f32.mrf.mxu1 }
 0x213   : > { %2848 = vmatmul.msk.f32.gmra.mxu1 %vm517_vm1, %v1485_v45 }
 0x217   : > { %v3563_v46 = vpop.f32.mrf.mxu2 }
 0x218   : > { %v3565_v47 = vpop.f32.mrf.mxu1 }
 0x21b   : > { %2849 = vmatmul.msk.f32.gmra.mxu1 %vm517_vm1, %v1486_v48  ;;  %v1555_v48 = vld [vmem:[#allocation2 + $0xa0] sm:$0xff] }
 0x21c   : > { %1598 = vmatpush.msra.mxu2 %v1555_v48  ;;  %v3610_v48 = vpop.f32.mrf.mxu0 }
 0x21d   : > { %4053 = vst [vmem:[#allocation33_spill] sm:$0xff] %v3610_v48 }
 0x21f   : > { %v3568_v50 = vpop.f32.mrf.mxu2 }
 0x220   : > { %4045 = vst [vmem:[#allocation25_spill] sm:$0xff] %v3568_v50  ;;  %v3570_v51 = vpop.f32.mrf.mxu1 }
 0x221   : > { %4046 = vst [vmem:[#allocation26_spill] sm:$0xff] %v3570_v51 }
 0x223   : > { %2850 = vmatmul.msk.f32.gmra.mxu1 %vm517_vm1, %v1487_v53 }
 0x227   : > { %v3573_v55 = vpop.f32.mrf.mxu2 }
 0x228   : > { %4047 = vst [vmem:[#allocation27_spill] sm:$0xff] %v3573_v55  ;;  %v3575_v58 = vpop.f32.mrf.mxu1 }
 0x229   : > { %4048 = vst [vmem:[#allocation28_spill] sm:$0xff] %v3575_v58  ;;  %v3618_v58 = vpop.f32.mrf.mxu0 }
 0x22b   : > { %2851 = vmatmul.msk.f32.gmra.mxu1 %vm517_vm1, %v1488_v61  ;;  %v1558_v61 = vld [vmem:[#allocation2 + $0xb8] sm:$0xff] }
 0x22c   : > { %1638 = vmatpush.msrb.mxu3 %v1558_v61 }
 0x22f   : > { %v3578_v63 = vpop.f32.mrf.mxu2 }
 0x230   : > { %4049 = vst [vmem:[#allocation29_spill] sm:$0xff] %v3578_v63  ;;  %v3580_v6 = vpop.f32.mrf.mxu1  ;;  %v1885_v63 = vld [vmem:[#allocation4 + $0x1d0] sm:$0xff] }
 0x237   : > { %v1330_v8 = vpop.f32.mrf.mxu2 }
 0x238   : > { %2828 = vmatmul.msk.f32.vlgmr.msra.gmra.mxu3 %vm430_vm0, %v1330_v8  ;;  %2836 = vmatmul.msk.f32.vlgmr.msra.gmra.mxu0 %vm430_vm0, %v1330_v8  ;;  %v3584_v11 = vpop.f32.mrf.mxu1  ;;  %v1556_v8 = vld [vmem:[#allocation2 + $0xa8] sm:$0xff] }
 0x239   : > { %1639 = vmatpush.msrb.mxu3 %v1556_v8 }
 0x23b   : > { %1927 = vmatpush.msra.mxu3 %v3295_v3 }
 0x23d   : > { %1928 = vmatpush.msra.mxu3 %v3293_v2 }
 0x23f   : > { %v1333_v25 = vpop.f32.mrf.mxu2  ;;  %1929 = vmatpush.msra.mxu3 %v3300_v4 }
 0x240   : > { %2829 = vmatmul.msk.f32.gmra.mxu3 %vm430_vm0, %v1333_v25  ;;  %2837 = vmatmul.msk.f32.gmra.mxu0 %vm430_vm0, %v1333_v25  ;;  %v3588_v29 = vpop.f32.mrf.mxu1 }
 0x241   : > { %1930 = vmatpush.msra.mxu3 %v3306_v5 }
 0x247   : > { %v1336_v16 = vpop.f32.mrf.mxu2 }
 0x248   : > { %2830 = vmatmul.msk.f32.gmra.mxu3 %vm430_vm0, %v1336_v16  ;;  %2838 = vmatmul.msk.f32.gmra.mxu0 %vm430_vm0, %v1336_v16  ;;  %v3592_v39 = vpop.f32.mrf.mxu1 }
 0x24f   : > { %v1339_v45 = vpop.f32.mrf.mxu2 }
 0x250   : > { %2831 = vmatmul.msk.f32.gmra.mxu3 %vm430_vm0, %v1339_v45  ;;  %2839 = vmatmul.msk.f32.gmra.mxu0 %vm430_vm0, %v1339_v45  ;;  %v3596_v53 = vpop.f32.mrf.mxu1 }
 0x251   : > { %4050 = vst [vmem:[#allocation30_spill] sm:$0xff] %v3596_v53 }
 0x257   : > { %v1342_v25 = vpop.f32.mrf.mxu2 }
 0x258   : > { %2832 = vmatmul.msk.f32.gmra.mxu3 %vm430_vm0, %v1342_v25  ;;  %2840 = vmatmul.msk.f32.gmra.mxu0 %vm430_vm0, %v1342_v25  ;;  %v3601_v16 = vpop.f32.mrf.mxu1 }
 0x259   : > { %4051 = vst [vmem:[#allocation31_spill] sm:$0xff] %v3601_v16 }
 0x25f   : > { %v1345_v42 = vpop.f32.mrf.mxu2 }
 0x260   : > { %2833 = vmatmul.msk.f32.gmra.mxu3 %vm430_vm0, %v1345_v42  ;;  %2841 = vmatmul.msk.f32.gmra.mxu0 %vm430_vm0, %v1345_v42  ;;  %v3608_v45 = vpop.f32.mrf.mxu1  ;;  %v1682_v42 = vld [vmem:[#allocation4 + $0x180] sm:$0xff] }
 0x261   : > { %4052 = vst [vmem:[#allocation32_spill] sm:$0xff] %v3608_v45  ;;  %v1757_v45 = vld [vmem:[#allocation2 + $0xc8] sm:$0xff] }
 0x267   : > { %v1348_v61 = vpop.f32.mrf.mxu2 }
 0x268   : > { %2834 = vmatmul.msk.f32.gmra.mxu3 %vm430_vm0, %v1348_v61  ;;  %2842 = vmatmul.msk.f32.gmra.mxu0 %vm430_vm0, %v1348_v61  ;;  %v3614_v8 = vpop.f32.mrf.mxu1  ;;  %v3624_v61 = vpop.f32.mrf.mxu0 }
 0x269   : > { %4054 = vst [vmem:[#allocation34_spill] sm:$0xff] %v3614_v8  ;;  %v1688_v8 = vld [vmem:[#allocation4 + $0x1b0] sm:$0xff] }
 0x26f   : > { %v1351_v25 = vpop.f32.mrf.mxu2 }
 0x270   : > { %2835 = vmatmul.msk.f32.gmra.mxu3 %vm430_vm0, %v1351_v25  ;;  %2843 = vmatmul.msk.f32.gmra.mxu0 %vm430_vm0, %v1351_v25  ;;  %v1530_v51 = vpop.f32.mrf.mxu1  ;;  %v3629_v22 = vpop.f32.mrf.mxu0 }
 0x271   : > { %2852 = vmatmul.msk.f32.vlgmr.msra.gmra.mxu2 %vm430_vm0, %v1530_v51 }
 0x278   : > { %2860 = vmatmul.msk.f32.vlgmr.msrb.gmra.mxu3 %vm430_vm0, %v1530_v51  ;;  %2868 = vmatmul.msk.f32.vlgmr.msrb.gmra.mxu0 %vm517_vm1, %v1682_v42  ;;  %v1533_v26 = vpop.f32.mrf.mxu1  ;;  %v1685_v42 = vld [vmem:[#allocation4 + $0x198] sm:$0xff]  ;;  %v3634_v48 = vpop.f32.mrf.mxu0 }
 0x279   : > { %2853 = vmatmul.msk.f32.gmra.mxu2 %vm430_vm0, %v1533_v26 }
 0x280   : > { %2861 = vmatmul.msk.f32.gmra.mxu3 %vm430_vm0, %v1533_v26  ;;  %2869 = vmatmul.msk.f32.gmra.mxu0 %vm517_vm1, %v1683_v35  ;;  %v1536_v25 = vpop.f32.mrf.mxu1  ;;  %v1686_v26 = vld [vmem:[#allocation4 + $0x1a0] sm:$0xff] }
 0x281   : > { %2854 = vmatmul.msk.f32.gmra.mxu2 %vm430_vm0, %v1536_v25 }
 0x288   : > { %2862 = vmatmul.msk.f32.gmra.mxu3 %vm430_vm0, %v1536_v25  ;;  %2870 = vmatmul.msk.f32.gmra.mxu0 %vm517_vm1, %v1684_v33  ;;  %v1539_v51 = vpop.f32.mrf.mxu1  ;;  %v3641_v25 = vpop.f32.mrf.mxu0 }
 0x289   : > { %2855 = vmatmul.msk.f32.gmra.mxu2 %vm430_vm0, %v1539_v51  ;;  %4055 = vst [vmem:[#allocation35_spill] sm:$0xff] %v3641_v25 }
 0x290   : > { %2863 = vmatmul.msk.f32.gmra.mxu3 %vm430_vm0, %v1539_v51  ;;  %2871 = vmatmul.msk.f32.gmra.mxu0 %vm517_vm1, %v1685_v42  ;;  %v1542_v35 = vpop.f32.mrf.mxu1  ;;  %v3647_v42 = vpop.f32.mrf.mxu0 }
 0x291   : > { %2856 = vmatmul.msk.f32.gmra.mxu2 %vm430_vm0, %v1542_v35  ;;  %4056 = vst [vmem:[#allocation36_spill] sm:$0xff] %v3647_v42 }
 0x298   : > { %2864 = vmatmul.msk.f32.gmra.mxu3 %vm430_vm0, %v1542_v35  ;;  %2872 = vmatmul.msk.f32.gmra.mxu0 %vm517_vm1, %v1686_v26  ;;  %v1545_v33 = vpop.f32.mrf.mxu1  ;;  %v3652_v26 = vpop.f32.mrf.mxu0 }
 0x299   : > { %2857 = vmatmul.msk.f32.gmra.mxu2 %vm430_vm0, %v1545_v33  ;;  %4057 = vst [vmem:[#allocation37_spill] sm:$0xff] %v3652_v26 }
 0x2a0   : > { %2865 = vmatmul.msk.f32.gmra.mxu3 %vm430_vm0, %v1545_v33  ;;  %2873 = vmatmul.msk.f32.gmra.mxu0 %vm517_vm1, %v1687_v27  ;;  %v1548_v51 = vpop.f32.mrf.mxu1  ;;  %v1883_v33 = vld [vmem:[#allocation4 + $0x1c0] sm:$0xff] }
 0x2a1   : > { %2858 = vmatmul.msk.f32.gmra.mxu2 %vm430_vm0, %v1548_v51 }
 0x2a8   : > { %2866 = vmatmul.msk.f32.gmra.mxu3 %vm430_vm0, %v1548_v51  ;;  %2874 = vmatmul.msk.f32.gmra.mxu0 %vm517_vm1, %v1688_v8  ;;  %v1551_v35 = vpop.f32.mrf.mxu1  ;;  %v1884_v8 = vld [vmem:[#allocation4 + $0x1c8] sm:$0xff] }
 0x2a9   : > { %2859 = vmatmul.msk.f32.gmra.mxu2 %vm430_vm0, %v1551_v35 }
 0x2b0   : > { %2867 = vmatmul.msk.f32.gmra.mxu3 %vm430_vm0, %v1551_v35  ;;  %2875 = vmatmul.msk.f32.gmra.mxu0 %vm517_vm1, %v1689_v52 }
 0x2b5   : > { %v3656_v27 = vpop.f32.mrf.mxu0 }
 0x2b8   : > { %2892 = vmatmul.msk.f32.vlgmr.msra.gmra.mxu3 %vm517_vm1, %v1883_v33  ;;  %v1758_v33 = vld [vmem:[#allocation2 + $0xd0] sm:$0xff] }
 0x2b9   : > { %1798 = vmatpush.msrb.mxu1 %v1758_v33 }
 0x2bb   : > { %v3659_v42 = vpop.f32.mrf.mxu3 }
 0x2bc   : > { %4058 = vst [vmem:[#allocation38_spill] sm:$0xff] %v3659_v42  ;;  %v1759_v42 = vld [vmem:[#allocation2 + $0xd8] sm:$0xff] }
 0x2bd   : > { %v3661_v51 = vpop.f32.mrf.mxu0  ;;  %1839 = vmatpush.msrb.mxu2 %v1759_v42  ;;  %v1888_v42 = vld [vmem:[#allocation4 + $0x1e8] sm:$0xff] }
 0x2bf   : > { %1840 = vmatpush.msrb.mxu2 %v1757_v45 }
 0x2c0   : > { %2893 = vmatmul.msk.f32.gmra.mxu3 %vm517_vm1, %v1884_v8  ;;  %v1756_v8 = vld [vmem:[#allocation2 + $0xc0] sm:$0xff] }
 0x2c1   : > { %1799 = vmatpush.msrb.mxu1 %v1756_v8  ;;  %2128 = vmatpush.msra.mxu2 %v3295_v3  ;;  %v1889_v3 = vld [vmem:[#allocation4 + $0x1f0] sm:$0xff] }
 0x2c3   : > { %v3664_v13 = vpop.f32.mrf.mxu3  ;;  %2129 = vmatpush.msra.mxu2 %v3293_v2  ;;  %2040 = vmatpush.msra.mxu1 %v1960_v10 }
 0x2c5   : > { %v3666_v26 = vpop.f32.mrf.mxu0  ;;  %2130 = vmatpush.msra.mxu2 %v3300_v4  ;;  %v1890_v4 = vld [vmem:[#allocation4 + $0x1f8] sm:$0xff] }
 0x2c7   : > { %2131 = vmatpush.msra.mxu2 %v3306_v5 }
 0x2c8   : > { %2894 = vmatmul.msk.f32.gmra.mxu3 %vm517_vm1, %v1885_v63 }
 0x2cb   : > { %v3669_v52 = vpop.f32.mrf.mxu3 }
 0x2cd   : > { %v3671_v35 = vpop.f32.mrf.mxu0 }
 0x2d0   : > { %2895 = vmatmul.msk.f32.gmra.mxu3 %vm517_vm1, %v1886_v34 }
 0x2d3   : > { %v3674_v23 = vpop.f32.mrf.mxu3 }
 0x2d5   : > { %v3676_v55 = vpop.f32.mrf.mxu0 }
 0x2d6   : > { %4059 = vst [vmem:[#allocation39_spill] sm:$0xff] %v3676_v55  ;;  %v2091_v55 = vld [vmem:[#allocation4 + $0x238] sm:$0xff] }
 0x2d8   : > { %2896 = vmatmul.msk.f32.gmra.mxu3 %vm517_vm1, %v1887_v32 }
 0x2db   : > { %v3682_v34 = vpop.f32.mrf.mxu3 }
 0x2dd   : > { %v3685_v63 = vpop.f32.mrf.mxu0 }
 0x2de   : > { %4060 = vst [vmem:[#allocation40_spill] sm:$0xff] %v3685_v63  ;;  %v1957_v63 = vld [vmem:[#allocation2 + $0xe0] sm:$0xff] }
 0x2e0   : > { %2897 = vmatmul.msk.f32.gmra.mxu3 %vm517_vm1, %v1888_v42 }
 0x2e3   : > { %v3688_v33 = vpop.f32.mrf.mxu3 }
 0x2e4   : > { %4061 = vst [vmem:[#allocation41_spill] sm:$0xff] %v3688_v33 }
 0x2e5   : > { %v3690_v45 = vpop.f32.mrf.mxu0 }
 0x2e6   : > { %4062 = vst [vmem:[#allocation42_spill] sm:$0xff] %v3690_v45 }
 0x2e8   : > { %2898 = vmatmul.msk.f32.gmra.mxu3 %vm517_vm1, %v1889_v3 }
 0x2eb   : > { %v3693_v32 = vpop.f32.mrf.mxu3 }
 0x2ec   : > { %4063 = vst [vmem:[#allocation43_spill] sm:$0xff] %v3693_v32 }
 0x2ed   : > { %v3695_v2 = vpop.f32.mrf.mxu0 }
 0x2ee   : > { %4064 = vst [vmem:[#allocation44_spill] sm:$0xff] %v3695_v2 }
 0x2f0   : > { %2899 = vmatmul.msk.f32.gmra.mxu3 %vm517_vm1, %v1890_v4 }
 0x2f3   : > { %v3698_v5 = vpop.f32.mrf.mxu3 }
 0x2f4   : > { %4065 = vst [vmem:[#allocation45_spill] sm:$0xff] %v3698_v5 }
 0x2f5   : > { %v1731_v8 = vpop.f32.mrf.mxu0 }
 0x2f6   : > { %2876 = vmatmul.msk.f32.vlgmr.msrb.gmra.mxu1 %vm430_vm0, %v1731_v8  ;;  %2884 = vmatmul.msk.f32.vlgmr.msrb.gmra.mxu2 %vm430_vm0, %v1731_v8 }
 0x2fb   : > { %v3702_v42 = vpop.f32.mrf.mxu3 }
 0x2fd   : > { %v1734_v45 = vpop.f32.mrf.mxu0 }
 0x2fe   : > { %2877 = vmatmul.msk.f32.gmra.mxu1 %vm430_vm0, %v1734_v45  ;;  %2885 = vmatmul.msk.f32.gmra.mxu2 %vm430_vm0, %v1734_v45  ;;  %v1959_v45 = vld [vmem:[#allocation2 + $0xf0] sm:$0xff] }
 0x2ff   : > { %1999 = vmatpush.msra.mxu0 %v1959_v45 }
 0x301   : > { %2000 = vmatpush.msra.mxu0 %v1957_v63 }
 0x303   : > { %v3706_v3 = vpop.f32.mrf.mxu3 }
 0x305   : > { %v1737_v32 = vpop.f32.mrf.mxu0 }
 0x306   : > { %2878 = vmatmul.msk.f32.gmra.mxu1 %vm430_vm0, %v1737_v32  ;;  %2886 = vmatmul.msk.f32.gmra.mxu2 %vm430_vm0, %v1737_v32  ;;  %v1958_v32 = vld [vmem:[#allocation2 + $0xe8] sm:$0xff] }
 0x307   : > { %2041 = vmatpush.msra.mxu1 %v1958_v32  ;;  %v2084_v32 = vld [vmem:[#allocation4 + $0x200] sm:$0xff] }
 0x30b   : > { %v3710_v4 = vpop.f32.mrf.mxu3 }
 0x30d   : > { %v1740_v5 = vpop.f32.mrf.mxu0 }
 0x30e   : > { %2879 = vmatmul.msk.f32.gmra.mxu1 %vm430_vm0, %v1740_v5  ;;  %2887 = vmatmul.msk.f32.gmra.mxu2 %vm430_vm0, %v1740_v5 }
 0x313   : > { %v3714_v8 = vpop.f32.mrf.mxu3 }
 0x315   : > { %v1743_v2 = vpop.f32.mrf.mxu0 }
 0x316   : > { %2880 = vmatmul.msk.f32.gmra.mxu1 %vm430_vm0, %v1743_v2  ;;  %2888 = vmatmul.msk.f32.gmra.mxu2 %vm430_vm0, %v1743_v2  ;;  %v3726_v2 = vpop.f32.mrf.mxu2 }
 0x317   : > { %4068 = vst [vmem:[#allocation48_spill] sm:$0xff] %v3726_v2 }
 0x31b   : > { %v3718_v16 = vpop.f32.mrf.mxu3 }
 0x31c   : > { %4066 = vst [vmem:[#allocation46_spill] sm:$0xff] %v3718_v16  ;;  %v2085_v16 = vld [vmem:[#allocation4 + $0x208] sm:$0xff] }
 0x31d   : > { %v1746_v50 = vpop.f32.mrf.mxu0 }
 0x31e   : > { %2881 = vmatmul.msk.f32.gmra.mxu1 %vm430_vm0, %v1746_v50  ;;  %2889 = vmatmul.msk.f32.gmra.mxu2 %vm430_vm0, %v1746_v50  ;;  %v1603_v50 = vpop.f32.mrf.mxu2 }
 0x323   : > { %v3722_v5 = vpop.f32.mrf.mxu3 }
 0x324   : > { %4067 = vst [vmem:[#allocation47_spill] sm:$0xff] %v3722_v5 }
 0x325   : > { %v1749_v33 = vpop.f32.mrf.mxu0 }
 0x326   : > { %2882 = vmatmul.msk.f32.gmra.mxu1 %vm430_vm0, %v1749_v33  ;;  %2890 = vmatmul.msk.f32.gmra.mxu2 %vm430_vm0, %v1749_v33  ;;  %v3738_v33 = vpop.f32.mrf.mxu2 }
 0x32b   : > { %v3728_v10 = vpop.f32.mrf.mxu3 }
 0x32c   : > { %4069 = vst [vmem:[#allocation49_spill] sm:$0xff] %v3728_v10  ;;  %v2086_v10 = vld [vmem:[#allocation4 + $0x210] sm:$0xff] }
 0x32d   : > { %v1752_v45 = vpop.f32.mrf.mxu0 }
 0x32e   : > { %2883 = vmatmul.msk.f32.gmra.mxu1 %vm430_vm0, %v1752_v45  ;;  %2891 = vmatmul.msk.f32.gmra.mxu2 %vm430_vm0, %v1752_v45  ;;  %v3743_v45 = vpop.f32.mrf.mxu2 }
 0x333   : > { %v3732_v63 = vpop.f32.mrf.mxu3 }
 0x334   : > { %4070 = vst [vmem:[#allocation50_spill] sm:$0xff] %v3732_v63  ;;  %v2087_v63 = vld [vmem:[#allocation4 + $0x218] sm:$0xff] }
 0x336   : > { %2916 = vmatmul.msk.f32.vlgmr.msra.gmra.mxu2 %vm517_vm1, %v2084_v32 }
 0x33b   : > { %v1932_v5 = vpop.f32.mrf.mxu3 }
 0x33c   : > { %2900 = vmatmul.msk.f32.vlgmr.msra.gmra.mxu0 %vm430_vm0, %v1932_v5  ;;  %2908 = vmatmul.msk.f32.vlgmr.msra.gmra.mxu1 %vm430_vm0, %v1932_v5 }
 0x33e   : > { %2917 = vmatmul.msk.f32.gmra.mxu2 %vm517_vm1, %v2085_v16  ;;  %v3748_v16 = vpop.f32.mrf.mxu2 }
 0x343   : > { %v1935_v2 = vpop.f32.mrf.mxu3 }
 0x344   : > { %2901 = vmatmul.msk.f32.gmra.mxu0 %vm430_vm0, %v1935_v2  ;;  %2909 = vmatmul.msk.f32.gmra.mxu1 %vm430_vm0, %v1935_v2 }
 0x346   : > { %2918 = vmatmul.msk.f32.gmra.mxu2 %vm517_vm1, %v2086_v10  ;;  %v2089_v10 = vld [vmem:[#allocation4 + $0x228] sm:$0xff]  ;;  %v3755_v7 = vpop.f32.mrf.mxu2 }
 0x347   : > { %4071 = vst [vmem:[#allocation51_spill] sm:$0xff] %v3755_v7 }
 0x34b   : > { %v1938_v32 = vpop.f32.mrf.mxu3 }
 0x34c   : > { %2902 = vmatmul.msk.f32.gmra.mxu0 %vm430_vm0, %v1938_v32  ;;  %2910 = vmatmul.msk.f32.gmra.mxu1 %vm430_vm0, %v1938_v32  ;;  %v2090_v32 = vld [vmem:[#allocation4 + $0x230] sm:$0xff] }
 0x34e   : > { %2919 = vmatmul.msk.f32.gmra.mxu2 %vm517_vm1, %v2087_v63 }
 0x353   : > { %v1941_v5 = vpop.f32.mrf.mxu3 }
 0x354   : > { %2903 = vmatmul.msk.f32.gmra.mxu0 %vm430_vm0, %v1941_v5  ;;  %2911 = vmatmul.msk.f32.gmra.mxu1 %vm430_vm0, %v1941_v5  ;;  %v3761_v5 = vpop.f32.mrf.mxu2 }
 0x355   : > { %4072 = vst [vmem:[#allocation52_spill] sm:$0xff] %v3761_v5 }
 0x356   : > { %2920 = vmatmul.msk.f32.gmra.mxu2 %vm517_vm1, %v2088_v30 }
 0x35b   : > { %v1944_v2 = vpop.f32.mrf.mxu3 }
 0x35c   : > { %2904 = vmatmul.msk.f32.gmra.mxu0 %vm430_vm0, %v1944_v2  ;;  %2912 = vmatmul.msk.f32.gmra.mxu1 %vm430_vm0, %v1944_v2  ;;  %v855_v2 = vadd.f32 %v3422_v12, %v3487_v49  ;;  %v3770_v7 = vpop.f32.mrf.mxu2 }
 0x35e   : > { %2921 = vmatmul.msk.f32.gmra.mxu2 %vm517_vm1, %v2089_v10  ;;  %v817_v10 = vadd.f32 %v3498_v56, %v3428_v17  ;;  %v858_v17 = vadd.f32 %v3426_v14, %v3496_v54  ;;  %v820_v56 = vadd.f32 %v3506_v59, %v3432_v19  ;;  %v823_v54 = vadd.f32 %v3512_v62, %v3436_v21 }
 0x35f   : > { %v864_v62 = vadd.f32 %v3434_v20, %v3508_v60 }
 0x363   : > { %v1947_v63 = vpop.f32.mrf.mxu3 }
 0x364   : > { %2905 = vmatmul.msk.f32.gmra.mxu0 %vm430_vm0, %v1947_v63  ;;  %2913 = vmatmul.msk.f32.gmra.mxu1 %vm430_vm0, %v1947_v63  ;;  %v1064_v63 = vadd.f32 %v3543_v36, %v855_v2 }
 0x366   : > { %2922 = vmatmul.msk.f32.gmra.mxu2 %vm517_vm1, %v2090_v32  ;;  %v1065_v32 = vadd.f32 %v3545_v15, %v817_v10  ;;  %v1265_v53 = vadd.f32 %v3580_v6, %v1064_v63  ;;  %v1066_v6 = vadd.f32 %v3548_v37, %v858_v17 }
 0x368   : > { %v1266_v12 = vadd.f32 %v3618_v58, %v1065_v32  ;;  %v1465_v49 = vadd.f32 %v3656_v27, %v1265_v53  ;;  %v1267_v53 = vadd.f32 %v3584_v11, %v1066_v6  ;;  %v1069_v11 = vadd.f32 %v3555_v41, %v823_v54  ;;  %v4081_v54 = vld [vmem:[#allocation51_spill] sm:$0xff] }
 0x36a   : > { %v1466_v36 = vadd.f32 %v3664_v13, %v1266_v12  ;;  %v1666_v15 = vadd.f32 %v3702_v42, %v1465_v49  ;;  %v1467_v19 = vadd.f32 %v3661_v51, %v1267_v53  ;;  %v861_v13 = vadd.f32 %v3430_v18, %v3502_v57  ;;  %v4075_v49 = vld [vmem:[#allocation39_spill] sm:$0xff]  ;;  %v2158_v53 = vld [vmem:[#allocation2 + $0x100] sm:$0xff] }
 0x36b   : > { %v1950_v30 = vpop.f32.mrf.mxu3  ;;  %v1270_v21 = vadd.f32 %v3629_v22, %v1069_v11  ;;  %v2288_v11 = vld [vmem:[%s4023_s3 + $0x20] sm:$0xff] }
 0x36c   : > { %2906 = vmatmul.msk.f32.gmra.mxu0 %vm430_vm0, %v1950_v30  ;;  %2914 = vmatmul.msk.f32.gmra.mxu1 %vm430_vm0, %v1950_v30  ;;  %v1067_v30 = vadd.f32 %v3550_v38, %v820_v56  ;;  %v1668_v37 = vadd.f32 %v3706_v3, %v1467_v19  ;;  %v1068_v42 = vadd.f32 %v3553_v40, %v861_v13  ;;  %v4076_v56 = vld [vmem:[#allocation19_spill] sm:$0xff]  ;;  %v4080_v19 = vld [vmem:[#allocation25_spill] sm:$0xff] }
 0x36d   : > { %v826_v40 = vadd.f32 %v3518_v1, %v3440_v28  ;;  %v1470_v41 = vadd.f32 %v3674_v23, %v1270_v21  ;;  %v867_v1 = vadd.f32 %v3438_v24, %v3514_v0  ;;  %v829_v23 = vadd.f32 %v3524_v9, %v3450_v31  ;;  %v2289_v24 = vld [vmem:[%s4023_s3 + $0x28] sm:$0xff]  ;;  %v2160_v0 = vld [vmem:[#allocation2 + $0x110] sm:$0xff] }
 0x36e   : > { %2923 = vmatmul.msk.f32.gmra.mxu2 %vm517_vm1, %v2091_v55  ;;  %v1268_v14 = vadd.f32 %v3624_v61, %v1067_v30  ;;  %v1269_v10 = vadd.f32 %v3588_v29, %v1068_v42  ;;  %v3170_v9 = vmov 0   ;;  %2200 = vmatpush.msrb.mxu3 %v2160_v0  ;;  %v4079_v30 = vld [vmem:[#allocation46_spill] sm:$0xff]  ;;  %v2291_v42 = vld [vmem:[%s4023_s3 + $0x38] sm:$0xff] }
 0x36f   : > { %v1071_v29 = vadd.f32 %v3560_v44, %v826_v40  ;;  %v1671_v63 = vadd.f32 %v3743_v45, %v1470_v41  ;;  %3008 = vset.pattern.permute.xlu1 %v3170_v9  ;;  %3007 = vset.pattern.permute.xlu0 %v3170_v9  ;;  %v4083_v21 = vld [vmem:[#allocation40_spill] sm:$0xff]  ;;  %v4085_v40 = vld [vmem:[#allocation14_spill] sm:$0xff] }
 0x370   : > { %v1468_v59 = vadd.f32 %v3669_v52, %v1268_v14  ;;  %v1469_v57 = vadd.f32 %v3666_v26, %v1269_v10  ;;  %2319 = vperm.xlu1 %3008, %v2289_v24   ;;  %3009 = vset.pattern.permute.xlu2 %v3170_v9  ;;  %v2159_v14 = vld [vmem:[#allocation2 + $0x108] sm:$0xff] }
 0x371   : > { %v1272_v28 = vadd.f32 %v3634_v48, %v1071_v29  ;;  %2201 = vmatpush.msrb.mxu3 %v2158_v53  ;;  %2329 = vperm.xlu0 %3007, %v2291_v42   ;;  %v4087_v29 = vld [vmem:[#allocation27_spill] sm:$0xff]  ;;  %v4100_v53 = vld [vmem:[#allocation33_spill] sm:$0xff] }
 0x372   : > { %v1670_v52 = vadd.f32 %v3710_v4, %v1469_v57  ;;  %v1072_v4 = vadd.f32 %v3563_v46, %v867_v1 }
 0x373   : > { %v3774_v5 = vpop.f32.mrf.mxu1  ;;  %v1953_v25 = vpop.f32.mrf.mxu3 }
 0x374   : > { %2907 = vmatmul.msk.f32.gmra.mxu0 %vm430_vm0, %v1953_v25  ;;  %2915 = vmatmul.msk.f32.gmra.mxu1 %vm430_vm0, %v1953_v25  ;;  %v1667_v25 = vadd.f32 %v1603_v50, %v1466_v36  ;;  %v1669_v50 = vadd.f32 %v3738_v33, %v1468_v59  ;;  %v1070_v33 = vadd.f32 %v3558_v43, %v864_v62  ;;  %v4077_v36 = vld [vmem:[#allocation13_spill] sm:$0xff]  ;;  %v4084_v62 = vld [vmem:[#allocation20_spill] sm:$0xff] }
 0x375   : > { %v1472_v43 = vadd.f32 %v3682_v34, %v1272_v28  ;;  %v4073_v34 = vld [vmem:[#allocation30_spill] sm:$0xff]  ;;  %v873_v41 = vadd.f32 %v4085_v40, %v4084_v62 }
 0x376   : > { %v1271_v32 = vadd.f32 %v3592_v39, %v1070_v33  ;;  %v1073_v39 = vadd.f32 %v3565_v47, %v829_v23  ;;  %v4074_v47 = vld [vmem:[#allocation35_spill] sm:$0xff]  ;;  %v2284_v28 = vld [vmem:[%s4023_s3] sm:$0xff] }
 0x377   : > { %v1673_v12 = vadd.f32 %v3748_v16, %v1472_v43  ;;  %v4089_v23 = vld [vmem:[#allocation42_spill] sm:$0xff] }
 0x378   : > { %v1471_v60 = vadd.f32 %v3671_v35, %v1271_v32  ;;  %v2161_v35 = vld [vmem:[#allocation2 + $0x118] sm:$0xff]  ;;  %v1274_v16 = vadd.f32 %v4074_v47, %v1073_v39  ;;  %2314 = vperm.xlu1 %3008, %v2288_v11   ;;  %v2290_v32 = vld [vmem:[%s4023_s3 + $0x30] sm:$0xff]  ;;  %v4095_v47 = vld [vmem:[#allocation18_spill] sm:$0xff] }
 0x379   : > { %v1842_v55 = vpop.f32.mrf.mxu2  ;;  %2241 = vmatpush.msrb.mxu0 %v2161_v35  ;;  %2324 = vperm.xlu0 %3007, %v2290_v32   ;;  %v4093_v35 = vld [vmem:[#allocation29_spill] sm:$0xff] }
 0x37a   : > { %v3789_v2 = vadd.f32 %v1842_v55, %v1666_v15  ;;  %v1672_v44 = vadd.f32 %v3714_v8, %v1471_v60  ;;  %v1273_v8 = vadd.f32 %v4073_v34, %v1072_v4  ;;  %v870_v15 = vadd.f32 %v4077_v36, %v4076_v56  ;;  %v4078_v55 = vld [vmem:[#allocation41_spill] sm:$0xff]  ;;  %v4088_v60 = vld [vmem:[#allocation32_spill] sm:$0xff]  ;;  %v4090_v4 = vld [vmem:[#allocation22_spill] sm:$0xff] }
 0x37b   : > { %v1804_v58 = vpop.f32.mrf.mxu1  ;;  %v1474_v6 = vadd.f32 %v4078_v55, %v1274_v16  ;;  %2242 = vmatpush.msrb.mxu0 %v2159_v14  ;;  %v2285_v34 = vld [vmem:[%s4023_s3 + $0x8] sm:$0xff]  ;;  %v4097_v56 = vld [vmem:[#allocation24_spill] sm:$0xff]  ;;  %v2366_v32 = vld [vmem:[%s4025_s5] sm:$0xff] }
 0x37c   : > { %v3792_v27 = vadd.f32 %v1804_v58, %v1667_v25  ;;  %v1473_v17 = vadd.f32 %v4075_v49, %v1273_v8  ;;  %v1074_v13 = vadd.f32 %v4080_v19, %v870_v15  ;;  %v4094_v8 = vld [vmem:[#allocation12_spill] sm:$0xff]  ;;  %v4096_v49 = vld [vmem:[#allocation34_spill] sm:$0xff] }
 0x37d   : > { %v1675_v59 = vadd.f32 %v4081_v54, %v1474_v6  ;;  %v814_v16 = vadd.f32 %v4095_v47, %v4094_v8  ;;  %v4098_v15 = vld [vmem:[#allocation44_spill] sm:$0xff]  ;;  %v4099_v6 = vld [vmem:[#allocation50_spill] sm:$0xff] }
 0x37e   : > { %v1674_v25 = vadd.f32 %v4079_v30, %v1473_v17 }
 0x37f   : > { %v1063_v36 = vadd.f32 %v4097_v56, %v814_v16 }
 0x380   : > { %2294 = vperm.xlu1 %3008, %v2284_v28  }
 0x381   : > { %v1845_v38 = vpop.f32.mrf.mxu2  ;;  %2299 = vperm.xlu0 %3007, %v2285_v34   ;;  %v1264_v14 = vadd.f32 %v4100_v53, %v1063_v36 }
 0x382   : > { %v3805_v61 = vadd.f32 %v1845_v38, %v1668_v37 }
 0x383   : > { %v1807_v51 = vpop.f32.mrf.mxu1 }
 0x384   : > { %v3808_v18 = vadd.f32 %v1807_v51, %v1669_v50  ;;  %v4082_v50 = vld [vmem:[#allocation31_spill] sm:$0xff] }
 0x385   : > { %v1275_v51 = vadd.f32 %v4082_v50, %v1074_v13  ;;  %v4101_v13 = vld [vmem:[#allocation38_spill] sm:$0xff] }
 0x386   : > { %v1464_v54 = vadd.f32 %v4101_v13, %v1264_v14  ;;  %v4105_v14 = vld [vmem:[#allocation17_spill] sm:$0xff]  ;;  %v4106_v13 = vld [vmem:[#allocation23_spill] sm:$0xff] }
 0x387   : > { %v1475_v57 = vadd.f32 %v4083_v21, %v1275_v51 }
 0x389   : > { %v1848_v3 = vpop.f32.mrf.mxu2 }
 0x38a   : > { %v3821_v22 = vadd.f32 %v1848_v3, %v1670_v52  ;;  %v4086_v52 = vld [vmem:[#allocation47_spill] sm:$0xff] }
 0x38b   : > { %v1810_v26 = vpop.f32.mrf.mxu1  ;;  %v1676_v3 = vadd.f32 %v4086_v52, %v1475_v57 }
 0x38c   : > { %v3824_v20 = vadd.f32 %v1810_v26, %v1671_v63  ;;  %v1076_v63 = vadd.f32 %v4087_v29, %v873_v41 }
 0x38e   : > { %v1277_v1 = vadd.f32 %v4088_v60, %v1076_v63 }
 0x390   : > { %v1477_v43 = vadd.f32 %v4089_v23, %v1277_v1 }
 0x391   : > { %v1851_v45 = vpop.f32.mrf.mxu2 }
 0x392   : > { %v3837_v48 = vadd.f32 %v1851_v45, %v1672_v44  ;;  %v4091_v45 = vld [vmem:[#allocation16_spill] sm:$0xff] }
 0x393   : > { %v1813_v31 = vpop.f32.mrf.mxu1  ;;  %v876_v39 = vadd.f32 %v4091_v45, %v4090_v4 }
 0x394   : > { %v3843_v46 = vadd.f32 %v1813_v31, %v1673_v12  ;;  %v4092_v12 = vld [vmem:[#allocation49_spill] sm:$0xff] }
 0x395   : > { %v1678_v24 = vadd.f32 %v4092_v12, %v1477_v43  ;;  %v1078_v31 = vadd.f32 %v4093_v35, %v876_v39 }
 0x397   : > { %v1279_v17 = vadd.f32 %v4096_v49, %v1078_v31 }
 0x399   : > { %v1854_v58 = vpop.f32.mrf.mxu2  ;;  %v1479_v55 = vadd.f32 %v4098_v15, %v1279_v17 }
 0x39a   : > { %v3853_v37 = vadd.f32 %v1854_v58, %v1674_v25 }
 0x39b   : > { %v1816_v38 = vpop.f32.mrf.mxu1  ;;  %v1680_v30 = vadd.f32 %v4099_v6, %v1479_v55  ;;  %v4103_v6 = vld [vmem:[#allocation15_spill] sm:$0xff] }
 0x39c   : > { %v3862_v10 = vadd.f32 %v1816_v38, %v1675_v59  ;;  %v4102_v59 = vld [vmem:[#allocation48_spill] sm:$0xff] }
 0x39d   : > { %v1665_v38 = vadd.f32 %v4102_v59, %v1464_v54  ;;  %v835_v54 = vadd.f32 %v4106_v13, %v4105_v14  ;;  %v4107_v59 = vld [vmem:[#allocation26_spill] sm:$0xff] }
 0x39f   : > { %v1866_v42 = vadd.f32 %v3774_v5, %v1665_v38  ;;  %v2287_v5 = vld [vmem:[%s4023_s3 + $0x18] sm:$0xff] }
 0x3a0   : > { %2309 = vperm.xlu2 %3009, %v2287_v5   ;;  %v4111_v5 = vld [vmem:[#allocation43_spill] sm:$0xff] }
 0x3a1   : > { %v1857_v33 = vpop.f32.mrf.mxu2 }
 0x3a2   : > { %v3869_v26 = vadd.f32 %v1857_v33, %v1676_v3 }
 0x3a3   : > { %v3879_v44 = vpop.f32.mrf.mxu1 }
 0x3a9   : > { %v1860_v0 = vpop.f32.mrf.mxu2 }
 0x3aa   : > { %v3885_v9 = vadd.f32 %v1860_v0, %v1678_v24 }
 0x3ab   : > { %v3896_v25 = vpop.f32.mrf.mxu1 }
 0x3b1   : > { %v1863_v58 = vpop.f32.mrf.mxu2 }
 0x3b2   : > { %v3899_v19 = vadd.f32 %v1863_v58, %v1680_v30  ;;  %v4104_v30 = vld [vmem:[#allocation21_spill] sm:$0xff] }
 0x3b3   : > { %v832_v58 = vadd.f32 %v4104_v30, %v4103_v6 }
 0x3b5   : > { %v1075_v38 = vadd.f32 %v4107_v59, %v832_v58 }
 0x3b9   : > { %v2002_v11 = vpop.f32.mrf.mxu0  ;;  %v2043_v50 = vpop.f32.mrf.mxu1 }
 0x3ba   : > { %v2067_v51 = vadd.f32 %v2002_v11, %v1866_v42  ;;  %v2068_v21 = vadd.f32 %v2043_v50, %v3789_v2  ;;  %v2133_v57 = vpop.f32.mrf.mxu2  ;;  %v4108_v42 = vld [vmem:[#allocation28_spill] sm:$0xff] }
 0x3bb   : > { %2924 = vmatmul.msk.f32.vlgmr.msrb.gmra.mxu3 %vm430_vm0, %v2133_v57  ;;  %2932 = vmatmul.msk.f32.vlgmr.msrb.gmra.mxu0 %vm430_vm0, %v2133_v57  ;;  %v1077_v11 = vadd.f32 %v4108_v42, %v835_v54 }
 0x3c1   : > { %v2005_v62 = vpop.f32.mrf.mxu0  ;;  %v3948_v35 = vpop.f32.mrf.mxu1 }
 0x3c2   : > { %v3908_v40 = vadd.f32 %v2005_v62, %v3792_v27  ;;  %v2136_v41 = vpop.f32.mrf.mxu2  ;;  %v2286_v27 = vld [vmem:[%s4023_s3 + $0x10] sm:$0xff]  ;;  %v4110_v62 = vld [vmem:[#allocation37_spill] sm:$0xff] }
 0x3c3   : > { %2925 = vmatmul.msk.f32.gmra.mxu3 %vm430_vm0, %v2136_v41  ;;  %2933 = vmatmul.msk.f32.gmra.mxu0 %vm430_vm0, %v2136_v41  ;;  %v1278_v41 = vadd.f32 %v4110_v62, %v1077_v11 }
 0x3c4   : > { %2304 = vperm.xlu2 %3009, %v2286_v27  }
 0x3c9   : > { %v2008_v2 = vpop.f32.mrf.mxu0  ;;  %v3952_v8 = vpop.f32.mrf.mxu1 }
 0x3ca   : > { %v3916_v52 = vadd.f32 %v2008_v2, %v3808_v18  ;;  %v2139_v3 = vpop.f32.mrf.mxu2  ;;  %v2367_v18 = vld [vmem:[%s4025_s5 + $0x8] sm:$0xff] }
 0x3cb   : > { %2926 = vmatmul.msk.f32.gmra.mxu3 %vm430_vm0, %v2139_v3  ;;  %2934 = vmatmul.msk.f32.gmra.mxu0 %vm430_vm0, %v2139_v3 }
 0x3cc   : > { %2375 = vperm.xlu0 %3007, %v2367_v18   ;;  %2370 = vperm.xlu2 %3009, %v2366_v32   ;;  %v4113_v18 = vld [vmem:[#allocation52_spill] sm:$0xff] }
 0x3d1   : > { %v2011_v33 = vpop.f32.mrf.mxu0  ;;  %v3956_v49 = vpop.f32.mrf.mxu1 }
 0x3d2   : > { %v3924_v29 = vadd.f32 %v2011_v33, %v3824_v20  ;;  %v2142_v63 = vpop.f32.mrf.mxu2  ;;  %v4112_v33 = vld [vmem:[#allocation45_spill] sm:$0xff] }
 0x3d3   : > { %2927 = vmatmul.msk.f32.gmra.mxu3 %vm430_vm0, %v2142_v63  ;;  %2935 = vmatmul.msk.f32.gmra.mxu0 %vm430_vm0, %v2142_v63  ;;  %v1478_v63 = vadd.f32 %v4112_v33, %v1278_v41 }
 0x3d9   : > { %v2014_v28 = vpop.f32.mrf.mxu0  ;;  %v3960_v15 = vpop.f32.mrf.mxu1 }
 0x3da   : > { %v2075_v60 = vadd.f32 %v2014_v28, %v3843_v46  ;;  %v2145_v20 = vpop.f32.mrf.mxu2 }
 0x3db   : > { %2928 = vmatmul.msk.f32.gmra.mxu3 %vm430_vm0, %v2145_v20  ;;  %2936 = vmatmul.msk.f32.gmra.mxu0 %vm430_vm0, %v2145_v20  ;;  %v1679_v20 = vadd.f32 %v3770_v7, %v1478_v63 }
 0x3e1   : > { %v2017_v1 = vpop.f32.mrf.mxu0  ;;  %v2058_v50 = vpop.f32.mrf.mxu1 }
 0x3e2   : > { %v2077_v23 = vadd.f32 %v2017_v1, %v3862_v10  ;;  %v2148_v43 = vpop.f32.mrf.mxu2  ;;  %v2320_v28 = vpop.permute.xlu1 %2319 }
 0x3e3   : > { %2929 = vmatmul.msk.f32.gmra.mxu3 %vm430_vm0, %v2148_v43  ;;  %2937 = vmatmul.msk.f32.gmra.mxu0 %vm430_vm0, %v2148_v43  ;;  %v2330_v3 = vpop.permute.xlu0 %2329  ;;  %v1880_v43 = vadd.f32 %v3896_v25, %v1679_v20 }
 0x3e9   : > { %v2020_v46 = vpop.f32.mrf.mxu0 }
 0x3ea   : > { %v2151_v4 = vpop.f32.mrf.mxu2  ;;  %v2315_v11 = vpop.permute.xlu1 %2314 }
 0x3eb   : > { %2930 = vmatmul.msk.f32.gmra.mxu3 %vm430_vm0, %v2151_v4  ;;  %2938 = vmatmul.msk.f32.gmra.mxu0 %vm430_vm0, %v2151_v4  ;;  %v2325_v54 = vpop.permute.xlu0 %2324 }
 0x3f1   : > { %v2023_v39 = vpop.f32.mrf.mxu0 }
 0x3f2   : > { %v2154_v45 = vpop.f32.mrf.mxu2  ;;  %v2295_v33 = vpop.permute.xlu1 %2294 }
 0x3f3   : > { %2931 = vmatmul.msk.f32.gmra.mxu3 %vm430_vm0, %v2154_v45  ;;  %2939 = vmatmul.msk.f32.gmra.mxu0 %vm430_vm0, %v2154_v45  ;;  %v2061_v45 = vpop.f32.mrf.mxu1 }
 0x438   : > { %v2244_v12 = vpop.f32.mrf.mxu0 }
 0x439   : > { %v3944_v24 = vadd.f32 %v2244_v12, %v2068_v21  ;;  %v2081_v12 = vadd.f32 %v2023_v39, %v1880_v43 }
 0x43e   : > { %v2203_v10 = vpop.f32.mrf.mxu3 }
 0x43f   : > { %v3946_v0 = vadd.f32 %v2203_v10, %v2067_v51  ;;  %v4109_v51 = vld [vmem:[#allocation36_spill] sm:$0xff]  ;;  %v3978_v10 = vpop.permute.xlu2 %2309 }
 0x440   : > { %v3950_v31 = vpop.f32.mrf.mxu0  ;;  %v1276_v21 = vadd.f32 %v4109_v51, %v1075_v38 }
 0x442   : > { %v1476_v2 = vadd.f32 %v4111_v5, %v1276_v21  ;;  %v2064_v21 = vpop.f32.mrf.mxu1 }
 0x443   : > { %v2082_v41 = vadd.f32 %v2064_v21, %v3899_v19  ;;  %v2076_v19 = vadd.f32 %v3960_v15, %v3853_v37 }
 0x444   : > { %v1677_v32 = vadd.f32 %v4113_v18, %v1476_v2 }
 0x446   : > { %v2206_v34 = vpop.f32.mrf.mxu3  ;;  %v1878_v1 = vadd.f32 %v3879_v44, %v1677_v32 }
 0x447   : > { %v2270_v62 = vadd.f32 %v2206_v34, %v3908_v40  ;;  %v2078_v40 = vadd.f32 %v2058_v50, %v3869_v26  ;;  %v2332_v34 = vadd.f32 %v2295_v33, %v3946_v0  ;;  %v2364_v26 = vld [vmem:[#allocation6] sm:$0xff]  ;;  %v2072_v0 = vadd.f32 %v3952_v8, %v3821_v22 }
 0x448   : > { %v3954_v47 = vpop.f32.mrf.mxu0  ;;  %v2079_v4 = vadd.f32 %v2020_v46, %v1878_v1 }
 0x449   : > { %v2348_v43 = vmax.f32 %v2332_v34, 0.0 }
 0x44e   : > { %v2209_v16 = vpop.f32.mrf.mxu3 }
 0x44f   : > { %v2272_v25 = vadd.f32 %v2209_v16, %v3916_v52  ;;  %v2080_v52 = vadd.f32 %v2061_v45, %v3885_v9  ;;  %v2074_v9 = vadd.f32 %v3956_v49, %v3837_v48  ;;  %v2070_v48 = vadd.f32 %v3948_v35, %v3805_v61 }
 0x450   : > { %v3958_v56 = vpop.f32.mrf.mxu0  ;;  %v2273_v49 = vadd.f32 %v3954_v47, %v2072_v0  ;;  %v2333_v61 = vadd.f32 %v2295_v33, %v3944_v24 }
 0x451   : > { %v2275_v50 = vadd.f32 %v3958_v56, %v2074_v9 }
 0x456   : > { %v2212_v17 = vpop.f32.mrf.mxu3 }
 0x457   : > { %v2274_v7 = vadd.f32 %v2212_v17, %v3924_v29  ;;  %v2300_v17 = vpop.permute.xlu0 %2299 }
 0x458   : > { %v3962_v55 = vpop.f32.mrf.mxu0  ;;  %v2334_v16 = vadd.f32 %v2300_v17, %v2270_v62 }
 0x45a   : > { %v2350_v32 = vmax.f32 %v2334_v16, 0.0 }
 0x45e   : > { %v2215_v36 = vpop.f32.mrf.mxu3 }
 0x45f   : > { %v2276_v59 = vadd.f32 %v2215_v36, %v2075_v60  ;;  %v2305_v60 = vpop.permute.xlu2 %2304  ;;  %v2376_v24 = vpop.permute.xlu0 %2375 }
 0x460   : > { %v2259_v57 = vpop.f32.mrf.mxu0  ;;  %v2336_v5 = vadd.f32 %v2305_v60, %v2272_v25  ;;  %v2337_v8 = vadd.f32 %v2305_v60, %v2273_v49 }
 0x461   : > { %v2340_v46 = vadd.f32 %v2315_v11, %v2276_v59  ;;  %v2279_v20 = vadd.f32 %v2259_v57, %v2078_v40 }
 0x462   : > { %v2352_v63 = vmax.f32 %v2336_v5, 0.0  ;;  %v2353_v35 = vmax.f32 %v2337_v8, 0.0 }
 0x463   : > { %v2356_v29 = vmax.f32 %v2340_v46, 0.0  ;;  %v2343_v37 = vadd.f32 %v2320_v28, %v2279_v20 }
 0x465   : > { %v2359_v22 = vmax.f32 %v2343_v37, 0.0 }
 0x466   : > { %v2218_v53 = vpop.f32.mrf.mxu3 }
 0x467   : > { %v2278_v14 = vadd.f32 %v2218_v53, %v2077_v23  ;;  %v2338_v23 = vadd.f32 %v3978_v10, %v2274_v7 }
 0x468   : > { %v2262_v30 = vpop.f32.mrf.mxu0 }
 0x469   : > { %v2342_v44 = vadd.f32 %v2320_v28, %v2278_v14  ;;  %v2354_v2 = vmax.f32 %v2338_v23, 0.0  ;;  %v2281_v18 = vadd.f32 %v2262_v30, %v2080_v52  ;;  %v2365_v28 = vld [vmem:[#allocation6 + $0x8] sm:$0xff] }
 0x46b   : > { %v2358_v53 = vmax.f32 %v2342_v44, 0.0  ;;  %v2345_v45 = vadd.f32 %v2325_v54, %v2281_v18 }
 0x46d   : > { %v2361_v57 = vmax.f32 %v2345_v45, 0.0 }
 0x46e   : > { %v2221_v27 = vpop.f32.mrf.mxu3 }
 0x46f   : > { %v2280_v6 = vadd.f32 %v2221_v27, %v2079_v4  ;;  %v2277_v4 = vadd.f32 %v3962_v55, %v2076_v19 }
 0x470   : > { %v2265_v36 = vpop.f32.mrf.mxu0 }
 0x471   : > { %v2344_v38 = vadd.f32 %v2325_v54, %v2280_v6  ;;  %v2283_v27 = vadd.f32 %v2265_v36, %v2082_v41  ;;  %v2341_v55 = vadd.f32 %v2315_v11, %v2277_v4 }
 0x473   : > { %v2360_v39 = vmax.f32 %v2344_v38, 0.0  ;;  %v2347_v1 = vadd.f32 %v2330_v3, %v2283_v27  ;;  %v2357_v56 = vmax.f32 %v2341_v55, 0.0 }
 0x475   : > { %v2363_v15 = vmax.f32 %v2347_v1, 0.0 }
 0x476   : > { %v2224_v58 = vpop.f32.mrf.mxu3 }
 0x477   : > { %v2282_v13 = vadd.f32 %v2224_v58, %v2081_v12  ;;  %v2339_v12 = vadd.f32 %v3978_v10, %v2275_v50  ;;  %v2371_v10 = vpop.permute.xlu2 %2370 }
 0x479   : > { %v2346_v42 = vadd.f32 %v2330_v3, %v2282_v13  ;;  %v2271_v3 = vadd.f32 %v3950_v31, %v2070_v48  ;;  %v2355_v30 = vmax.f32 %v2339_v12, 0.0  ;;  %v2349_v31 = vmax.f32 %v2333_v61, 0.0 }
 0x47b   : > { %v2362_v51 = vmax.f32 %v2346_v42, 0.0  ;;  %v2335_v6 = vadd.f32 %v2300_v17, %v2271_v3 }
 0x47d   : > { %2393 = vmatpush.msrb.mxu1 %v2362_v51  ;;  %v2351_v47 = vmax.f32 %v2335_v6, 0.0 }
 0x47f   : > { %2394 = vmatpush.msrb.mxu1 %v2360_v39 }
 0x481   : > { %2395 = vmatpush.msrb.mxu1 %v2358_v53 }
 0x483   : > { %2396 = vmatpush.msrb.mxu1 %v2356_v29 }
 0x485   : > { %2397 = vmatpush.msrb.mxu1 %v2354_v2 }
 0x487   : > { %2398 = vmatpush.msrb.mxu1 %v2352_v63 }
 0x489   : > { %2399 = vmatpush.msrb.mxu1 %v2350_v32 }
 0x48b   : > { %2400 = vmatpush.msrb.mxu1 %v2348_v43 }
 0x48c   : > { %2940 = vmatmul.msk.f32.vlgmr.msrb.gmra.mxu1 %vm2378_vm2, %v2364_v26 }
 0x48d   : > { %2416 = vmatpush.msra.mxu1 %v2363_v15 }
 0x48f   : > { %2417 = vmatpush.msra.mxu1 %v2361_v57  ;;  %v2481_v57 = vld [vmem:[#allocation7] sm:$0x1] }
 0x491   : > { %2418 = vmatpush.msra.mxu1 %v2359_v22 }
 0x493   : > { %2419 = vmatpush.msra.mxu1 %v2357_v56 }
 0x494   : > { %2941 = vmatmul.msk.f32.gmra.mxu1 %vm2378_vm2, %v2365_v28 }
 0x495   : > { %2420 = vmatpush.msra.mxu1 %v2355_v30 }
 0x497   : > { %2421 = vmatpush.msra.mxu1 %v2353_v35 }
 0x499   : > { %2422 = vmatpush.msra.mxu1 %v2351_v47 }
 0x49b   : > { %2423 = vmatpush.msra.mxu1 %v2349_v31 }
 0x49c   : > { %2942 = vmatmul.msk.f32.vlgmr.msra.gmra.mxu1 %vm2378_vm2, %v2364_v26 }
 0x4a4   : > { %2943 = vmatmul.msk.f32.gmra.mxu1 %vm2378_vm2, %v2365_v28  ;;  %v2531_v28 = vlaneseq }
 0x4a6   : > { %vm2533_vm4 = vcmp.lt.s32.totalorder %v2531_v28, 256 }
 0x509   : > { %v2402_v58 = vpop.f32.mrf.mxu1 }
 0x50a   : > { %v2403_v14 = vadd.f32 %v2402_v58, %v2371_v10 }
 0x50c   : > { %2431 = vst [vmem:[%s416_s10] sm:$0xff] %v2403_v14 }
 0x511   : > { %v2405_v13 = vpop.f32.mrf.mxu1 }
 0x512   : > { %v2406_v54 = vadd.f32 %v2405_v13, %v2376_v24 }
 0x514   : > { %2433 = vst [vmem:[%s416_s10 + $0x10] sm:$0xff] %v2406_v54  ;;  %v2435_v59 = vmax.f32 %v2403_v14, %v2406_v54 }
 0x516   : > { %v2436_v38 = vrot.slane %v2435_v59, 4 }
 0x518   : > { %v2437_v42 = vmax.f32 %v2435_v59, %v2436_v38 }
 0x519   : > { %v2425_v11 = vpop.f32.mrf.mxu1 }
 0x51a   : > { %v2438_v7 = vrot.slane %v2437_v42, 2  ;;  %v2426_v44 = vadd.f32 %v2425_v11, %v2371_v10 }
 0x51c   : > { %v2439_v51 = vmax.f32 %v2437_v42, %v2438_v7  ;;  %2432 = vst [vmem:[%s416_s10 + $0x8] sm:$0xff] %v2426_v44 }
 0x51e   : > { %v2440_v25 = vrot.slane %v2439_v51, 1 }
 0x520   : > { %v2441_v46 = vmax.f32 %v2439_v51, %v2440_v25 }
 0x521   : > { %v2428_v39 = vpop.f32.mrf.mxu1 }
 0x522   : > { %v2449_v21 = vsub.f32 %v2403_v14, %v2441_v46  ;;  %v2451_v62 = vsub.f32 %v2406_v54, %v2441_v46  ;;  %v2429_v23 = vadd.f32 %v2428_v39, %v2376_v24 }
 0x524   : > { %v2453_v53 = vmul.f32 1.442695, %v2449_v21  ;;  %v2457_v60 = vmul.f32 1.442695, %v2451_v62  ;;  %2434 = vst [vmem:[%s416_s10 + $0x18] sm:$0xff] %v2429_v23  ;;  %v2442_v36 = vmax.f32 %v2426_v44, %v2429_v23 }
 0x526   : > { %3010 = vpow2.f32 %v2453_v53  ;;  %v2443_v41 = vrot.slane %v2442_v36, 4 }
 0x527   : > { %3012 = vpow2.f32 %v2457_v60 }
 0x528   : > { %v2444_v5 = vmax.f32 %v2442_v36, %v2443_v41 }
 0x52a   : > { %v2445_v29 = vrot.slane %v2444_v5, 2 }
 0x52c   : > { %v3011_v17 = vpop.eup %3010  ;;  %v2446_v52 = vmax.f32 %v2444_v5, %v2445_v29 }
 0x52d   : > { %v3013_v16 = vpop.eup %3012 }
 0x52e   : > { %v2461_v2 = vadd.f32 %v3013_v16, %v3011_v17  ;;  %v2447_v27 = vrot.slane %v2446_v52, 1 }
 0x530   : > { %v2462_v33 = vrot.slane %v2461_v2, 4  ;;  %v2448_v40 = vmax.f32 %v2446_v52, %v2447_v27 }
 0x532   : > { %v2463_v34 = vadd.f32 %v2462_v33, %v2461_v2  ;;  %v2450_v63 = vsub.f32 %v2426_v44, %v2448_v40  ;;  %v2452_v18 = vsub.f32 %v2429_v23, %v2448_v40 }
 0x534   : > { %v2464_v19 = vrot.slane %v2463_v34, 2  ;;  %v2455_v32 = vmul.f32 1.442695, %v2450_v63  ;;  %v2459_v20 = vmul.f32 1.442695, %v2452_v18 }
 0x536   : > { %3014 = vpow2.f32 %v2455_v32  ;;  %v2465_v1 = vadd.f32 %v2464_v19, %v2463_v34 }
 0x537   : > { %3016 = vpow2.f32 %v2459_v20 }
 0x538   : > { %v2466_v9 = vrot.slane %v2465_v1, 1 }
 0x53a   : > { %v2467_v43 = vadd.f32 %v2466_v9, %v2465_v1 }
 0x53c   : > { %v3015_v4 = vpop.eup %3014  ;;  %3018 = vrcp.f32 %v2467_v43 }
 0x53d   : > { %v3017_v45 = vpop.eup %3016 }
 0x53e   : > { %v2468_v26 = vadd.f32 %v3017_v45, %v3015_v4 }
 0x540   : > { %v2469_v0 = vrot.slane %v2468_v26, 4 }
 0x542   : > { %v3019_v50 = vpop.eup %3018  ;;  %v2470_v37 = vadd.f32 %v2469_v0, %v2468_v26 }
 0x543   : > { %v2479_v15 = vmul.f32 %v3019_v50, %v3013_v16  ;;  %v2477_v49 = vmul.f32 %v3019_v50, %v3011_v17 }
 0x544   : > { %v2471_v48 = vrot.slane %v2470_v37, 2 }
 0x545   : > { %2499 = vmatpush.msrb.mxu1 %v2479_v15 }
 0x546   : > { %v2472_v55 = vadd.f32 %v2471_v48, %v2470_v37 }
 0x547   : > { %2500 = vmatpush.msrb.mxu1 %v2477_v49 }
 0x548   : > { %v2473_v3 = vrot.slane %v2472_v55, 1  ;;  %2944 = vmatmul.msk.f32.vlgmr.msrb.gmra.mxu1 %vm430_vm0, %v2481_v57 }
 0x54a   : > { %v2474_v12 = vadd.f32 %v2473_v3, %v2472_v55 }
 0x54c   : > { %3020 = vrcp.f32 %v2474_v12 }
 0x552   : > { %v3021_v22 = vpop.eup %3020 }
 0x553   : > { %v2480_v8 = vmul.f32 %v3021_v22, %v3017_v45  ;;  %v2478_v56 = vmul.f32 %v3021_v22, %v3015_v4 }
 0x555   : > { %2519 = vmatpush.msrb.mxu2 %v2480_v8 }
 0x557   : > { %2520 = vmatpush.msrb.mxu2 %v2478_v56 }
 0x558   : > { %2945 = vmatmul.msk.f32.vlgmr.msrb.gmra.mxu2 %vm430_vm0, %v2481_v57 }
 0x5c5   : > { %v2502_v30 = vpop.f32.mrf.mxu1 }
 0x5db   : > { %v2522_v6 = vpop.f32.mrf.mxu2 }
 0x5dc   : > { %v2527_v61 = vrot.slane %v2522_v6, 7 }
 0x5de   : > { %v2529_v35 = vsel %vm2528_vm3, %v2502_v30, %v2527_v61 }
 0x5df   : > { %2535 = vst.msk [vmem:[%s420_s17] sm:$0x3] %vm2533_vm4, %v2529_v35 }
 0x5e0 PF: > { %s23_s30 = sadd.s32 1, %s3160_s30  }
 0x5e1   : > { %p20_p7 = scmp.ge.s32.totalorder %s23_s30, 4  }
 0x5e3   :  { %22 = sbr.rel (!%p20_p7) target bundleno = 3 (0x3), region = 135 }
 0x5e8   :  { %2587 = vsyncpa [#allocation3], 1 }
 0x5e9   :  { %2589 = vsyncpa [#allocation3 + $0x1], 1 }
 0x5ea   :  { %2590 = vsyncpa [#allocation5], 1 }
 0x5eb   :  { %2591 = vsyncpa [#allocation8], 1 }

</bundles_post_ra>
